<compile_context>
chip_gen: v7x
topology: tpu7x:2x2x1
jax: 0.10.0
libtpu: 0.0.40
codegen_flags: <defaults>
</compile_context>

<pallas_src>
import numpy as np
import jax
import jax.numpy as jnp
from jax import lax
from jax.experimental import pallas as pl
from jax.experimental.pallas import tpu as pltpu

# ---- module-consistent config -------------------------------------------------
FEATURES      = 3                    # data features
FREQUENCIES   = 6                    # -> time embedding dim = 12
T_DIM         = 2 * FREQUENCIES
INPUT_DIM     = FEATURES + T_DIM     # add_time_to_input=True
HIDDEN        = 32                   # hidden_dim (small for the demo)
LATENT        = 16
LAYERS        = 2                    # equiv_layers (small for the demo)
NUM_PARTICLES = 16
BATCH         = 2
BN            = BATCH * NUM_PARTICLES
SUM_SCALE     = 1e-2
NEG_SLOPE     = 0.01                 # F.leaky_relu default

DOT_PREC = jax.lax.Precision.HIGHEST  # keep kernel & reference numerically aligned

# ---- packed parameter slab layout ----------------------------------------------
BLK       = HIDDEN                   # every weight block padded to (32, 32)
N_WBLOCKS = 4 + 7 * LAYERS           # wl0_x, wg0_f, wg1, wout + 7 per EPiC layer
N_BIAS    = 3 + 4 * LAYERS
BIAS_PAD  = -(-N_BIAS // 8) * 8
BIAS_ROW0 = BLK * N_WBLOCKS
SLAB_ROWS = BIAS_ROW0 + BIAS_PAD

# weight block ids
W_L0X, W_G0, W_G1, W_OUT = 0, 1, 2, 3
def _wlayer(l, j):   # j: 0 Wg1_pool, 1 Wg1_glob, 2 Wg2, 3 Wl1_loc, 4 Wl1_glob, 5 Wl2_loc, 6 Wl2_glob
    return 4 + 7 * l + j

# bias row ids
B_G0, B_G1, B_OUT = 0, 1, 2
def _blayer(l, j):   # j: 0 bg1, 1 bg2, 2 bl1, 3 bl2
    return 3 + 4 * l + j


def _lrelu(v):
    return jnp.where(v > 0, v, NEG_SLOPE * v)


# ---- Pallas kernel: full EPiC-encoder forward, whole batch in one step ---------
def epic_cnf_kernel(x_ref, tbias_ref, w_ref, o_ref):
    dot = lambda a, b: jnp.dot(a, b, preferred_element_type=jnp.float32,
                               precision=DOT_PREC)

    def W(k):                                              # (32, 32) weight block
        return w_ref[BLK * k: BLK * (k + 1), :]

    b_all = w_ref[BIAS_ROW0: BIAS_ROW0 + BIAS_PAD, :]      # all biases, one load
    def bias(i):                                           # (1, 32)
        return b_all[i:i + 1, :]

    # Static 0/1 segment matrices (exact; 2-D iotas, no division).
    r = lax.broadcasted_iota(jnp.int32, (BN, BATCH), 0)
    c = lax.broadcasted_iota(jnp.int32, (BN, BATCH), 1)
    scatter = ((r >= c * NUM_PARTICLES) &
               (r < (c + 1) * NUM_PARTICLES)).astype(jnp.float32)   # (BN, B): row -> cloud
    rp = lax.broadcasted_iota(jnp.int32, (BATCH, BN), 0)
    cp = lax.broadcasted_iota(jnp.int32, (BATCH, BN), 1)
    pool = ((cp >= rp * NUM_PARTICLES) &
            (cp < (rp + 1) * NUM_PARTICLES)).astype(jnp.float32)    # (B, BN): per-cloud sum

    x  = x_ref[...]                                        # (BN, FEATURES)
    tb = tbias_ref[...]                                    # (1, H) = temb @ wl0_t + bl0

    # local_0 (time part pre-folded into tb -> no concat, K=FEATURES matmul)
    z_local = _lrelu(dot(x, w_ref[0:FEATURES, :]) + tb)    # (BN, H)

    # global MLP; mean/scaled-sum pooling folded into W_G0 -> one pooled matmul, M=B
    s_raw = dot(pool, z_local)                             # (B, H) raw per-cloud sums
    g = _lrelu(dot(s_raw, W(W_G0)) + bias(B_G0))           # (B, H)
    z_global = _lrelu(dot(g, W(W_G1)) + bias(B_G1))        # (B, H); lanes >= LATENT stay 0

    for l in range(LAYERS):                                # EPiC layers (unrolled)
        # global update, batched over clouds (M = B); s_raw already holds the
        # pooled sums of the z_local entering this layer.
        g1 = _lrelu(dot(s_raw, W(_wlayer(l, 0)))
                    + dot(z_global, W(_wlayer(l, 1)))
                    + bias(_blayer(l, 0)))                               # (B, H)
        z_global = _lrelu(dot(g1, W(_wlayer(l, 2)))
                          + bias(_blayer(l, 1)) + z_global)              # (B, H) residual

        # local update: global half evaluated once per cloud, broadcast by one-hot matmul
        gb1 = dot(z_global, W(_wlayer(l, 4))) + bias(_blayer(l, 2))      # (B, H)
        l1 = _lrelu(dot(z_local, W(_wlayer(l, 3))) + dot(scatter, gb1))  # (BN, H)
        gb2 = dot(z_global, W(_wlayer(l, 6))) + bias(_blayer(l, 3))      # (B, H)
        z_local = _lrelu(dot(l1, W(_wlayer(l, 5))) + dot(scatter, gb2)
                         + z_local)                                      # (BN, H) residual

        if l + 1 < LAYERS:                                 # re-pool only when z_local changed
            s_raw = dot(pool, z_local)                     # (B, H)

    out = dot(z_local, W(W_OUT)) + bias(B_OUT)             # (BN, H); lanes >= FEATURES are 0
    o_ref[...] = out[:, :FEATURES]                         # single (masked) block store


# ---- one-time parameter packing (split / pre-fold, single aligned slab) --------
def pack_params(params):
    (wl0, bl0, wg0, bg0, wg1, bg1,
     Wg1s, bg1s, Wg2s, bg2s, Wl1s, bl1s, Wl2s, bl2s, wout, bout) = params
    H = HIDDEN

    def pad_w(w):
        r, c = w.shape
        return jnp.pad(w, ((0, BLK - r), (0, BLK - c)))

    def pad_b(b):
        return jnp.pad(b, ((0, 0), (0, BLK - b.shape[-1])))

    def fold_pool(w):   # [mean | scaled-sum] column blocks -> raw-sum weight
        return w[:H] / NUM_PARTICLES + SUM_SCALE * w[H:2 * H]

    blocks = [
        pad_w(wl0[T_DIM:]),                  # W_L0X : x part of local_0
        pad_w(fold_pool(wg0)),               # W_G0  : pooled global input
        pad_w(wg1),                          # W_G1  (lane-padded)
        pad_w(wout),                         # W_OUT (lane-padded)
    ]
    for l in range(LAYERS):
        Wg1 = Wg1s[l]
        blocks += [
            pad_w(fold_pool(Wg1)),           # pooled part
            pad_w(Wg1[2 * H:]),              # global part (zero row-padded)
            pad_w(Wg2s[l]),
            pad_w(Wl1s[l][:H]),              # local part
            pad_w(Wl1s[l][H:]),              # global part
            pad_w(Wl2s[l][:H]),
            pad_w(Wl2s[l][H:]),
        ]

    biases = [pad_b(bg0), pad_b(bg1), pad_b(bout)]
    for l in range(LAYERS):
        biases += [pad_b(bg1s[l]), pad_b(bg2s[l]), pad_b(bl1s[l]), pad_b(bl2s[l])]
    bias_block = jnp.concatenate(biases, axis=0)
    bias_block = jnp.pad(bias_block, ((0, BIAS_PAD - N_BIAS), (0, 0)))

    slab = jnp.concatenate(blocks + [bias_block], axis=0)
    assert slab.shape == (SLAB_ROWS, BLK)
    return slab, wl0[:T_DIM], bl0            # wl0_t / bl0 needed per call for the time bias


# ---- wrapper (called per ODE evaluation) ---------------------------------------
def cnf_forward(t_scalar, x, packed):
    slab, wl0_t, bl0 = packed
    # sincos time embedding: frequencies buffer = 2**arange(f) * pi
    freqs = (2.0 ** jnp.arange(FREQUENCIES, dtype=jnp.float32)) * jnp.pi
    ft = freqs * t_scalar
    temb = jnp.concatenate([jnp.cos(ft), jnp.sin(ft)])[None, :]          # (1, 2f)
    # row-constant local_0 contribution folded into a per-call bias (fused by XLA)
    tbias = jnp.dot(temb, wl0_t, precision=DOT_PREC) + bl0               # (1, H)
    x2d = x.reshape(BN, FEATURES)                                        # (B*N, F)

    out2d = pl.pallas_call(
        epic_cnf_kernel,
        out_shape=jax.ShapeDtypeStruct((BN, FEATURES), jnp.float32),
        in_specs=[pl.BlockSpec(memory_space=pltpu.MemorySpace.VMEM)] * 3,
        out_specs=pl.BlockSpec(memory_space=pltpu.MemorySpace.VMEM),
    )(x2d, tbias, slab)
    return out2d.reshape(BATCH, NUM_PARTICLES, FEATURES)


# ---- pure-JAX reference (same math, no Pallas, original params) ----------------
def cnf_forward_ref(t_scalar, x, params):
    (wl0, bl0, wg0, bg0, wg1, bg1,
     Wg1s, bg1s, Wg2s, bg2s, Wl1s, bl1s, Wl2s, bl2s, wout, bout) = params
    mm = lambda a, b: jnp.matmul(a, b, precision=DOT_PREC)

    freqs = (2.0 ** jnp.arange(FREQUENCIES, dtype=jnp.float32)) * jnp.pi
    ft = freqs * t_scalar
    temb = jnp.concatenate([jnp.cos(ft), jnp.sin(ft)])
    t_full = jnp.broadcast_to(temb, (*x.shape[:-1], T_DIM))
    x_in = jnp.concatenate([t_full, x], axis=-1)

    x_local = _lrelu(mm(x_in, wl0) + bl0[0])
    x_mean = x_local.mean(axis=1)
    x_sum = x_local.sum(axis=1) * SUM_SCALE
    x_global = jnp.concatenate([x_mean, x_sum], axis=-1)
    x_global = _lrelu(mm(x_global, wg0) + bg0[0])
    x_global = _lrelu(mm(x_global, wg1) + bg1[0])

    z_local, z_global = x_local, x_global
    for l in range(LAYERS):
        p_mean = z_local.mean(axis=1)
        p_sum = z_local.sum(axis=1) * SUM_SCALE
        g_in = jnp.concatenate([p_mean, p_sum, z_global], axis=-1)
        g1 = _lrelu(mm(g_in, Wg1s[l]) + bg1s[l][0])
        z_global = _lrelu(mm(g1, Wg2s[l]) + bg2s[l][0] + z_global)
        g2l = jnp.broadcast_to(z_global[:, None, :], (*z_local.shape[:2], LATENT))
        l_in = jnp.concatenate([z_local, g2l], axis=-1)
        l1 = _lrelu(mm(l_in, Wl1s[l]) + bl1s[l][0])
        z_local = _lrelu(mm(jnp.concatenate([l1, g2l], axis=-1), Wl2s[l])
                         + bl2s[l][0] + z_local)
    return mm(z_local, wout) + bout[0]


# ---- deterministic parameter construction --------------------------------------
def init_params(key):
    def linear(k, fan_in, fan_out):
        k1, k2 = jax.random.split(k)
        bound = 1.0 / np.sqrt(fan_in)
        w = jax.random.uniform(k1, (fan_in, fan_out), jnp.float32, -bound, bound)
        b = jax.random.uniform(k2, (1, fan_out), jnp.float32, -bound, bound)
        return w, b

    keys = jax.random.split(key, 6 + 4 * LAYERS)
    ki = iter(keys)
    wl0, bl0 = linear(next(ki), INPUT_DIM, HIDDEN)
    wg0, bg0 = linear(next(ki), 2 * HIDDEN, HIDDEN)
    wg1, bg1 = linear(next(ki), HIDDEN, LATENT)

    g1w, g1b, g2w, g2b, l1w, l1b, l2w, l2b = ([] for _ in range(8))
    for _ in range(LAYERS):
        w, b = linear(next(ki), 2 * HIDDEN + LATENT, HIDDEN); g1w.append(w); g1b.append(b)
        w, b = linear(next(ki), HIDDEN, LATENT);              g2w.append(w); g2b.append(b)
        w, b = linear(next(ki), HIDDEN + LATENT, HIDDEN);     l1w.append(w); l1b.append(b)
        w, b = linear(next(ki), HIDDEN + LATENT, HIDDEN);     l2w.append(w); l2b.append(b)
    wout, bout = linear(next(ki), HIDDEN, FEATURES)

    stack = lambda xs: jnp.stack(xs, axis=0)
    return (wl0, bl0, wg0, bg0, wg1, bg1,
            stack(g1w), stack(g1b), stack(g2w), stack(g2b),
            stack(l1w), stack(l1b), stack(l2w), stack(l2b),
            wout, bout)


if __name__ == "__main__":
    key = jax.random.PRNGKey(0)
    k_x, k_p = jax.random.split(key)
    x = jax.random.normal(k_x, (BATCH, NUM_PARTICLES, FEATURES), jnp.float32)
    t = jnp.float32(0.37)                    # scalar ODE time, as in ode_wrapper
    params = init_params(k_p)

    # one-time weight split / fold / pack (reused across all ODE evaluations)
    packed = pack_params(params)

    out = jax.jit(cnf_forward)(t, x, packed)
    out = jax.block_until_ready(out)

    ref = cnf_forward_ref(t, x, params)
    np.testing.assert_allclose(np.asarray(out), np.asarray(ref), rtol=1e-4, atol=1e-4)
    assert out.shape == (BATCH, NUM_PARTICLES, FEATURES)
    print("KERNEL_OK")
</pallas_src>

<mosaic_0001>
module attributes {stable_mosaic.version = 11 : i64} {
  func.func @epic_cnf_kernel(%arg0: memref<32x3xf32, #tpu.memory_space<vmem>>, %arg1: memref<1x32xf32, #tpu.memory_space<vmem>>, %arg2: memref<592x32xf32, #tpu.memory_space<vmem>>, %arg3: memref<32x3xf32, #tpu.memory_space<vmem>>) attributes {dimension_semantics = [], scalar_prefetch = 0 : i64, scratch_operands = 0 : i64, tpu.core_type = #tpu.core_type<tc>} {
    %c576 = arith.constant 576 : index
    %c0 = arith.constant 0 : index
    %0 = vector.load %arg2[%c576, %c0] : memref<592x32xf32, #tpu.memory_space<vmem>>, vector<16x32xf32>
    %1 = tpu.iota {dimensions = array<i32: 0>} : vector<32x2xi32>
    %2 = tpu.iota {dimensions = array<i32: 1>} : vector<32x2xi32>
    %c16_i32 = arith.constant 16 : i32
    %3 = vector.broadcast %c16_i32 : i32 to vector<32x2xi32>
    %4 = arith.muli %2, %3 : vector<32x2xi32>
    %5 = arith.cmpi sge, %1, %4 : vector<32x2xi32>
    %c1_i32 = arith.constant 1 : i32
    %6 = vector.broadcast %c1_i32 : i32 to vector<32x2xi32>
    %7 = arith.addi %2, %6 : vector<32x2xi32>
    %c16_i32_0 = arith.constant 16 : i32
    %8 = vector.broadcast %c16_i32_0 : i32 to vector<32x2xi32>
    %9 = arith.muli %7, %8 : vector<32x2xi32>
    %10 = arith.cmpi slt, %1, %9 : vector<32x2xi32>
    %11 = arith.andi %5, %10 : vector<32x2xi1>
    %12 = arith.extui %11 : vector<32x2xi1> to vector<32x2xi32>
    %13 = arith.sitofp %12 : vector<32x2xi32> to vector<32x2xf32>
    %14 = tpu.iota {dimensions = array<i32: 0>} : vector<2x32xi32>
    %15 = tpu.iota {dimensions = array<i32: 1>} : vector<2x32xi32>
    %c16_i32_1 = arith.constant 16 : i32
    %16 = vector.broadcast %c16_i32_1 : i32 to vector<2x32xi32>
    %17 = arith.muli %14, %16 : vector<2x32xi32>
    %18 = arith.cmpi sge, %15, %17 : vector<2x32xi32>
    %c1_i32_2 = arith.constant 1 : i32
    %19 = vector.broadcast %c1_i32_2 : i32 to vector<2x32xi32>
    %20 = arith.addi %14, %19 : vector<2x32xi32>
    %c16_i32_3 = arith.constant 16 : i32
    %21 = vector.broadcast %c16_i32_3 : i32 to vector<2x32xi32>
    %22 = arith.muli %20, %21 : vector<2x32xi32>
    %23 = arith.cmpi slt, %15, %22 : vector<2x32xi32>
    %24 = arith.andi %18, %23 : vector<2x32xi1>
    %25 = arith.extui %24 : vector<2x32xi1> to vector<2x32xi32>
    %26 = arith.sitofp %25 : vector<2x32xi32> to vector<2x32xf32>
    %c0_4 = arith.constant 0 : index
    %c0_5 = arith.constant 0 : index
    %27 = vector.load %arg0[%c0_4, %c0_5] : memref<32x3xf32, #tpu.memory_space<vmem>>, vector<32x3xf32>
    %c0_6 = arith.constant 0 : index
    %c0_7 = arith.constant 0 : index
    %28 = vector.load %arg1[%c0_6, %c0_7] : memref<1x32xf32, #tpu.memory_space<vmem>>, vector<1x32xf32>
    %c0_8 = arith.constant 0 : index
    %c0_9 = arith.constant 0 : index
    %29 = vector.load %arg2[%c0_8, %c0_9] : memref<592x32xf32, #tpu.memory_space<vmem>>, vector<3x32xf32>
    %cst = arith.constant dense<0.000000e+00> : vector<32x32xf32>
    %30 = tpu.matmul %27, %29, %cst {dimension_numbers = #tpu.dot_dimension_numbers<[1], [0], [0], [1], [0, 0, 1, 1], [], []>, precision = #tpu.contract_precision<fp32>} : vector<32x3xf32>, vector<3x32xf32>, vector<32x32xf32> -> vector<32x32xf32>
    %31 = vector.broadcast %28 : vector<1x32xf32> to vector<32x32xf32>
    %32 = arith.addf %30, %31 : vector<32x32xf32>
    %cst_10 = arith.constant 0.000000e+00 : f32
    %33 = vector.broadcast %cst_10 : f32 to vector<32x32xf32>
    %34 = arith.cmpf ogt, %32, %33 : vector<32x32xf32>
    %cst_11 = arith.constant 0.00999999977 : f32
    %35 = vector.broadcast %cst_11 : f32 to vector<32x32xf32>
    %36 = arith.mulf %35, %32 : vector<32x32xf32>
    %37 = arith.select %34, %32, %36 : vector<32x32xi1>, vector<32x32xf32>
    %cst_12 = arith.constant dense<0.000000e+00> : vector<2x32xf32>
    %38 = tpu.matmul %26, %37, %cst_12 {dimension_numbers = #tpu.dot_dimension_numbers<[1], [0], [0], [1], [0, 0, 1, 1], [], []>, precision = #tpu.contract_precision<fp32>} : vector<2x32xf32>, vector<32x32xf32>, vector<2x32xf32> -> vector<2x32xf32>
    %c32 = arith.constant 32 : index
    %c0_13 = arith.constant 0 : index
    %39 = vector.load %arg2[%c32, %c0_13] : memref<592x32xf32, #tpu.memory_space<vmem>>, vector<32x32xf32>
    %cst_14 = arith.constant dense<0.000000e+00> : vector<2x32xf32>
    %40 = tpu.matmul %38, %39, %cst_14 {dimension_numbers = #tpu.dot_dimension_numbers<[1], [0], [0], [1], [0, 0, 1, 1], [], []>, precision = #tpu.contract_precision<fp32>} : vector<2x32xf32>, vector<32x32xf32>, vector<2x32xf32> -> vector<2x32xf32>
    %41 = vector.extract_strided_slice %0 {offsets = [0, 0], sizes = [1, 32], strides = [1, 1]} : vector<16x32xf32> to vector<1x32xf32>
    %42 = vector.broadcast %41 : vector<1x32xf32> to vector<2x32xf32>
    %43 = arith.addf %40, %42 : vector<2x32xf32>
    %cst_15 = arith.constant 0.000000e+00 : f32
    %44 = vector.broadcast %cst_15 : f32 to vector<2x32xf32>
    %45 = arith.cmpf ogt, %43, %44 : vector<2x32xf32>
    %cst_16 = arith.constant 0.00999999977 : f32
    %46 = vector.broadcast %cst_16 : f32 to vector<2x32xf32>
    %47 = arith.mulf %46, %43 : vector<2x32xf32>
    %48 = arith.select %45, %43, %47 : vector<2x32xi1>, vector<2x32xf32>
    %c64 = arith.constant 64 : index
    %c0_17 = arith.constant 0 : index
    %49 = vector.load %arg2[%c64, %c0_17] : memref<592x32xf32, #tpu.memory_space<vmem>>, vector<32x32xf32>
    %cst_18 = arith.constant dense<0.000000e+00> : vector<2x32xf32>
    %50 = tpu.matmul %48, %49, %cst_18 {dimension_numbers = #tpu.dot_dimension_numbers<[1], [0], [0], [1], [0, 0, 1, 1], [], []>, precision = #tpu.contract_precision<fp32>} : vector<2x32xf32>, vector<32x32xf32>, vector<2x32xf32> -> vector<2x32xf32>
    %51 = vector.extract_strided_slice %0 {offsets = [1, 0], sizes = [1, 32], strides = [1, 1]} : vector<16x32xf32> to vector<1x32xf32>
    %52 = vector.broadcast %51 : vector<1x32xf32> to vector<2x32xf32>
    %53 = arith.addf %50, %52 : vector<2x32xf32>
    %cst_19 = arith.constant 0.000000e+00 : f32
    %54 = vector.broadcast %cst_19 : f32 to vector<2x32xf32>
    %55 = arith.cmpf ogt, %53, %54 : vector<2x32xf32>
    %cst_20 = arith.constant 0.00999999977 : f32
    %56 = vector.broadcast %cst_20 : f32 to vector<2x32xf32>
    %57 = arith.mulf %56, %53 : vector<2x32xf32>
    %58 = arith.select %55, %53, %57 : vector<2x32xi1>, vector<2x32xf32>
    %c128 = arith.constant 128 : index
    %c0_21 = arith.constant 0 : index
    %59 = vector.load %arg2[%c128, %c0_21] : memref<592x32xf32, #tpu.memory_space<vmem>>, vector<32x32xf32>
    %cst_22 = arith.constant dense<0.000000e+00> : vector<2x32xf32>
    %60 = tpu.matmul %38, %59, %cst_22 {dimension_numbers = #tpu.dot_dimension_numbers<[1], [0], [0], [1], [0, 0, 1, 1], [], []>, precision = #tpu.contract_precision<fp32>} : vector<2x32xf32>, vector<32x32xf32>, vector<2x32xf32> -> vector<2x32xf32>
    %c160 = arith.constant 160 : index
    %c0_23 = arith.constant 0 : index
    %61 = vector.load %arg2[%c160, %c0_23] : memref<592x32xf32, #tpu.memory_space<vmem>>, vector<32x32xf32>
    %cst_24 = arith.constant dense<0.000000e+00> : vector<2x32xf32>
    %62 = tpu.matmul %58, %61, %cst_24 {dimension_numbers = #tpu.dot_dimension_numbers<[1], [0], [0], [1], [0, 0, 1, 1], [], []>, precision = #tpu.contract_precision<fp32>} : vector<2x32xf32>, vector<32x32xf32>, vector<2x32xf32> -> vector<2x32xf32>
    %63 = arith.addf %60, %62 : vector<2x32xf32>
    %64 = vector.extract_strided_slice %0 {offsets = [3, 0], sizes = [1, 32], strides = [1, 1]} : vector<16x32xf32> to vector<1x32xf32>
    %65 = vector.broadcast %64 : vector<1x32xf32> to vector<2x32xf32>
    %66 = arith.addf %63, %65 : vector<2x32xf32>
    %cst_25 = arith.constant 0.000000e+00 : f32
    %67 = vector.broadcast %cst_25 : f32 to vector<2x32xf32>
    %68 = arith.cmpf ogt, %66, %67 : vector<2x32xf32>
    %cst_26 = arith.constant 0.00999999977 : f32
    %69 = vector.broadcast %cst_26 : f32 to vector<2x32xf32>
    %70 = arith.mulf %69, %66 : vector<2x32xf32>
    %71 = arith.select %68, %66, %70 : vector<2x32xi1>, vector<2x32xf32>
    %c192 = arith.constant 192 : index
    %c0_27 = arith.constant 0 : index
    %72 = vector.load %arg2[%c192, %c0_27] : memref<592x32xf32, #tpu.memory_space<vmem>>, vector<32x32xf32>
    %cst_28 = arith.constant dense<0.000000e+00> : vector<2x32xf32>
    %73 = tpu.matmul %71, %72, %cst_28 {dimension_numbers = #tpu.dot_dimension_numbers<[1], [0], [0], [1], [0, 0, 1, 1], [], []>, precision = #tpu.contract_precision<fp32>} : vector<2x32xf32>, vector<32x32xf32>, vector<2x32xf32> -> vector<2x32xf32>
    %74 = vector.extract_strided_slice %0 {offsets = [4, 0], sizes = [1, 32], strides = [1, 1]} : vector<16x32xf32> to vector<1x32xf32>
    %75 = vector.broadcast %74 : vector<1x32xf32> to vector<2x32xf32>
    %76 = arith.addf %73, %75 : vector<2x32xf32>
    %77 = arith.addf %76, %58 : vector<2x32xf32>
    %cst_29 = arith.constant 0.000000e+00 : f32
    %78 = vector.broadcast %cst_29 : f32 to vector<2x32xf32>
    %79 = arith.cmpf ogt, %77, %78 : vector<2x32xf32>
    %cst_30 = arith.constant 0.00999999977 : f32
    %80 = vector.broadcast %cst_30 : f32 to vector<2x32xf32>
    %81 = arith.mulf %80, %77 : vector<2x32xf32>
    %82 = arith.select %79, %77, %81 : vector<2x32xi1>, vector<2x32xf32>
    %c256 = arith.constant 256 : index
    %c0_31 = arith.constant 0 : index
    %83 = vector.load %arg2[%c256, %c0_31] : memref<592x32xf32, #tpu.memory_space<vmem>>, vector<32x32xf32>
    %cst_32 = arith.constant dense<0.000000e+00> : vector<2x32xf32>
    %84 = tpu.matmul %82, %83, %cst_32 {dimension_numbers = #tpu.dot_dimension_numbers<[1], [0], [0], [1], [0, 0, 1, 1], [], []>, precision = #tpu.contract_precision<fp32>} : vector<2x32xf32>, vector<32x32xf32>, vector<2x32xf32> -> vector<2x32xf32>
    %85 = vector.extract_strided_slice %0 {offsets = [5, 0], sizes = [1, 32], strides = [1, 1]} : vector<16x32xf32> to vector<1x32xf32>
    %86 = vector.broadcast %85 : vector<1x32xf32> to vector<2x32xf32>
    %87 = arith.addf %84, %86 : vector<2x32xf32>
    %c224 = arith.constant 224 : index
    %c0_33 = arith.constant 0 : index
    %88 = vector.load %arg2[%c224, %c0_33] : memref<592x32xf32, #tpu.memory_space<vmem>>, vector<32x32xf32>
    %cst_34 = arith.constant dense<0.000000e+00> : vector<32x32xf32>
    %89 = tpu.matmul %37, %88, %cst_34 {dimension_numbers = #tpu.dot_dimension_numbers<[1], [0], [0], [1], [0, 0, 1, 1], [], []>, precision = #tpu.contract_precision<fp32>} : vector<32x32xf32>, vector<32x32xf32>, vector<32x32xf32> -> vector<32x32xf32>
    %cst_35 = arith.constant dense<0.000000e+00> : vector<32x32xf32>
    %90 = tpu.matmul %13, %87, %cst_35 {dimension_numbers = #tpu.dot_dimension_numbers<[1], [0], [0], [1], [0, 0, 1, 1], [], []>, precision = #tpu.contract_precision<fp32>} : vector<32x2xf32>, vector<2x32xf32>, vector<32x32xf32> -> vector<32x32xf32>
    %91 = arith.addf %89, %90 : vector<32x32xf32>
    %cst_36 = arith.constant 0.000000e+00 : f32
    %92 = vector.broadcast %cst_36 : f32 to vector<32x32xf32>
    %93 = arith.cmpf ogt, %91, %92 : vector<32x32xf32>
    %cst_37 = arith.constant 0.00999999977 : f32
    %94 = vector.broadcast %cst_37 : f32 to vector<32x32xf32>
    %95 = arith.mulf %94, %91 : vector<32x32xf32>
    %96 = arith.select %93, %91, %95 : vector<32x32xi1>, vector<32x32xf32>
    %c320 = arith.constant 320 : index
    %c0_38 = arith.constant 0 : index
    %97 = vector.load %arg2[%c320, %c0_38] : memref<592x32xf32, #tpu.memory_space<vmem>>, vector<32x32xf32>
    %cst_39 = arith.constant dense<0.000000e+00> : vector<2x32xf32>
    %98 = tpu.matmul %82, %97, %cst_39 {dimension_numbers = #tpu.dot_dimension_numbers<[1], [0], [0], [1], [0, 0, 1, 1], [], []>, precision = #tpu.contract_precision<fp32>} : vector<2x32xf32>, vector<32x32xf32>, vector<2x32xf32> -> vector<2x32xf32>
    %99 = vector.extract_strided_slice %0 {offsets = [6, 0], sizes = [1, 32], strides = [1, 1]} : vector<16x32xf32> to vector<1x32xf32>
    %100 = vector.broadcast %99 : vector<1x32xf32> to vector<2x32xf32>
    %101 = arith.addf %98, %100 : vector<2x32xf32>
    %c288 = arith.constant 288 : index
    %c0_40 = arith.constant 0 : index
    %102 = vector.load %arg2[%c288, %c0_40] : memref<592x32xf32, #tpu.memory_space<vmem>>, vector<32x32xf32>
    %cst_41 = arith.constant dense<0.000000e+00> : vector<32x32xf32>
    %103 = tpu.matmul %96, %102, %cst_41 {dimension_numbers = #tpu.dot_dimension_numbers<[1], [0], [0], [1], [0, 0, 1, 1], [], []>, precision = #tpu.contract_precision<fp32>} : vector<32x32xf32>, vector<32x32xf32>, vector<32x32xf32> -> vector<32x32xf32>
    %cst_42 = arith.constant dense<0.000000e+00> : vector<32x32xf32>
    %104 = tpu.matmul %13, %101, %cst_42 {dimension_numbers = #tpu.dot_dimension_numbers<[1], [0], [0], [1], [0, 0, 1, 1], [], []>, precision = #tpu.contract_precision<fp32>} : vector<32x2xf32>, vector<2x32xf32>, vector<32x32xf32> -> vector<32x32xf32>
    %105 = arith.addf %103, %104 : vector<32x32xf32>
    %106 = arith.addf %105, %37 : vector<32x32xf32>
    %cst_43 = arith.constant 0.000000e+00 : f32
    %107 = vector.broadcast %cst_43 : f32 to vector<32x32xf32>
    %108 = arith.cmpf ogt, %106, %107 : vector<32x32xf32>
    %cst_44 = arith.constant 0.00999999977 : f32
    %109 = vector.broadcast %cst_44 : f32 to vector<32x32xf32>
    %110 = arith.mulf %109, %106 : vector<32x32xf32>
    %111 = arith.select %108, %106, %110 : vector<32x32xi1>, vector<32x32xf32>
    %cst_45 = arith.constant dense<0.000000e+00> : vector<2x32xf32>
    %112 = tpu.matmul %26, %111, %cst_45 {dimension_numbers = #tpu.dot_dimension_numbers<[1], [0], [0], [1], [0, 0, 1, 1], [], []>, precision = #tpu.contract_precision<fp32>} : vector<2x32xf32>, vector<32x32xf32>, vector<2x32xf32> -> vector<2x32xf32>
    %c352 = arith.constant 352 : index
    %c0_46 = arith.constant 0 : index
    %113 = vector.load %arg2[%c352, %c0_46] : memref<592x32xf32, #tpu.memory_space<vmem>>, vector<32x32xf32>
    %cst_47 = arith.constant dense<0.000000e+00> : vector<2x32xf32>
    %114 = tpu.matmul %112, %113, %cst_47 {dimension_numbers = #tpu.dot_dimension_numbers<[1], [0], [0], [1], [0, 0, 1, 1], [], []>, precision = #tpu.contract_precision<fp32>} : vector<2x32xf32>, vector<32x32xf32>, vector<2x32xf32> -> vector<2x32xf32>
    %c384 = arith.constant 384 : index
    %c0_48 = arith.constant 0 : index
    %115 = vector.load %arg2[%c384, %c0_48] : memref<592x32xf32, #tpu.memory_space<vmem>>, vector<32x32xf32>
    %cst_49 = arith.constant dense<0.000000e+00> : vector<2x32xf32>
    %116 = tpu.matmul %82, %115, %cst_49 {dimension_numbers = #tpu.dot_dimension_numbers<[1], [0], [0], [1], [0, 0, 1, 1], [], []>, precision = #tpu.contract_precision<fp32>} : vector<2x32xf32>, vector<32x32xf32>, vector<2x32xf32> -> vector<2x32xf32>
    %117 = arith.addf %114, %116 : vector<2x32xf32>
    %118 = vector.extract_strided_slice %0 {offsets = [7, 0], sizes = [1, 32], strides = [1, 1]} : vector<16x32xf32> to vector<1x32xf32>
    %119 = vector.broadcast %118 : vector<1x32xf32> to vector<2x32xf32>
    %120 = arith.addf %117, %119 : vector<2x32xf32>
    %cst_50 = arith.constant 0.000000e+00 : f32
    %121 = vector.broadcast %cst_50 : f32 to vector<2x32xf32>
    %122 = arith.cmpf ogt, %120, %121 : vector<2x32xf32>
    %cst_51 = arith.constant 0.00999999977 : f32
    %123 = vector.broadcast %cst_51 : f32 to vector<2x32xf32>
    %124 = arith.mulf %123, %120 : vector<2x32xf32>
    %125 = arith.select %122, %120, %124 : vector<2x32xi1>, vector<2x32xf32>
    %c416 = arith.constant 416 : index
    %c0_52 = arith.constant 0 : index
    %126 = vector.load %arg2[%c416, %c0_52] : memref<592x32xf32, #tpu.memory_space<vmem>>, vector<32x32xf32>
    %cst_53 = arith.constant dense<0.000000e+00> : vector<2x32xf32>
    %127 = tpu.matmul %125, %126, %cst_53 {dimension_numbers = #tpu.dot_dimension_numbers<[1], [0], [0], [1], [0, 0, 1, 1], [], []>, precision = #tpu.contract_precision<fp32>} : vector<2x32xf32>, vector<32x32xf32>, vector<2x32xf32> -> vector<2x32xf32>
    %128 = vector.extract_strided_slice %0 {offsets = [8, 0], sizes = [1, 32], strides = [1, 1]} : vector<16x32xf32> to vector<1x32xf32>
    %129 = vector.broadcast %128 : vector<1x32xf32> to vector<2x32xf32>
    %130 = arith.addf %127, %129 : vector<2x32xf32>
    %131 = arith.addf %130, %82 : vector<2x32xf32>
    %cst_54 = arith.constant 0.000000e+00 : f32
    %132 = vector.broadcast %cst_54 : f32 to vector<2x32xf32>
    %133 = arith.cmpf ogt, %131, %132 : vector<2x32xf32>
    %cst_55 = arith.constant 0.00999999977 : f32
    %134 = vector.broadcast %cst_55 : f32 to vector<2x32xf32>
    %135 = arith.mulf %134, %131 : vector<2x32xf32>
    %136 = arith.select %133, %131, %135 : vector<2x32xi1>, vector<2x32xf32>
    %c480 = arith.constant 480 : index
    %c0_56 = arith.constant 0 : index
    %137 = vector.load %arg2[%c480, %c0_56] : memref<592x32xf32, #tpu.memory_space<vmem>>, vector<32x32xf32>
    %cst_57 = arith.constant dense<0.000000e+00> : vector<2x32xf32>
    %138 = tpu.matmul %136, %137, %cst_57 {dimension_numbers = #tpu.dot_dimension_numbers<[1], [0], [0], [1], [0, 0, 1, 1], [], []>, precision = #tpu.contract_precision<fp32>} : vector<2x32xf32>, vector<32x32xf32>, vector<2x32xf32> -> vector<2x32xf32>
    %139 = vector.extract_strided_slice %0 {offsets = [9, 0], sizes = [1, 32], strides = [1, 1]} : vector<16x32xf32> to vector<1x32xf32>
    %140 = vector.broadcast %139 : vector<1x32xf32> to vector<2x32xf32>
    %141 = arith.addf %138, %140 : vector<2x32xf32>
    %c448 = arith.constant 448 : index
    %c0_58 = arith.constant 0 : index
    %142 = vector.load %arg2[%c448, %c0_58] : memref<592x32xf32, #tpu.memory_space<vmem>>, vector<32x32xf32>
    %cst_59 = arith.constant dense<0.000000e+00> : vector<32x32xf32>
    %143 = tpu.matmul %111, %142, %cst_59 {dimension_numbers = #tpu.dot_dimension_numbers<[1], [0], [0], [1], [0, 0, 1, 1], [], []>, precision = #tpu.contract_precision<fp32>} : vector<32x32xf32>, vector<32x32xf32>, vector<32x32xf32> -> vector<32x32xf32>
    %cst_60 = arith.constant dense<0.000000e+00> : vector<32x32xf32>
    %144 = tpu.matmul %13, %141, %cst_60 {dimension_numbers = #tpu.dot_dimension_numbers<[1], [0], [0], [1], [0, 0, 1, 1], [], []>, precision = #tpu.contract_precision<fp32>} : vector<32x2xf32>, vector<2x32xf32>, vector<32x32xf32> -> vector<32x32xf32>
    %145 = arith.addf %143, %144 : vector<32x32xf32>
    %cst_61 = arith.constant 0.000000e+00 : f32
    %146 = vector.broadcast %cst_61 : f32 to vector<32x32xf32>
    %147 = arith.cmpf ogt, %145, %146 : vector<32x32xf32>
    %cst_62 = arith.constant 0.00999999977 : f32
    %148 = vector.broadcast %cst_62 : f32 to vector<32x32xf32>
    %149 = arith.mulf %148, %145 : vector<32x32xf32>
    %150 = arith.select %147, %145, %149 : vector<32x32xi1>, vector<32x32xf32>
    %c544 = arith.constant 544 : index
    %c0_63 = arith.constant 0 : index
    %151 = vector.load %arg2[%c544, %c0_63] : memref<592x32xf32, #tpu.memory_space<vmem>>, vector<32x32xf32>
    %cst_64 = arith.constant dense<0.000000e+00> : vector<2x32xf32>
    %152 = tpu.matmul %136, %151, %cst_64 {dimension_numbers = #tpu.dot_dimension_numbers<[1], [0], [0], [1], [0, 0, 1, 1], [], []>, precision = #tpu.contract_precision<fp32>} : vector<2x32xf32>, vector<32x32xf32>, vector<2x32xf32> -> vector<2x32xf32>
    %153 = vector.extract_strided_slice %0 {offsets = [10, 0], sizes = [1, 32], strides = [1, 1]} : vector<16x32xf32> to vector<1x32xf32>
    %154 = vector.broadcast %153 : vector<1x32xf32> to vector<2x32xf32>
    %155 = arith.addf %152, %154 : vector<2x32xf32>
    %c512 = arith.constant 512 : index
    %c0_65 = arith.constant 0 : index
    %156 = vector.load %arg2[%c512, %c0_65] : memref<592x32xf32, #tpu.memory_space<vmem>>, vector<32x32xf32>
    %cst_66 = arith.constant dense<0.000000e+00> : vector<32x32xf32>
    %157 = tpu.matmul %150, %156, %cst_66 {dimension_numbers = #tpu.dot_dimension_numbers<[1], [0], [0], [1], [0, 0, 1, 1], [], []>, precision = #tpu.contract_precision<fp32>} : vector<32x32xf32>, vector<32x32xf32>, vector<32x32xf32> -> vector<32x32xf32>
    %cst_67 = arith.constant dense<0.000000e+00> : vector<32x32xf32>
    %158 = tpu.matmul %13, %155, %cst_67 {dimension_numbers = #tpu.dot_dimension_numbers<[1], [0], [0], [1], [0, 0, 1, 1], [], []>, precision = #tpu.contract_precision<fp32>} : vector<32x2xf32>, vector<2x32xf32>, vector<32x32xf32> -> vector<32x32xf32>
    %159 = arith.addf %157, %158 : vector<32x32xf32>
    %160 = arith.addf %159, %111 : vector<32x32xf32>
    %cst_68 = arith.constant 0.000000e+00 : f32
    %161 = vector.broadcast %cst_68 : f32 to vector<32x32xf32>
    %162 = arith.cmpf ogt, %160, %161 : vector<32x32xf32>
    %cst_69 = arith.constant 0.00999999977 : f32
    %163 = vector.broadcast %cst_69 : f32 to vector<32x32xf32>
    %164 = arith.mulf %163, %160 : vector<32x32xf32>
    %165 = arith.select %162, %160, %164 : vector<32x32xi1>, vector<32x32xf32>
    %c96 = arith.constant 96 : index
    %c0_70 = arith.constant 0 : index
    %166 = vector.load %arg2[%c96, %c0_70] : memref<592x32xf32, #tpu.memory_space<vmem>>, vector<32x32xf32>
    %cst_71 = arith.constant dense<0.000000e+00> : vector<32x32xf32>
    %167 = tpu.matmul %165, %166, %cst_71 {dimension_numbers = #tpu.dot_dimension_numbers<[1], [0], [0], [1], [0, 0, 1, 1], [], []>, precision = #tpu.contract_precision<fp32>} : vector<32x32xf32>, vector<32x32xf32>, vector<32x32xf32> -> vector<32x32xf32>
    %168 = vector.extract_strided_slice %0 {offsets = [2, 0], sizes = [1, 32], strides = [1, 1]} : vector<16x32xf32> to vector<1x32xf32>
    %169 = vector.broadcast %168 : vector<1x32xf32> to vector<32x32xf32>
    %170 = arith.addf %167, %169 : vector<32x32xf32>
    %171 = vector.extract_strided_slice %170 {offsets = [0, 0], sizes = [32, 3], strides = [1, 1]} : vector<32x32xf32> to vector<32x3xf32>
    %c0_72 = arith.constant 0 : index
    %c0_73 = arith.constant 0 : index
    %172 = vector.load %arg3[%c0_72, %c0_73] : memref<32x3xf32, #tpu.memory_space<vmem>>, vector<32x3xf32>
    tpu.vector_store %arg3[%c0_72, %c0_73], %171 {strides = array<i32>} : memref<32x3xf32, #tpu.memory_space<vmem>>, vector<32x3xf32>,
    return
  }
}

</mosaic_0001>

<bundles_post_ra>
// kernel: cnf_forward.1
= control target key start
LH: loop header
LB: loop body
LE: loop exit
PB: predicated region body
PF: predicated region fallthrough
CT: control target
= control target key end

     0   :  { %vm79_vm0 = vcmask 1042432   ;;  %vm66_vm1 = vcmask 23552   ;;  %v18311_v35 = vmov 0.0|0.0   ;;  %v16_v36 = vlaneseq  ;;  %s18303_s2 = inlined_call_operand.vmem [shape: f32[592,32], index: 2, kind: input, shape index: {}]   ;;  %s18304_s0 = inlined_call_operand.vmem [shape: f32[32,3], index: 0, kind: input, shape index: {}]   ;;  %s18305_s1 = inlined_call_operand.vmem [shape: f32[1,32], index: 1, kind: input, shape index: {}]   ;;  %s18306_s3 = inlined_call_operand.vmem [shape: f32[32,3], index: 3, kind: output, shape index: {}]  }
   0x1   :  { %v59_v0 = vld [vmem:[%s18303_s2] sm:$0x7]  ;;  %v55_v2 = vld [vmem:[%s18304_s0 + $0x8] sm:$0xff]  ;;  %v56_v6 = vld [vmem:[%s18304_s0 + $0x10] sm:$0xff]  ;;  %vm16657_vm2 = vmmov 0   ;;  %v18309_v39 = vmov 0.0  }
   0x2   :  { %v54_v1 = vld [vmem:[%s18304_s0] sm:$0xff]  ;;  %v81_v3 = vsel %vm79_vm0, %v59_v0, 0  ;;  %v71_v5 = vsel %vm66_vm1, %v55_v2, 0  ;;  %v57_v7 = vld [vmem:[%s18304_s0 + $0x18] sm:$0xff]  ;;  %v74_v11 = vsel %vm66_vm1, %v56_v6, 0  ;;  %v16700_v37 = vshrl.u32 %v16_v36, 7 }
   0x3   :  { %v68_v4 = vsel %vm66_vm1, %v54_v1, 0  ;;  %v84_v8 = vand.u32 4294901760, %v81_v3  ;;  %v159_v10 = vand.u32 4294901760, %v71_v5  ;;  %v169_v12 = vand.u32 4294901760, %v74_v11  ;;  %v13147_v54 = vld [vmem:[%s18305_s1] ss:$0 sm:$0xff] }
   0x4   :  { %v149_v9 = vand.u32 4294901760, %v68_v4  ;;  %v77_v13 = vsel %vm66_vm1, %v57_v7, 0  ;;  %v22_v38 = vand.u32 127, %v16_v36  ;;  %v18_v40 = vadd.s32 8, %v16700_v37 }
   0x5   :  { %14036 = vmatprep.subr.mxu0 %v84_v8  ;;  %v160_v15 = vsub.f32 %v71_v5, %v159_v10  ;;  %14012 = vmatprep.subr.mxu1 %v84_v8  ;;  %v179_v16 = vand.u32 4294901760, %v77_v13  ;;  %v191_v17 = vsub.f32 %v81_v3, %v84_v8  ;;  %v170_v18 = vsub.f32 %v74_v11, %v169_v12 }
   0x6   :  { %v150_v14 = vsub.f32 %v68_v4, %v149_v9  ;;  %14037 = vmatpush3.msra.mxu0 %v84_v8  ;;  %14013 = vmatpush3.msra.mxu1 %v84_v8  ;;  %v16705_v41 = vmul.u32 16, %v22_v38  ;;  %v28_v42 = vadd.s32 1, %v22_v38  ;;  %v19_v43 = vadd.s32 16, %v16700_v37 }
   0x7   :  { %v161_v20 = vand.u32 4294901760, %v160_v15  ;;  %v180_v21 = vsub.f32 %v77_v13, %v179_v16  ;;  %v192_v22 = vand.u32 4294901760, %v191_v17  ;;  %v171_v23 = vand.u32 4294901760, %v170_v18 }
   0x8   :  { %v151_v19 = vand.u32 4294901760, %v150_v14  ;;  %v20_v44 = vadd.s32 24, %v16700_v37  ;;  %v16711_v45 = vmul.u32 16, %v28_v42  ;;  %vm25_vm3 = vcmp.ge.s32.totalorder %v18_v40, %v16705_v41 }
   0x9   :  { %v162_v25 = vsub.f32 %v160_v15, %v161_v20  ;;  %v181_v26 = vand.u32 4294901760, %v180_v21  ;;  %14044 = vmatprep.subr.mxu0 %v192_v22  ;;  %v193_v27 = vsub.f32 %v191_v17, %v192_v22  ;;  %v172_v28 = vsub.f32 %v170_v18, %v171_v23 }
   0xa   :  { %14038 = vmatprep.mubr.f32.mxu0 %v151_v19  ;;  %v152_v24 = vsub.f32 %v150_v14, %v151_v19  ;;  %vm26_vm4 = vcmp.ge.s32.totalorder %v19_v43, %v16705_v41  ;;  %vm31_vm5 = vcmp.lt.s32.totalorder %v18_v40, %v16711_v45  ;;  %vm32_vm6 = vcmp.lt.s32.totalorder %v19_v43, %v16711_v45 }
   0xb   :  { %14039 = vmatmul.mubr.f32.vlgmr.msra.gmra.mrb[0].mxu0 %v161_v20  ;;  %v163_v30 = vand.u32 4294901760, %v162_v25  ;;  %v182_v31 = vsub.f32 %v180_v21, %v181_v26  ;;  %v194_v32 = vand.u32 4294901760, %v193_v27  ;;  %v173_v33 = vand.u32 4294901760, %v172_v28  ;;  %vm16719_vm9 = vmand %vm25_vm3, %vm31_vm5 }
   0xc   :  { %v153_v29 = vand.u32 4294901760, %v152_v24  ;;  %14041 = vmatprep.mubr.f32.mxu0 %v171_v23  ;;  %14045 = vmatpush3.msra.mxu0 %v192_v22  ;;  %vm27_vm7 = vcmp.ge.s32.totalorder %v20_v44, %v16705_v41  ;;  %vm33_vm8 = vcmp.lt.s32.totalorder %v20_v44, %v16711_v45  ;;  %vm16723_vm10 = vmand %vm26_vm4, %vm32_vm6  ;;  %v48_v49 = vadd.s32 1, %v16700_v37 }
   0xd   :  { %14052 = vmatprep.subr.mxu0 %v84_v8  ;;  %14020 = vmatprep.subr.mxu1 %v194_v32  ;;  %v183_v34 = vand.u32 4294901760, %v182_v31  ;;  %vm16727_vm11 = vmand %vm27_vm7, %vm33_vm8  ;;  %v46_v50 = vmul.u32 16, %v16700_v37  ;;  %vm670_vm15 = vcmask 261120   ;;  %v3652_v46 = vsub.s32 5, %v16700_v37 }
   0xe   :  { %14014 = vmatprep.mubr.f32.mxu1 %v153_v29  ;;  %v49_v51 = vmul.u32 16, %v48_v49 }
   0xf   :  { %14015 = vmatmul.mubr.f32.vlgmr.msra.gmra.mrb[0].mxu1 %v163_v30  ;;  %14042 = vmatmul.mubr.f32.gmra.mrb[2].mxu0 %v181_v26  ;;  %vm47_vm12 = vcmp.ge.s32.totalorder %v22_v38, %v46_v50 }
  0x10   :  { %14017 = vmatprep.mubr.f32.mxu1 %v173_v33  ;;  %14046 = vmatprep.mubr.f32.mxu0 %v149_v9  ;;  %vm50_vm13 = vcmp.lt.s32.totalorder %v22_v38, %v49_v51 }
  0x11   :  { %14021 = vmatpush3.msra.mxu1 %v194_v32  ;;  %vm51_vm14 = vmand %vm47_vm12, %vm50_vm13  ;;  %vm24_vm13 = vcmp.ge.s32.totalorder %v16700_v37, %v16705_v41 }
  0x12   :  { %14028 = vmatprep.subr.mxu1 %v191_v17  ;;  %v16737_v55 = vsel %vm51_vm14, 1.0, %v18309_v39  ;;  %vm30_vm14 = vcmp.lt.s32.totalorder %v16700_v37, %v16711_v45  ;;  %v17294_v45 = vsel %vm16719_vm9, 1.0, %v18309_v39  ;;  %vm4159_vm9 = vcmask 1041408  }
  0x13   :  { %14018 = vmatmul.mubr.f32.gmra.mrb[2].mxu1 %v183_v34  ;;  %14047 = vmatmul.mubr.f32.vlgmr.msra.gmra.mrb[0].mxu0 %v159_v10  ;;  %v672_v61 = vsel %vm670_vm15, %v16737_v55, 0 }
  0x14   :  { %14022 = vmatprep.mubr.f32.mxu1 %v149_v9  ;;  %14049 = vmatprep.mubr.f32.mxu0 %v169_v12  ;;  %v16741_v2 = vsub.f32 %v672_v61, %v672_v61 }
  0x15   :  { %14053 = vmatpush3.msra.mxu0 %v84_v8 }
  0x16   :  { %15632 = vmatprep.subr.bf16.mxu0 %v18311_v35  ;;  %v16749_v13 = vand.u32 4294901760, %v16741_v2 }
  0x17   :  { %14023 = vmatmul.mubr.f32.vlgmr.msra.gmra.mrb[0].mxu1 %v159_v10  ;;  %14050 = vmatmul.mubr.f32.gmra.mrb[2].mxu0 %v179_v16 }
  0x18   :  { %14025 = vmatprep.mubr.f32.mxu1 %v169_v12  ;;  %14054 = vmatprep.mubr.f32.mxu0 %v149_v9  ;;  %v746_v23 = vsub.f32 %v16741_v2, %v16749_v13 }
  0x19   :  { %14029 = vmatpush3.msra.mxu1 %v191_v17 }
  0x1a   :  { %15596 = vmatprep.subr.bf16.mxu1 %v18311_v35  ;;  %v16765_v32 = vand.u32 4294901760, %v746_v23 }
  0x1b   :  { %14026 = vmatmul.mubr.f32.gmra.mrb[2].mxu1 %v179_v16  ;;  %14055 = vmatmul.mubr.f32.vlgmr.msra.gmra.mrb[0].mxu0 %v159_v10 }
  0x1c   :  { %14030 = vmatprep.mubr.f32.mxu1 %v150_v14  ;;  %14057 = vmatprep.mubr.f32.mxu0 %v169_v12 }
  0x1f   :  { %14031 = vmatmul.mubr.f32.vlgmr.msra.gmra.mrb[0].mxu1 %v160_v15  ;;  %14058 = vmatmul.mubr.f32.gmra.mrb[2].mxu0 %v179_v16 }
  0x20   :  { %14033 = vmatprep.mubr.f32.mxu1 %v170_v18  ;;  %14134 = vmatprep.mubr.msk.f32.mxu0 %vm16657_vm2, %v18309_v39 }
  0x23   :  { %14034 = vmatmul.mubr.f32.gmra.mrb[2].mxu1 %v180_v21 }
  0x24   :  { %14068 = vmatprep.mubr.msk.f32.mxu1 %vm16657_vm2, %v18309_v39 }
  0xee   :  { %v14056_v52 = vpop.f32.mrb[0].mxu0 }
  0xef   :  { %v636_v53 = vpop.f32.mrb[1].mxu0 }
  0xf2   :  { %v14032_v56 = vpop.f32.mrb[0].mxu1  ;;  %v14059_v57 = vpop.f32.mrb[2].mxu0 }
  0xf3   :  { %v16340_v58 = vadd.f32 %v14032_v56, %v13147_v54  ;;  %v353_v59 = vpop.f32.mrb[1].mxu1  ;;  %v648_v60 = vpop.f32.mrb[3].mxu0  ;;  %v1159_v56 = vld [vmem:[%s18303_s2 + $0x20] sm:$0xff] }
  0xf4   :  { %v16342_v62 = vadd.f32 %v13147_v54, %v353_v59 }
  0xf5   :  { %v16341_v63 = vadd.f32 %v16340_v58, %v14056_v52  ;;  %v1171_v58 = vand.u32 4294901760, %v1159_v56 }
  0xf6   :  { %v16343_v0 = vadd.f32 %v16342_v62, %v636_v53  ;;  %v14035_v1 = vpop.f32.mrb[2].mxu1 }
  0xf7   :  { %vm659_vm0 = vcmp.gt.f32.partialorder %v16341_v63, 0.0  ;;  %v663_v3 = vmul.f32 0.01, %v16341_v63  ;;  %v16344_v4 = vadd.f32 %v14035_v1, %v13147_v54  ;;  %v367_v5 = vpop.f32.mrb[3].mxu1  ;;  %v1251_v61 = vsub.f32 %v1159_v56, %v1171_v58  ;;  %v1661_v56 = vld [vmem:[%s18303_s2 + $0x58] sm:$0xff] }
  0xf8   :  { %vm658_vm3 = vcmp.gt.f32.partialorder %v16343_v0, 0.0  ;;  %v662_v6 = vmul.f32 0.01, %v16343_v0  ;;  %v16346_v7 = vadd.f32 %v13147_v54, %v367_v5 }
  0xf9   :  { %v16743_v8 = vsel %vm659_vm0, %v16341_v63, %v663_v3  ;;  %v16345_v9 = vadd.f32 %v16344_v4, %v14059_v57  ;;  %v1160_v57 = vld [vmem:[%s18303_s2 + $0x28] sm:$0xff]  ;;  %v1161_v63 = vld [vmem:[%s18303_s2 + $0x30] sm:$0xff]  ;;  %v1252_v4 = vand.u32 4294901760, %v1251_v61  ;;  %vm34_vm0 = vmand %vm24_vm13, %vm30_vm14 }
  0xfa   :  { %v16745_v10 = vsel %vm658_vm3, %v16343_v0, %v662_v6  ;;  %v16347_v11 = vadd.f32 %v16346_v7, %v648_v60  ;;  %v678_v12 = vand.u32 4294901760, %v16743_v8  ;;  %v1174_v59 = vand.u32 4294901760, %v1160_v57  ;;  %v1162_v0 = vld [vmem:[%s18303_s2 + $0x38] sm:$0xff] }
  0xfb   :  { %vm661_vm4 = vcmp.gt.f32.partialorder %v16345_v9, 0.0  ;;  %v665_v14 = vmul.f32 0.01, %v16345_v9  ;;  %v675_v15 = vand.u32 4294901760, %v16745_v10  ;;  %v1177_v1 = vand.u32 4294901760, %v1161_v63 }
  0xfc   :  { %vm660_vm5 = vcmp.gt.f32.partialorder %v16347_v11, 0.0  ;;  %v664_v16 = vmul.f32 0.01, %v16347_v11  ;;  %v762_v17 = vsub.f32 %v16743_v8, %v678_v12  ;;  %v16805_v60 = vpack.c.bf16 %v1174_v59, %v1171_v58 }
  0xfd   :  { %v16753_v18 = vsel %vm661_vm4, %v16345_v9, %v665_v14  ;;  %v15597_v19 = vpack.c.bf16 %v678_v12, %v675_v15  ;;  %v755_v20 = vsub.f32 %v16745_v10, %v675_v15  ;;  %v1258_v62 = vsub.f32 %v1160_v57, %v1174_v59 }
  0xfe   :  { %v16756_v21 = vsel %vm660_vm5, %v16347_v11, %v664_v16  ;;  %v684_v22 = vand.u32 4294901760, %v16753_v18  ;;  %v763_v24 = vand.u32 4294901760, %v762_v17  ;;  %15634 = vmatpush3.bf16.msra.mxu0 %v16805_v60  ;;  %v1180_v3 = vand.u32 4294901760, %v1162_v0 }
  0xff   :  { %15598 = vmatpush3.bf16.msra.mxu1 %v15597_v19  ;;  %v681_v25 = vand.u32 4294901760, %v16756_v21  ;;  %v756_v26 = vand.u32 4294901760, %v755_v20  ;;  %v15609_v51 = vpack.c.bf16 %v762_v17, %v755_v20  ;;  %v1259_v5 = vand.u32 4294901760, %v1258_v62  ;;  %15635 = vmatprep.subr.bf16.mxu0 %v18311_v35 }
 0x100   :  { %15599 = vmatprep.subr.bf16.mxu1 %v18311_v35  ;;  %v776_v27 = vsub.f32 %v16753_v18, %v684_v22  ;;  %v764_v28 = vsub.f32 %v762_v17, %v763_v24  ;;  %v15636_v6 = vpack.c.bf16 %v1180_v3, %v1177_v1  ;;  %v1265_v7 = vsub.f32 %v1161_v63, %v1177_v1 }
 0x101   :  { %v15600_v29 = vpack.c.bf16 %v684_v22, %v681_v25  ;;  %v769_v30 = vsub.f32 %v16756_v21, %v681_v25  ;;  %v757_v31 = vsub.f32 %v755_v20, %v756_v26  ;;  %v15621_v53 = vpack.c.bf16 %v763_v24, %v756_v26 }
 0x102   :  { %v765_v33 = vand.u32 4294901760, %v764_v28  ;;  %v777_v34 = vand.u32 4294901760, %v776_v27  ;;  %v1272_v9 = vsub.f32 %v1162_v0, %v1180_v3  ;;  %v1253_v11 = vsub.f32 %v1251_v61, %v1252_v4  ;;  %15637 = vmatpush3.bf16.msra.mxu0 %v15636_v6 }
 0x103   :  { %15601 = vmatpush3.bf16.msra.mxu1 %v15600_v29  ;;  %v758_v36 = vand.u32 4294901760, %v757_v31  ;;  %v770_v38 = vand.u32 4294901760, %v769_v30  ;;  %v15612_v52 = vpack.c.bf16 %v776_v27, %v769_v30  ;;  %v1260_v12 = vsub.f32 %v1258_v62, %v1259_v5  ;;  %15638 = vmatprep.subr.bf16.mxu0 %v18311_v35 }
 0x104   :  { %15602 = vmatprep.subr.bf16.mxu1 %v18311_v35  ;;  %v778_v40 = vsub.f32 %v776_v27, %v777_v34  ;;  %v1254_v14 = vand.u32 4294901760, %v1253_v11  ;;  %v1266_v15 = vand.u32 4294901760, %v1265_v7  ;;  %v1273_v16 = vand.u32 4294901760, %v1272_v9 }
 0x105   :  { %v15603_v42 = vpack.c.bf16 %v765_v33, %v758_v36  ;;  %v771_v43 = vsub.f32 %v769_v30, %v770_v38  ;;  %v15624_v54 = vpack.c.bf16 %v777_v34, %v770_v38  ;;  %v1261_v17 = vand.u32 4294901760, %v1260_v12 }
 0x106   :  { %14069 = vmatmul.mubr.f32.vlgmr.msra.gmra.mrb[4].mxu1 %v16765_v32  ;;  %v779_v44 = vand.u32 4294901760, %v778_v40  ;;  %v1274_v20 = vsub.f32 %v1272_v9, %v1273_v16  ;;  %v15645_v26 = vpack.c.bf16 %v1258_v62, %v1251_v61  ;;  %v15648_v27 = vpack.c.bf16 %v1272_v9, %v1265_v7 }
 0x107   :  { %15604 = vmatpush3.bf16.msra.mxu1 %v15603_v42  ;;  %v772_v49 = vand.u32 4294901760, %v771_v43  ;;  %14079 = vmatprep.mubr.msk.f32.mxu1 %vm16657_vm2, %v18309_v39  ;;  %v15639_v22 = vpack.c.bf16 %v1261_v17, %v1254_v14  ;;  %v15657_v28 = vpack.c.bf16 %v1259_v5, %v1252_v4  ;;  %v1658_v43 = vld [vmem:[%s18303_s2 + $0x40] sm:$0xff]  ;;  %v1679_v58 = vand.u32 4294901760, %v1661_v56 }
 0x108   :  { %15605 = vmatprep.subr.bf16.mxu1 %v18311_v35  ;;  %v1275_v24 = vand.u32 4294901760, %v1274_v20  ;;  %vm4146_vm3 = vcmask 15360  }
 0x109   :  { %v15606_v50 = vpack.c.bf16 %v779_v44, %v772_v49  ;;  %v1659_v44 = vld [vmem:[%s18303_s2 + $0x48] sm:$0xff]  ;;  %v1670_v49 = vand.u32 4294901760, %v1658_v43  ;;  %v1771_v63 = vsub.f32 %v1661_v56, %v1679_v58  ;;  %v2163_v56 = vld [vmem:[%s18303_s2 + $0xb0] sm:$0xff] }
 0x10b   :  { %15607 = vmatpush3.bf16.msra.mxu1 %v15606_v50  ;;  %v1673_v50 = vand.u32 4294901760, %v1659_v44  ;;  %v1772_v5 = vand.u32 4294901760, %v1771_v63 }
 0x10c   :  { %15608 = vmatprep.subr.bf16.mxu1 %v18311_v35 }
 0x10d   :  { %v1773_v9 = vsub.f32 %v1771_v63, %v1772_v5 }
 0x10e   :  { %14080 = vmatmul.mubr.msk.f32.vlgmr.msra.gmra.mrb[4].mxu1 %vm670_vm15, %v16737_v55 }
 0x10f   :  { %15610 = vmatpush3.bf16.msra.mxu1 %v15609_v51  ;;  %14090 = vmatprep.mubr.msk.f32.mxu1 %vm16657_vm2, %v18309_v39  ;;  %v16865_v51 = vpack.c.bf16 %v1673_v50, %v1670_v49  ;;  %v1774_v14 = vand.u32 4294901760, %v1773_v9 }
 0x110   :  { %15611 = vmatprep.subr.bf16.mxu1 %v18311_v35 }
 0x113   :  { %15613 = vmatpush3.bf16.msra.mxu1 %v15612_v52  ;;  %v1750_v52 = vsub.f32 %v1658_v43, %v1670_v49  ;;  %v2161_v49 = vld [vmem:[%s18303_s2 + $0xa0] sm:$0xff] }
 0x114   :  { %15614 = vmatprep.subr.bf16.mxu1 %v18311_v35 }
 0x115   :  { %v1751_v59 = vand.u32 4294901760, %v1750_v52 }
 0x116   :  { %14091 = vmatmul.mubr.f32.vlgmr.msra.gmra.mrb[4].mxu1 %v16741_v2 }
 0x117   :  { %15616 = vmatpush3.bf16.msra.mxu1 %v15597_v19  ;;  %14101 = vmatprep.mubr.msk.f32.mxu1 %vm16657_vm2, %v18309_v39  ;;  %v1752_v0 = vsub.f32 %v1750_v52, %v1751_v59 }
 0x118   :  { %15617 = vmatprep.subr.bf16.mxu1 %v18311_v35 }
 0x119   :  { %v1753_v3 = vand.u32 4294901760, %v1752_v0 }
 0x11b   :  { %15619 = vmatpush3.bf16.msra.mxu1 %v15600_v29 }
 0x11c   :  { %15620 = vmatprep.subr.bf16.mxu1 %v18311_v35 }
 0x11e   :  { %14102 = vmatmul.mubr.f32.vlgmr.msra.gmra.mrb[4].mxu1 %v16749_v13 }
 0x11f   :  { %15622 = vmatpush3.bf16.msra.mxu1 %v15621_v53  ;;  %14112 = vmatprep.mubr.msk.f32.mxu1 %vm16657_vm2, %v18309_v39  ;;  %v1757_v53 = vsub.f32 %v1659_v44, %v1673_v50  ;;  %v2162_v50 = vld [vmem:[%s18303_s2 + $0xa8] sm:$0xff] }
 0x120   :  { %15623 = vmatprep.subr.bf16.mxu1 %v18311_v35 }
 0x123   :  { %15625 = vmatpush3.bf16.msra.mxu1 %v15624_v54  ;;  %v1660_v54 = vld [vmem:[%s18303_s2 + $0x50] sm:$0xff] }
 0x124   :  { %15626 = vmatprep.subr.bf16.mxu1 %v18311_v35  ;;  %v1676_v57 = vand.u32 4294901760, %v1660_v54 }
 0x126   :  { %14113 = vmatmul.mubr.msk.f32.vlgmr.msra.gmra.mrb[4].mxu1 %vm670_vm15, %v16737_v55  ;;  %v16875_v61 = vpack.c.bf16 %v1679_v58, %v1676_v57  ;;  %v1764_v62 = vsub.f32 %v1660_v54, %v1676_v57  ;;  %v2164_v57 = vld [vmem:[%s18303_s2 + $0xb8] sm:$0xff] }
 0x127   :  { %15628 = vmatpush3.bf16.msra.mxu1 %v15597_v19  ;;  %14123 = vmatprep.mubr.msk.f32.mxu1 %vm16657_vm2, %v18309_v39  ;;  %v1267_v19 = vsub.f32 %v1265_v7, %v1266_v15 }
 0x128   :  { %15629 = vmatprep.subr.bf16.mxu1 %v18311_v35  ;;  %v1765_v4 = vand.u32 4294901760, %v1764_v62  ;;  %v15684_v17 = vpack.c.bf16 %v1771_v63, %v1764_v62 }
 0x129   :  { %v1268_v23 = vand.u32 4294901760, %v1267_v19 }
 0x12a   :  { %v1766_v7 = vsub.f32 %v1764_v62, %v1765_v4  ;;  %v15696_v20 = vpack.c.bf16 %v1772_v5, %v1765_v4 }
 0x12b   :  { %15631 = vmatpush3.bf16.msra.mxu1 %v15600_v29  ;;  %v15642_v25 = vpack.c.bf16 %v1275_v24, %v1268_v23  ;;  %v15660_v29 = vpack.c.bf16 %v1273_v16, %v1266_v15  ;;  %v15681_v16 = vpack.c.bf16 %v1757_v53, %v1750_v52  ;;  %v16883_v23 = vld [vmem:[%s18303_s2 + $0x240] sm:$0xff]  ;;  %v2172_v52 = vand.u32 4294901760, %v2162_v50 }
 0x12c   :  { %15668 = vmatprep.subr.bf16.mxu1 %v18311_v35  ;;  %v1767_v12 = vand.u32 4294901760, %v1766_v7  ;;  %v3653_v48 = vrot.slane %v16883_v23, %v3652_v46 }
 0x12d   :  { %v16923_v54 = vsub.f32 %v2162_v50, %v2172_v52  ;;  %v16977_v50 = vld [vmem:[%s18303_s2 + $0x98] sm:$0xff] }
 0x12e   :  { %14124 = vmatmul.mubr.msk.f32.vlgmr.msra.gmra.mrb[4].mxu1 %vm670_vm15, %v16737_v55  ;;  %v15678_v15 = vpack.c.bf16 %v1774_v14, %v1767_v12 }
 0x12f   :  { %14200 = vmatprep.mubr.msk.f32.mxu1 %vm16657_vm2, %v18309_v39  ;;  %15670 = vmatpush3.bf16.msra.mxu1 %v16865_v51 }
 0x130   :  { %15671 = vmatprep.subr.bf16.mxu1 %v18311_v35 }
 0x133   :  { %15673 = vmatpush3.bf16.msra.mxu1 %v16875_v61 }
 0x134   :  { %15674 = vmatprep.subr.bf16.mxu1 %v18311_v35 }
 0x201   :  { %v1155_v30 = vpop.f32.mrb[4].mxu1 }
 0x202   :  { %v1168_v31 = vsel %vm670_vm15, %v1155_v30, 0  ;;  %v14125_v33 = vpop.f32.mrb[5].mxu1 }
 0x203   :  { %v16817_v34 = vand.u32 4294901760, %v1168_v31 }
 0x205   :  { %v16820_v36 = vsub.f32 %v1168_v31, %v16817_v34 }
 0x207   :  { %v16823_v38 = vand.u32 4294901760, %v16820_v36 }
 0x209   :  { %v1242_v40 = vsub.f32 %v16820_v36, %v16823_v38 }
 0x20b   :  { %v16827_v42 = vand.u32 4294901760, %v1242_v40 }
 0x20d   :  { %14135 = vmatmul.mubr.f32.vlgmr.msra.gmra.mrb[4].mxu0 %v16827_v42 }
 0x20e   :  { %15640 = vmatpush3.bf16.msra.mxu0 %v15639_v22  ;;  %14145 = vmatprep.mubr.msk.f32.mxu0 %vm16657_vm2, %v18309_v39  ;;  %v18308_v22 = vsub.s32 0, %v16700_v37 }
 0x20f   :  { %15641 = vmatprep.subr.bf16.mxu0 %v18311_v35 }
 0x210   :  { %v1166_v24 = vrot.slane %v16883_v23, %v18308_v22 }
 0x212   :  { %15643 = vmatpush3.bf16.msra.mxu0 %v15642_v25 }
 0x213   :  { %15644 = vmatprep.subr.bf16.mxu0 %v18311_v35 }
 0x215   :  { %14146 = vmatmul.mubr.f32.vlgmr.msra.gmra.mrb[4].mxu0 %v16817_v34 }
 0x216   :  { %15646 = vmatpush3.bf16.msra.mxu0 %v15645_v26  ;;  %14156 = vmatprep.mubr.msk.f32.mxu0 %vm16657_vm2, %v18309_v39 }
 0x217   :  { %15647 = vmatprep.subr.bf16.mxu0 %v18311_v35 }
 0x21a   :  { %15649 = vmatpush3.bf16.msra.mxu0 %v15648_v27 }
 0x21b   :  { %15650 = vmatprep.subr.bf16.mxu0 %v18311_v35 }
 0x21d   :  { %14157 = vmatmul.mubr.f32.vlgmr.msra.gmra.mrb[4].mxu0 %v16820_v36 }
 0x21e   :  { %15652 = vmatpush3.bf16.msra.mxu0 %v16805_v60  ;;  %14167 = vmatprep.mubr.msk.f32.mxu0 %vm16657_vm2, %v18309_v39 }
 0x21f   :  { %15653 = vmatprep.subr.bf16.mxu0 %v18311_v35 }
 0x222   :  { %15655 = vmatpush3.bf16.msra.mxu0 %v15636_v6 }
 0x223   :  { %15656 = vmatprep.subr.bf16.mxu0 %v18311_v35 }
 0x225   :  { %14168 = vmatmul.mubr.f32.vlgmr.msra.gmra.mrb[4].mxu0 %v16823_v38 }
 0x226   :  { %15658 = vmatpush3.bf16.msra.mxu0 %v15657_v28  ;;  %14178 = vmatprep.mubr.msk.f32.mxu0 %vm16657_vm2, %v18309_v39 }
 0x227   :  { %15659 = vmatprep.subr.bf16.mxu0 %v18311_v35 }
 0x22a   :  { %15661 = vmatpush3.bf16.msra.mxu0 %v15660_v29 }
 0x22b   :  { %15662 = vmatprep.subr.bf16.mxu0 %v18311_v35 }
 0x22d   :  { %14179 = vmatmul.mubr.f32.vlgmr.msra.gmra.mrb[4].mxu0 %v16817_v34 }
 0x22e   :  { %15664 = vmatpush3.bf16.msra.mxu0 %v16805_v60  ;;  %14189 = vmatprep.mubr.msk.f32.mxu0 %vm16657_vm2, %v18309_v39  ;;  %v1758_v60 = vand.u32 4294901760, %v1757_v53 }
 0x22f   :  { %15665 = vmatprep.subr.bf16.mxu0 %v18311_v35 }
 0x230   :  { %v1759_v1 = vsub.f32 %v1757_v53, %v1758_v60  ;;  %v15693_v19 = vpack.c.bf16 %v1758_v60, %v1751_v59  ;;  %v2257_v59 = vand.u32 4294901760, %v16923_v54  ;;  %v2175_v60 = vand.u32 4294901760, %v2163_v56 }
 0x232   :  { %15667 = vmatpush3.bf16.msra.mxu0 %v15636_v6  ;;  %v1760_v6 = vand.u32 4294901760, %v1759_v1  ;;  %v2258_v63 = vsub.f32 %v16923_v54, %v2257_v59  ;;  %v16935_v0 = vsub.f32 %v2163_v56, %v2175_v60 }
 0x233   :  { %15704 = vmatprep.subr.bf16.mxu0 %v18311_v35 }
 0x234   :  { %v15675_v11 = vpack.c.bf16 %v1760_v6, %v1753_v3  ;;  %v2259_v4 = vand.u32 4294901760, %v2258_v63  ;;  %v2264_v5 = vand.u32 4294901760, %v16935_v0 }
 0x235   :  { %14190 = vmatmul.mubr.f32.vlgmr.msra.gmra.mrb[4].mxu0 %v16817_v34 }
 0x236   :  { %14266 = vmatprep.mubr.msk.f32.mxu0 %vm16657_vm2, %v18309_v39  ;;  %v2265_v9 = vsub.f32 %v16935_v0, %v2264_v5 }
 0x238   :  { %v2266_v12 = vand.u32 4294901760, %v2265_v9 }
 0x308   :  { %v1651_v25 = vpop.f32.mrb[4].mxu0 }
 0x309   :  { %v16348_v26 = vadd.f32 %v1651_v25, %v1166_v24  ;;  %v14191_v27 = vpop.f32.mrb[5].mxu0 }
 0x30b   :  { %vm1655_vm6 = vcmp.gt.f32.partialorder %v16348_v26, 0.0  ;;  %v1656_v28 = vmul.f32 0.01, %v16348_v26 }
 0x30d   :  { %v1657_v29 = vsel %vm1655_vm6, %v16348_v26, %v1656_v28  ;;  %v18307_v26 = vsub.s32 1, %v16700_v37  ;;  %v16960_v28 = vld [vmem:[%s18303_s2 + $0x80] sm:$0xff] }
 0x30e   :  { %v1667_v30 = vsel %vm670_vm15, %v1657_v29, 0  ;;  %v16965_v29 = vld [vmem:[%s18303_s2 + $0x88] sm:$0xff] }
 0x30f   :  { %v1738_v31 = vand.u32 4294901760, %v1667_v30  ;;  %v1665_v27 = vrot.slane %v16883_v23, %v18307_v26 }
 0x311   :  { %v1739_v33 = vsub.f32 %v1667_v30, %v1738_v31 }
 0x313   :  { %v1740_v40 = vand.u32 4294901760, %v1739_v33 }
 0x315   :  { %v1741_v43 = vsub.f32 %v1739_v33, %v1740_v40 }
 0x317   :  { %v1742_v44 = vand.u32 4294901760, %v1741_v43  ;;  %v2657_v43 = vand.u32 4294901760, %v16965_v29 }
 0x319   :  { %14201 = vmatmul.mubr.f32.vlgmr.msra.gmra.mrb[6].mxu1 %v1742_v44 }
 0x31a   :  { %15676 = vmatpush3.bf16.msra.mxu1 %v15675_v11  ;;  %14211 = vmatprep.mubr.msk.f32.mxu1 %vm16657_vm2, %v18309_v39 }
 0x31b   :  { %15677 = vmatprep.subr.bf16.mxu1 %v18311_v35 }
 0x31e   :  { %15679 = vmatpush3.bf16.msra.mxu1 %v15678_v15 }
 0x31f   :  { %15680 = vmatprep.subr.bf16.mxu1 %v18311_v35 }
 0x321   :  { %14212 = vmatmul.mubr.f32.vlgmr.msra.gmra.mrb[6].mxu1 %v1738_v31 }
 0x322   :  { %15682 = vmatpush3.bf16.msra.mxu1 %v15681_v16  ;;  %14222 = vmatprep.mubr.msk.f32.mxu1 %vm16657_vm2, %v18309_v39 }
 0x323   :  { %15683 = vmatprep.subr.bf16.mxu1 %v18311_v35 }
 0x326   :  { %15685 = vmatpush3.bf16.msra.mxu1 %v15684_v17 }
 0x327   :  { %15686 = vmatprep.subr.bf16.mxu1 %v18311_v35 }
 0x329   :  { %14223 = vmatmul.mubr.f32.vlgmr.msra.gmra.mrb[6].mxu1 %v1739_v33 }
 0x32a   :  { %15688 = vmatpush3.bf16.msra.mxu1 %v16865_v51  ;;  %14233 = vmatprep.mubr.msk.f32.mxu1 %vm16657_vm2, %v18309_v39 }
 0x32b   :  { %15689 = vmatprep.subr.bf16.mxu1 %v18311_v35 }
 0x32e   :  { %15691 = vmatpush3.bf16.msra.mxu1 %v16875_v61 }
 0x32f   :  { %15692 = vmatprep.subr.bf16.mxu1 %v18311_v35 }
 0x331   :  { %14234 = vmatmul.mubr.f32.vlgmr.msra.gmra.mrb[6].mxu1 %v1740_v40  ;;  %v2654_v40 = vand.u32 4294901760, %v16960_v28 }
 0x332   :  { %15694 = vmatpush3.bf16.msra.mxu1 %v15693_v19  ;;  %14244 = vmatprep.mubr.msk.f32.mxu1 %vm16657_vm2, %v18309_v39 }
 0x333   :  { %15695 = vmatprep.subr.bf16.mxu1 %v18311_v35 }
 0x336   :  { %15697 = vmatpush3.bf16.msra.mxu1 %v15696_v20 }
 0x337   :  { %15698 = vmatprep.subr.bf16.mxu1 %v18311_v35 }
 0x339   :  { %14245 = vmatmul.mubr.f32.vlgmr.msra.gmra.mrb[6].mxu1 %v1738_v31 }
 0x33a   :  { %15700 = vmatpush3.bf16.msra.mxu1 %v16865_v51  ;;  %14255 = vmatprep.mubr.msk.f32.mxu1 %vm16657_vm2, %v18309_v39  ;;  %v2169_v51 = vand.u32 4294901760, %v2161_v49 }
 0x33b   :  { %15701 = vmatprep.subr.bf16.mxu1 %v18311_v35 }
 0x33c   :  { %v16921_v53 = vsub.f32 %v2161_v49, %v2169_v51  ;;  %v15705_v16 = vpack.c.bf16 %v2172_v52, %v2169_v51  ;;  %v16972_v49 = vld [vmem:[%s18303_s2 + $0x90] sm:$0xff]  ;;  %v16982_v52 = vsub.f32 %v16960_v28, %v2654_v40  ;;  %v3147_v28 = vld [vmem:[%s18303_s2 + $0xc8] sm:$0xff] }
 0x33d   :  { %v2660_v56 = vand.u32 4294901760, %v16972_v49 }
 0x33e   :  { %15703 = vmatpush3.bf16.msra.mxu1 %v16875_v61  ;;  %v2250_v58 = vand.u32 4294901760, %v16921_v53  ;;  %v2178_v61 = vand.u32 4294901760, %v2164_v57  ;;  %15706 = vmatpush3.bf16.msra.mxu0 %v15705_v16  ;;  %v15717_v19 = vpack.c.bf16 %v16923_v54, %v16921_v53  ;;  %v16987_v54 = vsub.f32 %v16965_v29, %v2657_v43 }
 0x33f   :  { %15710 = vmatprep.subr.bf16.mxu1 %v18311_v35  ;;  %15707 = vmatprep.subr.bf16.mxu0 %v18311_v35 }
 0x340   :  { %v2251_v62 = vsub.f32 %v16921_v53, %v2250_v58  ;;  %v16937_v1 = vsub.f32 %v2164_v57, %v2178_v61  ;;  %v15708_v17 = vpack.c.bf16 %v2178_v61, %v2175_v60  ;;  %v15729_v24 = vpack.c.bf16 %v2257_v59, %v2250_v58 }
 0x341   :  { %14256 = vmatmul.mubr.f32.vlgmr.msra.gmra.mrb[6].mxu1 %v1738_v31  ;;  %v2663_v57 = vand.u32 4294901760, %v16977_v50  ;;  %v2735_v60 = vand.u32 4294901760, %v16982_v52  ;;  %v2742_v61 = vand.u32 4294901760, %v16987_v54 }
 0x342   :  { %14277 = vmatprep.mubr.msk.f32.mxu1 %vm16657_vm2, %v18309_v39  ;;  %v2252_v3 = vand.u32 4294901760, %v2251_v62  ;;  %v2271_v6 = vand.u32 4294901760, %v16937_v1  ;;  %15709 = vmatpush3.bf16.msra.mxu0 %v15708_v17  ;;  %v15720_v20 = vpack.c.bf16 %v16937_v1, %v16935_v0  ;;  %v16996_v62 = vsub.f32 %v16972_v49, %v2660_v56 }
 0x343   :  { %15716 = vmatprep.subr.bf16.mxu0 %v18311_v35  ;;  %v16999_v63 = vsub.f32 %v16977_v50, %v2663_v57 }
 0x344   :  { %v15711_v7 = vpack.c.bf16 %v2259_v4, %v2252_v3  ;;  %v2272_v11 = vsub.f32 %v16937_v1, %v2271_v6  ;;  %v16951_v25 = vpack.c.bf16 %v2271_v6, %v2264_v5  ;;  %v2736_v3 = vsub.f32 %v16982_v52, %v2735_v60 }
 0x345   :  { %v2743_v4 = vsub.f32 %v16987_v54, %v2742_v61  ;;  %v2749_v5 = vand.u32 4294901760, %v16996_v62  ;;  %v2756_v6 = vand.u32 4294901760, %v16999_v63 }
 0x346   :  { %15712 = vmatpush3.bf16.msra.mxu1 %v15711_v7  ;;  %v2273_v14 = vand.u32 4294901760, %v2272_v11  ;;  %v2737_v9 = vand.u32 4294901760, %v2736_v3 }
 0x347   :  { %15713 = vmatprep.subr.bf16.mxu1 %v18311_v35  ;;  %v2744_v11 = vand.u32 4294901760, %v2743_v4 }
 0x348   :  { %v15714_v15 = vpack.c.bf16 %v2273_v14, %v2266_v12  ;;  %v2750_v12 = vsub.f32 %v16996_v62, %v2749_v5  ;;  %v2757_v14 = vsub.f32 %v16999_v63, %v2756_v6 }
 0x34a   :  { %15715 = vmatpush3.bf16.msra.mxu1 %v15714_v15  ;;  %v15747_v15 = vpack.c.bf16 %v2744_v11, %v2737_v9 }
 0x34b   :  { %15722 = vmatprep.subr.bf16.mxu1 %v18311_v35 }
 0x414   :  { %v2150_v30 = vpop.f32.mrb[6].mxu1 }
 0x415   :  { %v16349_v31 = vadd.f32 %v2150_v30, %v1665_v27  ;;  %v14257_v33 = vpop.f32.mrb[7].mxu1  ;;  %v3161_v30 = vand.u32 4294901760, %v3147_v28 }
 0x417   :  { %vm2154_vm7 = vcmp.gt.f32.partialorder %v16349_v31, 0.0  ;;  %v2155_v44 = vmul.f32 0.01, %v16349_v31  ;;  %v17084_v33 = vsub.f32 %v3147_v28, %v3161_v30 }
 0x419   :  { %v16979_v51 = vsel %vm2154_vm7, %v16349_v31, %v2155_v44  ;;  %v3246_v44 = vand.u32 4294901760, %v17084_v33 }
 0x41a   :  { %v2166_v53 = vsel %vm670_vm15, %v16979_v51, 0 }
 0x41b   :  { %v2237_v58 = vand.u32 4294901760, %v2166_v53 }
 0x41d   :  { %v2238_v59 = vsub.f32 %v2166_v53, %v2237_v58  ;;  %14278 = vmatmul.mubr.f32.vlgmr.msra.gmra.mrb[8].mxu1 %v2237_v58  ;;  %v3247_v53 = vsub.f32 %v17084_v33, %v3246_v44 }
 0x41e   :  { %15724 = vmatpush3.bf16.msra.mxu1 %v15705_v16  ;;  %14299 = vmatprep.mubr.msk.f32.mxu1 %vm16657_vm2, %v18309_v39 }
 0x41f   :  { %15725 = vmatprep.subr.bf16.mxu1 %v18311_v35  ;;  %v2239_v0 = vand.u32 4294901760, %v2238_v59 }
 0x421   :  { %v2240_v1 = vsub.f32 %v2238_v59, %v2239_v0 }
 0x422   :  { %15727 = vmatpush3.bf16.msra.mxu1 %v15708_v17 }
 0x423   :  { %15734 = vmatprep.subr.bf16.mxu1 %v18311_v35  ;;  %v2241_v7 = vand.u32 4294901760, %v2240_v1 }
 0x425   :  { %14300 = vmatmul.mubr.f32.vlgmr.msra.gmra.mrb[10].mxu1 %v2239_v0  ;;  %14267 = vmatmul.mubr.f32.vlgmr.msra.gmra.mrb[6].mxu0 %v2241_v7 }
 0x426   :  { %15718 = vmatpush3.bf16.msra.mxu0 %v15717_v19  ;;  %15736 = vmatpush3.bf16.msra.mxu1 %v15705_v16  ;;  %v2751_v16 = vand.u32 4294901760, %v2750_v12  ;;  %v2758_v19 = vand.u32 4294901760, %v2757_v14 }
 0x427   :  { %15719 = vmatprep.subr.bf16.mxu0 %v18311_v35  ;;  %15737 = vmatprep.subr.bf16.mxu1 %v18311_v35 }
 0x428   :  { %14288 = vmatprep.mubr.msk.f32.mxu0 %vm16657_vm2, %v18309_v39  ;;  %14321 = vmatprep.mubr.msk.f32.mxu1 %vm16657_vm2, %v18309_v39  ;;  %v15750_v27 = vpack.c.bf16 %v2758_v19, %v2751_v16 }
 0x42a   :  { %15721 = vmatpush3.bf16.msra.mxu0 %v15720_v20  ;;  %15739 = vmatpush3.bf16.msra.mxu1 %v15708_v17  ;;  %v15741_v17 = vpack.c.bf16 %v2657_v43, %v2654_v40  ;;  %v15744_v20 = vpack.c.bf16 %v2663_v57, %v2660_v56  ;;  %v3149_v40 = vld [vmem:[%s18303_s2 + $0xd8] sm:$0xff] }
 0x42b   :  { %15728 = vmatprep.subr.bf16.mxu0 %v18311_v35  ;;  %15746 = vmatprep.subr.bf16.mxu1 %v18311_v35  ;;  %v3167_v50 = vand.u32 4294901760, %v3149_v40 }
 0x42d   :  { %14289 = vmatmul.mubr.f32.vlgmr.msra.gmra.mrb[8].mxu0 %v2238_v59  ;;  %14322 = vmatmul.mubr.f32.vlgmr.msra.gmra.mrb[12].mxu1 %v2237_v58  ;;  %v17098_v56 = vsub.f32 %v3149_v40, %v3167_v50 }
 0x42e   :  { %15730 = vmatpush3.bf16.msra.mxu0 %v15729_v24  ;;  %15748 = vmatpush3.bf16.msra.mxu1 %v15747_v15  ;;  %v15753_v24 = vpack.c.bf16 %v16987_v54, %v16982_v52 }
 0x42f   :  { %15731 = vmatprep.subr.bf16.mxu0 %v18311_v35  ;;  %15749 = vmatprep.subr.bf16.mxu1 %v18311_v35 }
 0x430   :  { %14310 = vmatprep.mubr.msk.f32.mxu0 %vm16657_vm2, %v18309_v39  ;;  %14343 = vmatprep.mubr.msk.f32.mxu1 %vm16657_vm2, %v18309_v39 }
 0x432   :  { %15733 = vmatpush3.bf16.msra.mxu0 %v16951_v25  ;;  %15751 = vmatpush3.bf16.msra.mxu1 %v15750_v27  ;;  %v15756_v25 = vpack.c.bf16 %v16999_v63, %v16996_v62 }
 0x433   :  { %15740 = vmatprep.subr.bf16.mxu0 %v18311_v35  ;;  %15758 = vmatprep.subr.bf16.mxu1 %v18311_v35 }
 0x435   :  { %14311 = vmatmul.mubr.f32.vlgmr.msra.gmra.mrb[10].mxu0 %v2237_v58  ;;  %14344 = vmatmul.mubr.f32.vlgmr.msra.gmra.mrb[14].mxu1 %v16817_v34  ;;  %v3248_v58 = vand.u32 4294901760, %v3247_v53 }
 0x436   :  { %15742 = vmatpush3.bf16.msra.mxu0 %v15741_v17  ;;  %15760 = vmatpush3.bf16.msra.mxu1 %v15741_v17 }
 0x437   :  { %15743 = vmatprep.subr.bf16.mxu0 %v18311_v35  ;;  %15761 = vmatprep.subr.bf16.mxu1 %v18311_v35 }
 0x438   :  { %14332 = vmatprep.mubr.msk.f32.mxu0 %vm16657_vm2, %v18309_v39  ;;  %14365 = vmatprep.mubr.msk.f32.mxu1 %vm16657_vm2, %v18309_v39 }
 0x43a   :  { %15745 = vmatpush3.bf16.msra.mxu0 %v15744_v20  ;;  %15763 = vmatpush3.bf16.msra.mxu1 %v15744_v20 }
 0x43b   :  { %15752 = vmatprep.subr.bf16.mxu0 %v18311_v35  ;;  %15770 = vmatprep.subr.bf16.mxu1 %v18311_v35 }
 0x43d   :  { %14333 = vmatmul.mubr.f32.vlgmr.msra.gmra.mrb[12].mxu0 %v16827_v42  ;;  %14366 = vmatmul.mubr.f32.vlgmr.msra.gmra.mrb[16].mxu1 %v16823_v38  ;;  %v15765_v38 = vpack.c.bf16 %v2742_v61, %v2735_v60  ;;  %v15768_v42 = vpack.c.bf16 %v2756_v6, %v2749_v5  ;;  %v3260_v60 = vand.u32 4294901760, %v17098_v56 }
 0x43e   :  { %15754 = vmatpush3.bf16.msra.mxu0 %v15753_v24  ;;  %15772 = vmatpush3.bf16.msra.mxu1 %v15741_v17 }
 0x43f   :  { %15755 = vmatprep.subr.bf16.mxu0 %v18311_v35  ;;  %15773 = vmatprep.subr.bf16.mxu1 %v18311_v35  ;;  %v3261_v63 = vsub.f32 %v17098_v56, %v3260_v60 }
 0x440   :  { %14354 = vmatprep.mubr.msk.f32.mxu0 %vm16657_vm2, %v18309_v39  ;;  %14387 = vmatprep.mubr.msk.f32.mxu1 %vm16657_vm2, %v18309_v39 }
 0x441   :  { %v3262_v1 = vand.u32 4294901760, %v3261_v63 }
 0x442   :  { %15757 = vmatpush3.bf16.msra.mxu0 %v15756_v25  ;;  %15775 = vmatpush3.bf16.msra.mxu1 %v15744_v20 }
 0x443   :  { %15764 = vmatprep.subr.bf16.mxu0 %v18311_v35  ;;  %15782 = vmatprep.subr.bf16.mxu1 %v18311_v35 }
 0x445   :  { %14355 = vmatmul.mubr.f32.vlgmr.msra.gmra.mrb[14].mxu0 %v16820_v36  ;;  %14388 = vmatmul.mubr.f32.vlgmr.msra.gmra.mrb[18].mxu1 %v16817_v34  ;;  %v3146_v36 = vld [vmem:[%s18303_s2 + $0xc0] sm:$0xff] }
 0x446   :  { %15766 = vmatpush3.bf16.msra.mxu0 %v15765_v38  ;;  %14376 = vmatprep.mubr.msk.f32.mxu0 %vm16657_vm2, %v18309_v39  ;;  %v3158_v29 = vand.u32 4294901760, %v3146_v36 }
 0x447   :  { %15767 = vmatprep.subr.bf16.mxu0 %v18311_v35  ;;  %14409 = vmatprep.mubr.msk.f32.mxu1 %vm16657_vm2, %v18309_v39 }
 0x448   :  { %v17082_v31 = vsub.f32 %v3146_v36, %v3158_v29  ;;  %v17105_v4 = vpack.c.bf16 %v3161_v30, %v3158_v29 }
 0x44a   :  { %15769 = vmatpush3.bf16.msra.mxu0 %v15768_v42  ;;  %v3239_v43 = vand.u32 4294901760, %v17082_v31  ;;  %v15789_v6 = vpack.c.bf16 %v17084_v33, %v17082_v31 }
 0x44b   :  { %15776 = vmatprep.subr.bf16.mxu0 %v18311_v35 }
 0x44c   :  { %v3240_v52 = vsub.f32 %v17082_v31, %v3239_v43  ;;  %v17118_v9 = vpack.c.bf16 %v3246_v44, %v3239_v43 }
 0x44d   :  { %14377 = vmatmul.mubr.f32.vlgmr.msra.gmra.mrb[16].mxu0 %v16817_v34  ;;  %v3148_v34 = vld [vmem:[%s18303_s2 + $0xd0] sm:$0xff] }
 0x44e   :  { %14398 = vmatprep.mubr.msk.f32.mxu0 %vm16657_vm2, %v18309_v39  ;;  %v3164_v49 = vand.u32 4294901760, %v3148_v34  ;;  %v3241_v57 = vand.u32 4294901760, %v3240_v52  ;;  %15778 = vmatpush3.bf16.msra.mxu0 %v17105_v4 }
 0x44f   :  { %15779 = vmatprep.subr.bf16.mxu0 %v18311_v35 }
 0x450   :  { %v17096_v54 = vsub.f32 %v3148_v34, %v3164_v49  ;;  %v15783_v61 = vpack.c.bf16 %v3248_v58, %v3241_v57  ;;  %v17110_v5 = vpack.c.bf16 %v3167_v50, %v3164_v49 }
 0x452   :  { %v3253_v59 = vand.u32 4294901760, %v17096_v54  ;;  %15784 = vmatpush3.bf16.msra.mxu1 %v15783_v61  ;;  %15781 = vmatpush3.bf16.msra.mxu0 %v17110_v5  ;;  %v15792_v7 = vpack.c.bf16 %v17098_v56, %v17096_v54  ;;  %v3647_v56 = vld [vmem:[%s18303_s2 + $0x108] sm:$0xff] }
 0x453   :  { %15785 = vmatprep.subr.bf16.mxu1 %v18311_v35  ;;  %15788 = vmatprep.subr.bf16.mxu0 %v18311_v35 }
 0x454   :  { %v3254_v62 = vsub.f32 %v17096_v54, %v3253_v59  ;;  %v17120_v11 = vpack.c.bf16 %v3260_v60, %v3253_v59  ;;  %v3646_v54 = vld [vmem:[%s18303_s2 + $0x100] sm:$0xff] }
 0x456   :  { %v3255_v0 = vand.u32 4294901760, %v3254_v62  ;;  %v3140_v62 = vsub.s32 3, %v16700_v37 }
 0x458   :  { %v15786_v3 = vpack.c.bf16 %v3262_v1, %v3255_v0  ;;  %v3141_v1 = vrot.slane %v16883_v23, %v3140_v62 }
 0x45a   :  { %15787 = vmatpush3.bf16.msra.mxu1 %v15786_v3 }
 0x45b   :  { %15794 = vmatprep.subr.bf16.mxu1 %v18311_v35 }
 0x4f0   :  { %v2334_v12 = vpop.f32.mrb[8].mxu1 }
 0x4f1   :  { %v14279_v14 = vpop.f32.mrb[9].mxu1 }
 0x4f8   :  { %v2491_v15 = vpop.f32.mrb[10].mxu1  ;;  %v2243_v16 = vpop.f32.mrb[6].mxu0 }
 0x4f9   :  { %v2335_v19 = vadd.f32 %v2334_v12, %v2243_v16  ;;  %v14301_v27 = vpop.f32.mrb[11].mxu1  ;;  %v14268_v17 = vpop.f32.mrb[7].mxu0 }
 0x500   :  { %v2414_v20 = vpop.f32.mrb[8].mxu0  ;;  %v2649_v24 = vpop.f32.mrb[12].mxu1 }
 0x501   :  { %v2415_v25 = vadd.f32 %v2414_v20, %v2335_v19  ;;  %v14290_v38 = vpop.f32.mrb[9].mxu0  ;;  %v14323_v42 = vpop.f32.mrb[13].mxu1 }
 0x502   :  { %v3649_v38 = vld [vmem:[%s18303_s2 + $0x118] sm:$0xff] }
 0x503   :  { %v2492_v36 = vadd.f32 %v2491_v15, %v2415_v25 }
 0x508   :  { %v2574_v28 = vpop.f32.mrb[10].mxu0  ;;  %v2819_v29 = vpop.f32.mrb[14].mxu1 }
 0x509   :  { %v2575_v30 = vadd.f32 %v2574_v28, %v2492_v36  ;;  %v14312_v31 = vpop.f32.mrb[11].mxu0  ;;  %v14345_v33 = vpop.f32.mrb[15].mxu1  ;;  %v3667_v36 = vand.u32 4294901760, %v3649_v38 }
 0x50b   :  { %v2650_v34 = vadd.f32 %v2649_v24, %v2575_v30  ;;  %v3759_v33 = vsub.f32 %v3649_v38, %v3667_v36 }
 0x510   :  { %v2728_v40 = vpop.f32.mrb[12].mxu0  ;;  %v2976_v43 = vpop.f32.mrb[16].mxu1 }
 0x511   :  { %v2729_v44 = vadd.f32 %v2728_v40, %v2650_v34  ;;  %v14334_v49 = vpop.f32.mrb[13].mxu0  ;;  %v14367_v50 = vpop.f32.mrb[17].mxu1 }
 0x512   :  { %v3760_v50 = vand.u32 4294901760, %v3759_v33 }
 0x513   :  { %v2820_v52 = vadd.f32 %v2819_v29, %v2729_v44 }
 0x518   :  { %v2899_v53 = vpop.f32.mrb[14].mxu0  ;;  %v3134_v57 = vpop.f32.mrb[18].mxu1 }
 0x519   :  { %v2900_v58 = vadd.f32 %v2899_v53, %v2820_v52  ;;  %v14356_v59 = vpop.f32.mrb[15].mxu0  ;;  %v14389_v60 = vpop.f32.mrb[19].mxu1 }
 0x51b   :  { %v2977_v61 = vadd.f32 %v2976_v43, %v2900_v58 }
 0x520   :  { %v3059_v63 = vpop.f32.mrb[16].mxu0 }
 0x521   :  { %v3060_v0 = vadd.f32 %v3059_v63, %v2977_v61  ;;  %v14378_v3 = vpop.f32.mrb[17].mxu0 }
 0x523   :  { %v3135_v12 = vadd.f32 %v3134_v57, %v3060_v0  ;;  %v3761_v57 = vsub.f32 %v3759_v33, %v3760_v50 }
 0x525   :  { %v3142_v14 = vadd.f32 %v3141_v1, %v3135_v12  ;;  %v3762_v59 = vand.u32 4294901760, %v3761_v57  ;;  %v3152_v12 = vsub.s32 4, %v16700_v37 }
 0x527   :  { %vm3143_vm8 = vcmp.gt.f32.partialorder %v3142_v14, 0.0  ;;  %v3144_v15 = vmul.f32 0.01, %v3142_v14 }
 0x529   :  { %v3145_v16 = vsel %vm3143_vm8, %v3142_v14, %v3144_v15  ;;  %v3153_v14 = vrot.slane %v16883_v23, %v3152_v12 }
 0x52a   :  { %v3155_v19 = vsel %vm670_vm15, %v3145_v16, 0 }
 0x52b   :  { %v3226_v27 = vand.u32 4294901760, %v3155_v19 }
 0x52d   :  { %v3227_v17 = vsub.f32 %v3155_v19, %v3226_v27  ;;  %14410 = vmatmul.mubr.f32.vlgmr.msra.gmra.mrb[20].mxu1 %v3226_v27 }
 0x52e   :  { %15796 = vmatpush3.bf16.msra.mxu1 %v17105_v4  ;;  %14431 = vmatprep.mubr.msk.f32.mxu1 %vm16657_vm2, %v18309_v39 }
 0x52f   :  { %15797 = vmatprep.subr.bf16.mxu1 %v18311_v35  ;;  %v3228_v20 = vand.u32 4294901760, %v3227_v17 }
 0x531   :  { %v3229_v24 = vsub.f32 %v3227_v17, %v3228_v20 }
 0x532   :  { %15799 = vmatpush3.bf16.msra.mxu1 %v17110_v5 }
 0x533   :  { %15806 = vmatprep.subr.bf16.mxu1 %v18311_v35  ;;  %v3230_v25 = vand.u32 4294901760, %v3229_v24 }
 0x535   :  { %14432 = vmatmul.mubr.f32.vlgmr.msra.gmra.mrb[22].mxu1 %v3228_v20  ;;  %14399 = vmatmul.mubr.f32.vlgmr.msra.gmra.mrb[18].mxu0 %v3230_v25 }
 0x536   :  { %15790 = vmatpush3.bf16.msra.mxu0 %v15789_v6  ;;  %15808 = vmatpush3.bf16.msra.mxu1 %v17105_v4  ;;  %v3658_v4 = vand.u32 4294901760, %v3646_v54 }
 0x537   :  { %15791 = vmatprep.subr.bf16.mxu0 %v18311_v35  ;;  %15809 = vmatprep.subr.bf16.mxu1 %v18311_v35 }
 0x538   :  { %14420 = vmatprep.mubr.msk.f32.mxu0 %vm16657_vm2, %v18309_v39  ;;  %14453 = vmatprep.mubr.msk.f32.mxu1 %vm16657_vm2, %v18309_v39 }
 0x53a   :  { %15793 = vmatpush3.bf16.msra.mxu0 %v15792_v7  ;;  %15811 = vmatpush3.bf16.msra.mxu1 %v17110_v5  ;;  %v3661_v5 = vand.u32 4294901760, %v3647_v56  ;;  %v17159_v7 = vsub.f32 %v3646_v54, %v3658_v4 }
 0x53b   :  { %15800 = vmatprep.subr.bf16.mxu0 %v18311_v35 }
 0x53c   :  { %v17157_v6 = vpack.c.bf16 %v3661_v5, %v3658_v4  ;;  %v3739_v28 = vand.u32 4294901760, %v17159_v7 }
 0x53d   :  { %14421 = vmatmul.mubr.f32.vlgmr.msra.gmra.mrb[20].mxu0 %v3227_v17  ;;  %14454 = vmatmul.mubr.f32.vlgmr.msra.gmra.mrb[24].mxu1 %v3226_v27 }
 0x53e   :  { %15802 = vmatpush3.bf16.msra.mxu0 %v17118_v9  ;;  %14442 = vmatprep.mubr.msk.f32.mxu0 %vm16657_vm2, %v18309_v39  ;;  %v17161_v9 = vsub.f32 %v3647_v56, %v3661_v5  ;;  %v3740_v34 = vsub.f32 %v17159_v7, %v3739_v28 }
 0x53f   :  { %15803 = vmatprep.subr.bf16.mxu0 %v18311_v35 }
 0x540   :  { %v3746_v29 = vand.u32 4294901760, %v17161_v9  ;;  %v3741_v43 = vand.u32 4294901760, %v3740_v34  ;;  %v15825_v61 = vpack.c.bf16 %v17161_v9, %v17159_v7 }
 0x542   :  { %15805 = vmatpush3.bf16.msra.mxu0 %v17120_v11  ;;  %v3648_v11 = vld [vmem:[%s18303_s2 + $0x110] sm:$0xff]  ;;  %v3747_v40 = vsub.f32 %v17161_v9, %v3746_v29  ;;  %v15837_v63 = vpack.c.bf16 %v3746_v29, %v3739_v28 }
 0x543   :  { %15812 = vmatprep.subr.bf16.mxu0 %v18311_v35  ;;  %v3664_v42 = vand.u32 4294901760, %v3648_v11 }
 0x544   :  { %v3748_v44 = vand.u32 4294901760, %v3747_v40 }
 0x545   :  { %14443 = vmatmul.mubr.f32.vlgmr.msra.gmra.mrb[22].mxu0 %v3226_v27  ;;  %v17173_v30 = vpack.c.bf16 %v3667_v36, %v3664_v42  ;;  %v3752_v31 = vsub.f32 %v3648_v11, %v3664_v42 }
 0x546   :  { %14464 = vmatprep.mubr.msk.f32.mxu0 %vm16657_vm2, %v18309_v39  ;;  %15814 = vmatpush3.bf16.msra.mxu0 %v17157_v6  ;;  %v15819_v52 = vpack.c.bf16 %v3748_v44, %v3741_v43  ;;  %v5377_v44 = vld [vmem:[%s18303_s2 + $0x148] sm:$0xff] }
 0x547   :  { %15815 = vmatprep.subr.bf16.mxu0 %v18311_v35  ;;  %v3753_v49 = vand.u32 4294901760, %v3752_v31  ;;  %v15828_v62 = vpack.c.bf16 %v3759_v33, %v3752_v31 }
 0x549   :  { %v3754_v53 = vsub.f32 %v3752_v31, %v3753_v49  ;;  %v15840_v0 = vpack.c.bf16 %v3760_v50, %v3753_v49  ;;  %v5388_v50 = vand.u32 4294901760, %v5377_v44 }
 0x54a   :  { %15817 = vmatpush3.bf16.msra.mxu0 %v17173_v30 }
 0x54b   :  { %15818 = vmatprep.subr.bf16.mxu0 %v18311_v35  ;;  %v3755_v58 = vand.u32 4294901760, %v3754_v53  ;;  %v5379_v53 = vld [vmem:[%s18303_s2 + $0x158] sm:$0xff] }
 0x54d   :  { %v15822_v60 = vpack.c.bf16 %v3762_v59, %v3755_v58  ;;  %v5472_v58 = vsub.f32 %v5377_v44, %v5388_v50 }
 0x600   :  { %v3323_v1 = vpop.f32.mrb[20].mxu1 }
 0x601   :  { %v14411_v3 = vpop.f32.mrb[21].mxu1 }
 0x608   :  { %v3480_v15 = vpop.f32.mrb[22].mxu1  ;;  %v3232_v16 = vpop.f32.mrb[18].mxu0 }
 0x609   :  { %v3233_v19 = vadd.f32 %v3232_v16, %v3153_v14  ;;  %v14433_v27 = vpop.f32.mrb[23].mxu1  ;;  %v14400_v17 = vpop.f32.mrb[19].mxu0 }
 0x60b   :  { %v3324_v20 = vadd.f32 %v3323_v1, %v3233_v19  ;;  %v5473_v1 = vand.u32 4294901760, %v5472_v58 }
 0x60d   :  { %v5474_v12 = vsub.f32 %v5472_v58, %v5473_v1 }
 0x60f   :  { %v5475_v19 = vand.u32 4294901760, %v5474_v12 }
 0x610   :  { %v3403_v24 = vpop.f32.mrb[20].mxu0  ;;  %v3638_v25 = vpop.f32.mrb[24].mxu1 }
 0x611   :  { %v3404_v54 = vadd.f32 %v3403_v24, %v3324_v20  ;;  %v14422_v56 = vpop.f32.mrb[21].mxu0  ;;  %v14455_v4 = vpop.f32.mrb[25].mxu1 }
 0x613   :  { %v3481_v5 = vadd.f32 %v3480_v15, %v3404_v54 }
 0x618   :  { %v3563_v7 = vpop.f32.mrb[22].mxu0 }
 0x619   :  { %v3564_v9 = vadd.f32 %v3563_v7, %v3481_v5  ;;  %v14444_v11 = vpop.f32.mrb[23].mxu0  ;;  %v17276_v7 = vsel %vm34_vm0, 1.0, %v18309_v39 }
 0x61b   :  { %v3639_v38 = vadd.f32 %v3638_v25, %v3564_v9  ;;  %v4148_v9 = vsel %vm4146_vm3, %v17276_v7, 0 }
 0x61c   :  { %v17280_v11 = vsub.f32 %v4148_v9, %v4148_v9 }
 0x61d   :  { %v3642_v42 = vadd.f32 %v3639_v38, %v16979_v51  ;;  %v5376_v51 = vld [vmem:[%s18303_s2 + $0x140] sm:$0xff] }
 0x61e   :  { %v5385_v49 = vand.u32 4294901760, %v5376_v51  ;;  %v17283_v38 = vand.u32 4294901760, %v17280_v11 }
 0x61f   :  { %vm3643_vm12 = vcmp.gt.f32.partialorder %v3642_v42, 0.0  ;;  %v3644_v36 = vmul.f32 0.01, %v3642_v42 }
 0x620   :  { %v5465_v57 = vsub.f32 %v5376_v51, %v5385_v49 }
 0x621   :  { %v17184_v28 = vsel %vm3643_vm12, %v3642_v42, %v3644_v36  ;;  %v4232_v42 = vsub.f32 %v17280_v11, %v17283_v38  ;;  %v17299_v36 = vsel %vm16723_vm10, 1.0, %v18309_v39 }
 0x622   :  { %v3655_v29 = vsel %vm670_vm15, %v17184_v28, 0  ;;  %v15909_v54 = vpack.c.bf16 %v5472_v58, %v5465_v57  ;;  %v4154_v51 = vsel %vm4146_vm3, %v17299_v36, 0 }
 0x623   :  { %v17188_v31 = vand.u32 4294901760, %v3655_v29  ;;  %v17287_v41 = vand.u32 4294901760, %v4232_v42 }
 0x625   :  { %v17191_v33 = vsub.f32 %v3655_v29, %v17188_v31  ;;  %14524 = vmatprep.mubr.f32.mxu1 %v17287_v41  ;;  %v4151_v29 = vsel %vm4146_vm3, %v17294_v45, 0 }
 0x626   :  { %v17310_v44 = vsub.f32 %v4151_v29, %v4151_v29  ;;  %v4745_v29 = vsel %vm670_vm15, %v16756_v21, 0 }
 0x627   :  { %v17194_v34 = vand.u32 4294901760, %v17191_v33 }
 0x629   :  { %v3729_v40 = vsub.f32 %v17191_v33, %v17194_v34 }
 0x62b   :  { %v17198_v43 = vand.u32 4294901760, %v3729_v40  ;;  %v17306_v40 = vsel %vm16727_vm11, 1.0, %v18309_v39 }
 0x62c   :  { %v4157_v47 = vsel %vm4146_vm3, %v17306_v40, 0 }
 0x62d   :  { %14465 = vmatmul.mubr.f32.vlgmr.msra.gmra.mrb[24].mxu0 %v17198_v43 }
 0x62e   :  { %15820 = vmatpush3.bf16.msra.mxu0 %v15819_v52  ;;  %14475 = vmatprep.mubr.msk.f32.mxu0 %vm16657_vm2, %v18309_v39  ;;  %v5378_v52 = vld [vmem:[%s18303_s2 + $0x150] sm:$0xff] }
 0x62f   :  { %15821 = vmatprep.subr.bf16.mxu0 %v18311_v35  ;;  %v5391_v59 = vand.u32 4294901760, %v5378_v52 }
 0x632   :  { %15823 = vmatpush3.bf16.msra.mxu0 %v15822_v60  ;;  %v5394_v60 = vand.u32 4294901760, %v5379_v53 }
 0x633   :  { %15824 = vmatprep.subr.bf16.mxu0 %v18311_v35 }
 0x635   :  { %14476 = vmatmul.mubr.f32.vlgmr.msra.gmra.mrb[24].mxu0 %v17188_v31 }
 0x636   :  { %15826 = vmatpush3.bf16.msra.mxu0 %v15825_v61  ;;  %14486 = vmatprep.mubr.msk.f32.mxu0 %vm16657_vm2, %v18309_v39  ;;  %v5479_v61 = vsub.f32 %v5378_v52, %v5391_v59  ;;  %v17320_v52 = vsub.f32 %v4157_v47, %v4157_v47  ;;  %v4748_v47 = vsel %vm670_vm15, %v16753_v18, 0 }
 0x637   :  { %15827 = vmatprep.subr.bf16.mxu0 %v18311_v35 }
 0x638   :  { %v5480_v14 = vand.u32 4294901760, %v5479_v61 }
 0x63a   :  { %15829 = vmatpush3.bf16.msra.mxu0 %v15828_v62  ;;  %v5486_v62 = vsub.f32 %v5379_v53, %v5394_v60  ;;  %v5481_v27 = vsub.f32 %v5479_v61, %v5480_v14 }
 0x63b   :  { %15830 = vmatprep.subr.bf16.mxu0 %v18311_v35 }
 0x63c   :  { %v5487_v15 = vand.u32 4294901760, %v5486_v62  ;;  %v5482_v20 = vand.u32 4294901760, %v5481_v27  ;;  %v15912_v56 = vpack.c.bf16 %v5486_v62, %v5479_v61  ;;  %v4143_v27 = vld [vmem:[%s18303_s2 + $0xe8] sm:$0xff] }
 0x63d   :  { %14487 = vmatmul.mubr.f32.vlgmr.msra.gmra.mrb[24].mxu0 %v17191_v33 }
 0x63e   :  { %15832 = vmatpush3.bf16.msra.mxu0 %v17157_v6  ;;  %14497 = vmatprep.mubr.msk.f32.mxu0 %vm16657_vm2, %v18309_v39  ;;  %v5488_v17 = vsub.f32 %v5486_v62, %v5487_v15  ;;  %v15924_v5 = vpack.c.bf16 %v5487_v15, %v5480_v14 }
 0x63f   :  { %15833 = vmatprep.subr.bf16.mxu0 %v18311_v35 }
 0x640   :  { %v5489_v24 = vand.u32 4294901760, %v5488_v17 }
 0x642   :  { %15835 = vmatpush3.bf16.msra.mxu0 %v17173_v30  ;;  %v15906_v25 = vpack.c.bf16 %v5489_v24, %v5482_v20  ;;  %v4144_v20 = vld [vmem:[%s18303_s2 + $0xf0] sm:$0xff]  ;;  %v4145_v24 = vld [vmem:[%s18303_s2 + $0xf8] sm:$0xff] }
 0x643   :  { %15836 = vmatprep.subr.bf16.mxu0 %v18311_v35 }
 0x645   :  { %14498 = vmatmul.mubr.f32.vlgmr.msra.gmra.mrb[24].mxu0 %v17194_v34 }
 0x646   :  { %15838 = vmatpush3.bf16.msra.mxu0 %v15837_v63  ;;  %14508 = vmatprep.mubr.msk.f32.mxu0 %vm16657_vm2, %v18309_v39  ;;  %v5466_v63 = vand.u32 4294901760, %v5465_v57 }
 0x647   :  { %15839 = vmatprep.subr.bf16.mxu0 %v18311_v35 }
 0x648   :  { %v5467_v3 = vsub.f32 %v5465_v57, %v5466_v63  ;;  %v15921_v4 = vpack.c.bf16 %v5473_v1, %v5466_v63 }
 0x64a   :  { %15841 = vmatpush3.bf16.msra.mxu0 %v15840_v0  ;;  %v15897_v0 = vpack.c.bf16 %v5388_v50, %v5385_v49  ;;  %v5468_v16 = vand.u32 4294901760, %v5467_v3  ;;  %v17313_v49 = vsub.f32 %v4154_v51, %v4154_v51  ;;  %v17318_v50 = vand.u32 4294901760, %v17310_v44 }
 0x64b   :  { %15842 = vmatprep.subr.bf16.mxu0 %v18311_v35 }
 0x64c   :  { %v17324_v53 = vand.u32 4294901760, %v17313_v49  ;;  %v4242_v58 = vsub.f32 %v17310_v44, %v17318_v50 }
 0x64d   :  { %14509 = vmatmul.mubr.f32.vlgmr.msra.gmra.mrb[24].mxu0 %v17188_v31 }
 0x64e   :  { %15844 = vmatpush3.bf16.msra.mxu0 %v17157_v6  ;;  %14519 = vmatprep.mubr.msk.f32.mxu0 %vm16657_vm2, %v18309_v39  ;;  %v15900_v6 = vpack.c.bf16 %v5394_v60, %v5391_v59  ;;  %v17329_v59 = vand.u32 4294901760, %v17320_v52  ;;  %v4252_v62 = vsub.f32 %v17313_v49, %v17324_v53  ;;  %v17334_v23 = vand.u32 4294901760, %v4242_v58 }
 0x64f   :  { %15845 = vmatprep.subr.bf16.mxu0 %v18311_v35 }
 0x650   :  { %18323 = vst [vmem:[#allocation2_spill] sm:$0xff] %v17329_v59  ;;  %v17338_v3 = vand.u32 4294901760, %v4252_v62  ;;  %v17402_v62 = vand.u32 4294901760, %v4745_v29 }
 0x652   :  { %15847 = vmatpush3.bf16.msra.mxu0 %v17173_v30  ;;  %v15903_v30 = vpack.c.bf16 %v5475_v19, %v5468_v16  ;;  %v4142_v19 = vld [vmem:[%s18303_s2 + $0xe0] sm:$0xff] }
 0x653   :  { %15896 = vmatprep.subr.bf16.mxu0 %v18311_v35  ;;  %v4751_v17 = vand.u32 4294901760, %v4142_v19 }
 0x655   :  { %14520 = vmatmul.mubr.f32.vlgmr.msra.gmra.mrb[24].mxu0 %v17188_v31 }
 0x656   :  { %15898 = vmatpush3.bf16.msra.mxu0 %v15897_v0  ;;  %14662 = vmatprep.mubr.msk.f32.mxu0 %vm16657_vm2, %v18309_v39 }
 0x657   :  { %15899 = vmatprep.subr.bf16.mxu0 %v18311_v35 }
 0x65a   :  { %15901 = vmatpush3.bf16.msra.mxu0 %v15900_v6 }
 0x65b   :  { %15902 = vmatprep.subr.bf16.mxu0 %v18311_v35 }
 0x65d   :  { %14663 = vmatmul.mubr.f32.vlgmr.msra.gmra.mrb[26].mxu0 %v17198_v43 }
 0x65e   :  { %15904 = vmatpush3.bf16.msra.mxu0 %v15903_v30  ;;  %14673 = vmatprep.mubr.msk.f32.mxu0 %vm16657_vm2, %v18309_v39  ;;  %v4754_v30 = vand.u32 4294901760, %v4143_v27 }
 0x65f   :  { %15905 = vmatprep.subr.bf16.mxu0 %v18311_v35 }
 0x660   :  { %v17378_v9 = vsub.f32 %v4143_v27, %v4754_v30  ;;  %v17389_v46 = vpack.c.bf16 %v4754_v30, %v4751_v17  ;;  %v17425_v27 = vsub.f32 %v4745_v29, %v17402_v62 }
 0x662   :  { %15907 = vmatpush3.bf16.msra.mxu0 %v15906_v25  ;;  %v4739_v25 = vsel %vm670_vm15, %v16745_v10, 0 }
 0x663   :  { %15908 = vmatprep.subr.bf16.mxu0 %v18311_v35  ;;  %v17380_v42 = vand.u32 4294901760, %v4739_v25 }
 0x665   :  { %14674 = vmatmul.mubr.f32.vlgmr.msra.gmra.mrb[26].mxu0 %v17188_v31 }
 0x666   :  { %15910 = vmatpush3.bf16.msra.mxu0 %v15909_v54  ;;  %14684 = vmatprep.mubr.msk.f32.mxu0 %vm16657_vm2, %v18309_v39  ;;  %v4742_v54 = vsel %vm670_vm15, %v16743_v8, 0 }
 0x667   :  { %15911 = vmatprep.subr.bf16.mxu0 %v18311_v35  ;;  %v17385_v51 = vand.u32 4294901760, %v4742_v54 }
 0x66a   :  { %15913 = vmatpush3.bf16.msra.mxu0 %v15912_v56  ;;  %v4757_v56 = vand.u32 4294901760, %v4144_v20 }
 0x66b   :  { %15914 = vmatprep.subr.bf16.mxu0 %v18311_v35 }
 0x66c   :  { %v17395_v58 = vsub.f32 %v4144_v20, %v4757_v56 }
 0x66d   :  { %14685 = vmatmul.mubr.f32.vlgmr.msra.gmra.mrb[26].mxu0 %v17191_v33 }
 0x66e   :  { %15916 = vmatpush3.bf16.msra.mxu0 %v15897_v0  ;;  %14695 = vmatprep.mubr.msk.f32.mxu0 %vm16657_vm2, %v18309_v39 }
 0x66f   :  { %15917 = vmatprep.subr.bf16.mxu0 %v18311_v35 }
 0x672   :  { %15919 = vmatpush3.bf16.msra.mxu0 %v15900_v6 }
 0x673   :  { %15920 = vmatprep.subr.bf16.mxu0 %v18311_v35 }
 0x675   :  { %14696 = vmatmul.mubr.f32.vlgmr.msra.gmra.mrb[26].mxu0 %v17194_v34 }
 0x676   :  { %15922 = vmatpush3.bf16.msra.mxu0 %v15921_v4  ;;  %14706 = vmatprep.mubr.msk.f32.mxu0 %vm16657_vm2, %v18309_v39  ;;  %v4760_v4 = vand.u32 4294901760, %v4145_v24 }
 0x677   :  { %15923 = vmatprep.subr.bf16.mxu0 %v18311_v35 }
 0x678   :  { %v17434_v20 = vpack.c.bf16 %v4760_v4, %v4757_v56 }
 0x67a   :  { %15925 = vmatpush3.bf16.msra.mxu0 %v15924_v5  ;;  %v17376_v5 = vsub.f32 %v4142_v19, %v4751_v17  ;;  %v16653_v17 = vld [vmem:[%s18303_s2 + $0x240] sm:$0xff] }
 0x67b   :  { %15926 = vmatprep.subr.bf16.mxu0 %v18311_v35 }
 0x67d   :  { %14707 = vmatmul.mubr.f32.vlgmr.msra.gmra.mrb[26].mxu0 %v17188_v31 }
 0x67e   :  { %15928 = vmatpush3.bf16.msra.mxu0 %v15897_v0  ;;  %14717 = vmatprep.mubr.msk.f32.mxu0 %vm16657_vm2, %v18309_v39  ;;  %v4262_v0 = vsub.f32 %v17320_v52, %v17329_v59 }
 0x67f   :  { %15929 = vmatprep.subr.bf16.mxu0 %v18311_v35 }
 0x680   :  { %v17341_v14 = vand.u32 4294901760, %v4262_v0  ;;  %v5382_v0 = vsub.s32 6, %v16700_v37 }
 0x682   :  { %15931 = vmatpush3.bf16.msra.mxu0 %v15900_v6  ;;  %v5383_v30 = vrot.slane %v16653_v17, %v5382_v0 }
 0x685   :  { %14718 = vmatmul.mubr.f32.vlgmr.msra.gmra.mrb[26].mxu0 %v17188_v31 }
 0x686   :  { %14722 = vmatprep.mubr.f32.mxu0 %v17287_v41 }
 0x728   :  { %v4138_v57 = vpop.f32.mrb[24].mxu0 }
 0x729   :  { %v16350_v60 = vadd.f32 %v4138_v57, %v3653_v48  ;;  %v14521_v61 = vpop.f32.mrb[25].mxu0  ;;  %v4862_v48 = vand.u32 4294901760, %v17376_v5  ;;  %v4869_v57 = vand.u32 4294901760, %v17378_v9 }
 0x72a   :  { %v17400_v61 = vsub.f32 %v4739_v25, %v17380_v42 }
 0x72b   :  { %v4161_v63 = vsel %vm4159_vm9, %v16350_v60, 0  ;;  %v17397_v60 = vsub.f32 %v4145_v24, %v4760_v4  ;;  %v4841_v4 = vand.u32 4294901760, %v17425_v27 }
 0x72c   :  { %v4164_v1 = vand.u32 4294901760, %v4161_v63  ;;  %v4821_v19 = vand.u32 4294901760, %v17400_v61 }
 0x72e   :  { %v4271_v12 = vsub.f32 %v4161_v63, %v4164_v1  ;;  %14522 = vmatprep.subr.mxu1 %v4164_v1  ;;  %v17407_v63 = vsub.f32 %v4742_v54, %v17385_v51  ;;  %v4822_v56 = vsub.f32 %v17400_v61, %v4821_v19 }
 0x72f   :  { %14523 = vmatpush3.msra.mxu1 %v4164_v1 }
 0x730   :  { %14525 = vmatmul.mubr.f32.vlgmr.msra.gmra.mrb[26].mxu1 %v17334_v23  ;;  %v4272_v15 = vand.u32 4294901760, %v4271_v12  ;;  %v4831_v24 = vand.u32 4294901760, %v17407_v63 }
 0x731   :  { %14527 = vmatprep.mubr.f32.mxu1 %v17338_v3 }
 0x732   :  { %v4273_v6 = vsub.f32 %v4271_v12, %v4272_v15 }
 0x734   :  { %14528 = vmatmul.mubr.f32.gmra.mrb[28].mxu1 %v17341_v14  ;;  %v4274_v16 = vand.u32 4294901760, %v4273_v6  ;;  %v4870_v6 = vsub.f32 %v17378_v9, %v4869_v57 }
 0x735   :  { %14532 = vmatprep.mubr.msk.f32.mxu1 %vm4146_vm3, %v17276_v7 }
 0x736   :  { %14530 = vmatprep.subr.mxu1 %v4274_v16  ;;  %v4871_v29 = vand.u32 4294901760, %v4870_v6  ;;  %v4832_v6 = vsub.f32 %v17407_v63, %v4831_v24 }
 0x737   :  { %14531 = vmatpush3.msra.mxu1 %v4274_v16  ;;  %v18314_v16 = vand.u32 4294901760, %v17395_v58 }
 0x738   :  { %14533 = vmatmul.mubr.msk.f32.vlgmr.msra.gmra.mrb[26].mxu1 %vm4146_vm3, %v17294_v45  ;;  %14538 = vmatprep.subr.mxu1 %v4271_v12 }
 0x739   :  { %14539 = vmatpush3.msra.mxu1 %v4271_v12  ;;  %14535 = vmatprep.mubr.msk.f32.mxu1 %vm4146_vm3, %v17299_v36  ;;  %v17412_v12 = vand.u32 4294901760, %v4748_v47  ;;  %v4877_v26 = vsub.f32 %v17395_v58, %v18314_v16 }
 0x73a   :  { %14546 = vmatprep.subr.mxu1 %v4164_v1 }
 0x73b   :  { %v17438_v25 = vsub.f32 %v4748_v47, %v17412_v12  ;;  %v4878_v35 = vand.u32 4294901760, %v4877_v26 }
 0x73c   :  { %14536 = vmatmul.mubr.msk.f32.gmra.mrb[28].mxu1 %vm4146_vm3, %v17306_v40 }
 0x73d   :  { %14540 = vmatprep.mubr.f32.mxu1 %v17280_v11  ;;  %v4851_v39 = vand.u32 4294901760, %v17438_v25 }
 0x73f   :  { %v4852_v26 = vsub.f32 %v17438_v25, %v4851_v39 }
 0x740   :  { %14541 = vmatmul.mubr.f32.vlgmr.msra.gmra.mrb[26].mxu1 %v17310_v44 }
 0x741   :  { %14547 = vmatpush3.msra.mxu1 %v4164_v1  ;;  %14543 = vmatprep.mubr.f32.mxu1 %v17313_v49 }
 0x742   :  { %14554 = vmatprep.subr.mxu1 %v4272_v15 }
 0x744   :  { %14544 = vmatmul.mubr.f32.gmra.mrb[28].mxu1 %v17320_v52 }
 0x745   :  { %14548 = vmatprep.mubr.f32.mxu1 %v17283_v38 }
 0x748   :  { %14549 = vmatmul.mubr.f32.vlgmr.msra.gmra.mrb[26].mxu1 %v17318_v50 }
 0x749   :  { %14555 = vmatpush3.msra.mxu1 %v4272_v15  ;;  %14551 = vmatprep.mubr.f32.mxu1 %v17324_v53  ;;  %v4863_v15 = vsub.f32 %v17376_v5, %v4862_v48 }
 0x74a   :  { %14562 = vmatprep.subr.mxu1 %v4164_v1 }
 0x74b   :  { %v4864_v54 = vand.u32 4294901760, %v4863_v15 }
 0x74c   :  { %14552 = vmatmul.mubr.f32.gmra.mrb[28].mxu1 %v17329_v59 }
 0x74d   :  { %14556 = vmatprep.mubr.msk.f32.mxu1 %vm4146_vm3, %v17276_v7  ;;  %v15856_v17 = vpack.c.bf16 %v4871_v29, %v4864_v54 }
 0x750   :  { %14557 = vmatmul.mubr.msk.f32.vlgmr.msra.gmra.mrb[26].mxu1 %vm4146_vm3, %v17294_v45 }
 0x751   :  { %14563 = vmatpush3.msra.mxu1 %v4164_v1  ;;  %14559 = vmatprep.mubr.msk.f32.mxu1 %vm4146_vm3, %v17299_v36  ;;  %v18313_v1 = vand.u32 4294901760, %v17397_v60 }
 0x752   :  { %15849 = vmatprep.subr.bf16.mxu1 %v17389_v46 }
 0x753   :  { %v4884_v22 = vsub.f32 %v17397_v60, %v18313_v1 }
 0x754   :  { %14560 = vmatmul.mubr.msk.f32.gmra.mrb[28].mxu1 %vm4146_vm3, %v17306_v40 }
 0x755   :  { %14564 = vmatprep.mubr.msk.f32.mxu1 %vm4146_vm3, %v17276_v7  ;;  %v4885_v1 = vand.u32 4294901760, %v4884_v22  ;;  %v4833_v22 = vand.u32 4294901760, %v4832_v6 }
 0x757   :  { %v15860_v29 = vpack.c.bf16 %v4885_v1, %v4878_v35  ;;  %v15868_v1 = vpack.c.bf16 %v17397_v60, %v17395_v58 }
 0x758   :  { %v5865_v0 = vpop.f32.mrb[26].mxu0  ;;  %14565 = vmatmul.mubr.msk.f32.vlgmr.msra.gmra.mrb[26].mxu1 %vm4146_vm3, %v17294_v45 }
 0x759   :  { %v16351_v47 = vadd.f32 %v5865_v0, %v5383_v30  ;;  %v14719_v15 = vpop.f32.mrb[27].mxu0  ;;  %15851 = vmatpush3.bf16.msra.mxu1 %v17389_v46  ;;  %14567 = vmatprep.mubr.msk.f32.mxu1 %vm4146_vm3, %v17299_v36  ;;  %v4823_v30 = vand.u32 4294901760, %v4822_v56  ;;  %v4842_v0 = vsub.f32 %v17425_v27, %v4841_v4 }
 0x75a   :  { %15853 = vmatprep.subr.bf16.mxu1 %v17434_v20 }
 0x75b   :  { %v5874_v16 = vsel %vm4159_vm9, %v16351_v47, 0  ;;  %v4843_v56 = vand.u32 4294901760, %v4842_v0  ;;  %v18324_v0 = vand.u32 4294901760, %v17395_v58 }
 0x75c   :  { %v17464_v15 = vand.u32 4294901760, %v5874_v16  ;;  %14568 = vmatmul.mubr.msk.f32.gmra.mrb[28].mxu1 %vm4146_vm3, %v17306_v40 }
 0x75d   :  { %15855 = vmatpush3.bf16.msra.mxu1 %v17434_v20  ;;  %14578 = vmatprep.mubr.f32.mxu1 %v4823_v30  ;;  %v15864_v30 = vpack.c.bf16 %v17378_v9, %v17376_v5  ;;  %v18327_v9 = vmov 0.0  }
 0x75e   :  { %v5984_v54 = vsub.f32 %v5874_v16, %v17464_v15  ;;  %14720 = vmatprep.subr.mxu0 %v17464_v15  ;;  %15857 = vmatprep.subr.bf16.mxu1 %v15856_v17  ;;  %v4853_v16 = vand.u32 4294901760, %v4852_v26 }
 0x75f   :  { %14721 = vmatpush3.msra.mxu0 %v17464_v15 }
 0x760   :  { %14723 = vmatmul.mubr.f32.vlgmr.msra.gmra.mrb[28].mxu0 %v17334_v23  ;;  %14579 = vmatmul.mubr.f32.vlgmr.msra.gmra.mrb[26].mxu1 %v4833_v22  ;;  %v5985_v47 = vand.u32 4294901760, %v5984_v54 }
 0x761   :  { %14581 = vmatprep.mubr.f32.mxu1 %v4843_v56  ;;  %15859 = vmatpush3.bf16.msra.mxu1 %v15856_v17  ;;  %v15880_v17 = vpack.c.bf16 %v4869_v57, %v4862_v48 }
 0x762   :  { %14725 = vmatprep.mubr.f32.mxu0 %v17338_v3  ;;  %15861 = vmatprep.subr.bf16.mxu1 %v15860_v29  ;;  %v5986_v6 = vsub.f32 %v5984_v54, %v5985_v47 }
 0x764   :  { %14726 = vmatmul.mubr.f32.gmra.mrb[30].mxu0 %v17341_v14  ;;  %14582 = vmatmul.mubr.f32.gmra.mrb[28].mxu1 %v4853_v16  ;;  %v5987_v35 = vand.u32 4294901760, %v5986_v6 }
 0x765   :  { %15863 = vmatpush3.bf16.msra.mxu1 %v15860_v29  ;;  %14592 = vmatprep.mubr.f32.mxu1 %v17380_v42 }
 0x766   :  { %14728 = vmatprep.subr.mxu0 %v5987_v35  ;;  %14730 = vmatprep.mubr.msk.f32.mxu0 %vm4146_vm3, %v17276_v7 }
 0x767   :  { %14729 = vmatpush3.msra.mxu0 %v5987_v35  ;;  %15865 = vmatprep.subr.bf16.mxu1 %v15864_v30 }
 0x768   :  { %14731 = vmatmul.mubr.msk.f32.vlgmr.msra.gmra.mrb[28].mxu0 %vm4146_vm3, %v17294_v45  ;;  %14736 = vmatprep.subr.mxu0 %v5984_v54 }
 0x769   :  { %14593 = vmatmul.mubr.f32.vlgmr.msra.gmra.mrb[26].mxu1 %v17385_v51  ;;  %14737 = vmatpush3.msra.mxu0 %v5984_v54  ;;  %v18325_v54 = vand.u32 4294901760, %v17397_v60 }
 0x76a   :  { %14595 = vmatprep.mubr.f32.mxu1 %v17402_v62  ;;  %15867 = vmatpush3.bf16.msra.mxu1 %v15864_v30 }
 0x76b   :  { %14744 = vmatprep.subr.mxu0 %v17464_v15  ;;  %14733 = vmatprep.mubr.msk.f32.mxu0 %vm4146_vm3, %v17299_v36  ;;  %v15884_v5 = vpack.c.bf16 %v18325_v54, %v18324_v0 }
 0x76c   :  { %14734 = vmatmul.mubr.msk.f32.gmra.mrb[30].mxu0 %vm4146_vm3, %v17306_v40  ;;  %15869 = vmatprep.subr.bf16.mxu1 %v15868_v1 }
 0x76d   :  { %14596 = vmatmul.mubr.f32.gmra.mrb[28].mxu1 %v17412_v12  ;;  %14738 = vmatprep.mubr.f32.mxu0 %v17280_v11 }
 0x76e   :  { %15871 = vmatpush3.bf16.msra.mxu1 %v15868_v1  ;;  %14606 = vmatprep.mubr.f32.mxu1 %v17400_v61  ;;  %v5871_v61 = vld [vmem:[%s18303_s2 + $0x130] sm:$0xff] }
 0x76f   :  { %15873 = vmatprep.subr.bf16.mxu1 %v17389_v46 }
 0x770   :  { %14739 = vmatmul.mubr.f32.vlgmr.msra.gmra.mrb[28].mxu0 %v17310_v44 }
 0x771   :  { %14745 = vmatpush3.msra.mxu0 %v17464_v15  ;;  %14607 = vmatmul.mubr.f32.vlgmr.msra.gmra.mrb[26].mxu1 %v17407_v63  ;;  %v6470_v63 = vand.u32 4294901760, %v5871_v61 }
 0x772   :  { %14752 = vmatprep.subr.mxu0 %v5985_v47  ;;  %14609 = vmatprep.mubr.f32.mxu1 %v17425_v27 }
 0x773   :  { %15875 = vmatpush3.bf16.msra.mxu1 %v17389_v46  ;;  %14741 = vmatprep.mubr.f32.mxu0 %v17313_v49 }
 0x774   :  { %14742 = vmatmul.mubr.f32.gmra.mrb[30].mxu0 %v17320_v52  ;;  %15877 = vmatprep.subr.bf16.mxu1 %v17434_v20 }
 0x775   :  { %14610 = vmatmul.mubr.f32.gmra.mrb[28].mxu1 %v17438_v25  ;;  %14746 = vmatprep.mubr.f32.mxu0 %v17283_v38 }
 0x776   :  { %14620 = vmatprep.mubr.f32.mxu1 %v4821_v19 }
 0x777   :  { %15879 = vmatpush3.bf16.msra.mxu1 %v17434_v20 }
 0x778   :  { %14747 = vmatmul.mubr.f32.vlgmr.msra.gmra.mrb[28].mxu0 %v17318_v50  ;;  %15881 = vmatprep.subr.bf16.mxu1 %v15880_v17 }
 0x779   :  { %14753 = vmatpush3.msra.mxu0 %v5985_v47  ;;  %14749 = vmatprep.mubr.f32.mxu0 %v17324_v53 }
 0x77a   :  { %14621 = vmatmul.mubr.f32.vlgmr.msra.gmra.mrb[26].mxu1 %v4831_v24  ;;  %14760 = vmatprep.subr.mxu0 %v17464_v15 }
 0x77b   :  { %14623 = vmatprep.mubr.f32.mxu1 %v4841_v4  ;;  %15883 = vmatpush3.bf16.msra.mxu1 %v15880_v17  ;;  %v6588_v4 = vsub.f32 %v5871_v61, %v6470_v63 }
 0x77c   :  { %14750 = vmatmul.mubr.f32.gmra.mrb[30].mxu0 %v17329_v59  ;;  %15885 = vmatprep.subr.bf16.mxu1 %v15884_v5 }
 0x77d   :  { %14754 = vmatprep.mubr.msk.f32.mxu0 %vm4146_vm3, %v17276_v7  ;;  %v6589_v29 = vand.u32 4294901760, %v6588_v4 }
 0x77e   :  { %14624 = vmatmul.mubr.f32.gmra.mrb[28].mxu1 %v4851_v39  ;;  %v18326_v39 = vmov 0.0|0.0  }
 0x77f   :  { %15887 = vmatpush3.bf16.msra.mxu1 %v15884_v5  ;;  %14634 = vmatprep.mubr.f32.mxu1 %v17380_v42  ;;  %v6590_v16 = vsub.f32 %v6588_v4, %v6589_v29 }
 0x780   :  { %14755 = vmatmul.mubr.msk.f32.vlgmr.msra.gmra.mrb[28].mxu0 %vm4146_vm3, %v17294_v45  ;;  %15889 = vmatprep.subr.bf16.mxu1 %v17389_v46 }
 0x781   :  { %14761 = vmatpush3.msra.mxu0 %v17464_v15  ;;  %14757 = vmatprep.mubr.msk.f32.mxu0 %vm4146_vm3, %v17299_v36  ;;  %v6591_v30 = vand.u32 4294901760, %v6590_v16 }
 0x782   :  { %14635 = vmatmul.mubr.f32.vlgmr.msra.gmra.mrb[26].mxu1 %v17385_v51 }
 0x783   :  { %14637 = vmatprep.mubr.f32.mxu1 %v17402_v62  ;;  %15891 = vmatpush3.bf16.msra.mxu1 %v17389_v46  ;;  %v5870_v46 = vld [vmem:[%s18303_s2 + $0x128] sm:$0xff] }
 0x784   :  { %15893 = vmatprep.subr.bf16.mxu1 %v17434_v20  ;;  %14758 = vmatmul.mubr.msk.f32.gmra.mrb[30].mxu0 %vm4146_vm3, %v17306_v40 }
 0x785   :  { %14762 = vmatprep.mubr.msk.f32.mxu0 %vm4146_vm3, %v17276_v7 }
 0x786   :  { %14638 = vmatmul.mubr.f32.gmra.mrb[28].mxu1 %v17412_v12 }
 0x787   :  { %15895 = vmatpush3.bf16.msra.mxu1 %v17434_v20  ;;  %14648 = vmatprep.mubr.f32.mxu1 %v17380_v42  ;;  %v5869_v42 = vld [vmem:[%s18303_s2 + $0x120] sm:$0xff] }
 0x788   :  { %14763 = vmatmul.mubr.msk.f32.vlgmr.msra.gmra.mrb[28].mxu0 %vm4146_vm3, %v17294_v45  ;;  %15980 = vmatprep.subr.bf16.mxu1 %v18326_v39  ;;  %v6464_v48 = vand.u32 4294901760, %v5869_v42 }
 0x789   :  { %14765 = vmatprep.mubr.msk.f32.mxu0 %vm4146_vm3, %v17299_v36 }
 0x78a   :  { %14649 = vmatmul.mubr.f32.vlgmr.msra.gmra.mrb[26].mxu1 %v17385_v51  ;;  %v6467_v51 = vand.u32 4294901760, %v5870_v46  ;;  %v6574_v58 = vsub.f32 %v5869_v42, %v6464_v48 }
 0x78b   :  { %14651 = vmatprep.mubr.f32.mxu1 %v17402_v62  ;;  %v5872_v62 = vld [vmem:[%s18303_s2 + $0x138] sm:$0xff] }
 0x78c   :  { %14766 = vmatmul.mubr.msk.f32.gmra.mrb[30].mxu0 %vm4146_vm3, %v17306_v40  ;;  %v17567_v57 = vpack.c.bf16 %v6467_v51, %v6464_v48  ;;  %v6581_v60 = vsub.f32 %v5870_v46, %v6467_v51  ;;  %v6575_v19 = vand.u32 4294901760, %v6574_v58 }
 0x78e   :  { %14652 = vmatmul.mubr.f32.gmra.mrb[28].mxu1 %v17412_v12  ;;  %15933 = vmatprep.subr.bf16.mxu0 %v17567_v57  ;;  %v6473_v12 = vand.u32 4294901760, %v5872_v62  ;;  %v6582_v27 = vand.u32 4294901760, %v6581_v60  ;;  %v6576_v24 = vsub.f32 %v6574_v58, %v6575_v19  ;;  %v15948_v17 = vpack.c.bf16 %v6581_v60, %v6574_v58 }
 0x78f   :  { %14860 = vmatprep.mubr.msk.f32.mxu1 %vm16657_vm2, %v18327_v9  ;;  %15935 = vmatpush3.bf16.msra.mxu0 %v17567_v57 }
 0x790   :  { %v17577_v20 = vpack.c.bf16 %v6473_v12, %v6470_v63  ;;  %v6583_v25 = vsub.f32 %v6581_v60, %v6582_v27  ;;  %v6595_v15 = vsub.f32 %v5872_v62, %v6473_v12  ;;  %v6577_v22 = vand.u32 4294901760, %v6576_v24 }
 0x791   :  { %v17581_v54 = vpack.c.bf16 %v6582_v27, %v6575_v19 }
 0x792   :  { %15937 = vmatprep.subr.bf16.mxu0 %v17577_v20  ;;  %v6584_v26 = vand.u32 4294901760, %v6583_v25  ;;  %v6596_v56 = vand.u32 4294901760, %v6595_v15  ;;  %v15952_v0 = vpack.c.bf16 %v6595_v15, %v6588_v4 }
 0x793   :  { %15939 = vmatpush3.bf16.msra.mxu0 %v17577_v20 }
 0x794   :  { %v15940_v47 = vpack.c.bf16 %v6584_v26, %v6577_v22  ;;  %v6597_v6 = vsub.f32 %v6595_v15, %v6596_v56  ;;  %v17583_v5 = vpack.c.bf16 %v6596_v56, %v6589_v29 }
 0x796   :  { %15941 = vmatprep.subr.bf16.mxu0 %v15940_v47  ;;  %v6598_v35 = vand.u32 4294901760, %v6597_v6 }
 0x798   :  { %v15944_v1 = vpack.c.bf16 %v6598_v35, %v6591_v30 }
 0x85d   :  { %v14650_v42 = vpop.f32.mrb[26].mxu1 }
 0x85e   :  { %vm5365_vm10 = vcmp.gt.f32.partialorder %v14650_v42, 0.0  ;;  %v5369_v46 = vmul.f32 0.01, %v14650_v42  ;;  %v5342_v48 = vpop.f32.mrb[27].mxu1 }
 0x85f   :  { %vm5364_vm11 = vcmp.gt.f32.partialorder %v5342_v48, 0.0  ;;  %v5368_v51 = vmul.f32 0.01, %v5342_v48 }
 0x860   :  { %v5373_v61 = vsel %vm5365_vm10, %v14650_v42, %v5369_v46 }
 0x861   :  { %v6455_v62 = vsel %vm670_vm15, %v5373_v61, 0  ;;  %v5372_v63 = vsel %vm5364_vm11, %v5342_v48, %v5368_v51  ;;  %v14653_v12 = vpop.f32.mrb[28].mxu1 }
 0x862   :  { %v17586_v24 = vand.u32 4294901760, %v6455_v62  ;;  %v6452_v58 = vsel %vm670_vm15, %v5372_v63, 0  ;;  %vm5367_vm4 = vcmp.gt.f32.partialorder %v14653_v12, 0.0  ;;  %v5371_v60 = vmul.f32 0.01, %v14653_v12  ;;  %v5354_v19 = vpop.f32.mrb[29].mxu1 }
 0x863   :  { %v17589_v27 = vand.u32 4294901760, %v6452_v58  ;;  %vm5366_vm5 = vcmp.gt.f32.partialorder %v5354_v19, 0.0  ;;  %v5370_v25 = vmul.f32 0.01, %v5354_v19 }
 0x864   :  { %v6543_v4 = vsub.f32 %v6455_v62, %v17586_v24  ;;  %v5375_v15 = vsel %vm5367_vm4, %v14653_v12, %v5371_v60 }
 0x865   :  { %v6533_v22 = vsub.f32 %v6452_v58, %v17589_v27  ;;  %v6461_v26 = vsel %vm670_vm15, %v5375_v15, 0  ;;  %v5374_v29 = vsel %vm5366_vm5, %v5354_v19, %v5370_v25 }
 0x866   :  { %v6544_v56 = vand.u32 4294901760, %v6543_v4  ;;  %v6562_v16 = vand.u32 4294901760, %v6461_v26  ;;  %v6458_v6 = vsel %vm670_vm15, %v5374_v29, 0 }
 0x867   :  { %v6552_v30 = vand.u32 4294901760, %v6458_v6  ;;  %v6534_v35 = vand.u32 4294901760, %v6533_v22 }
 0x868   :  { %v6545_v42 = vsub.f32 %v6543_v4, %v6544_v56  ;;  %v6563_v46 = vsub.f32 %v6461_v26, %v6562_v16 }
 0x869   :  { %v6553_v48 = vsub.f32 %v6458_v6, %v6552_v30  ;;  %v6535_v51 = vsub.f32 %v6533_v22, %v6534_v35 }
 0x86a   :  { %v6564_v61 = vand.u32 4294901760, %v6563_v46  ;;  %v6546_v62 = vand.u32 4294901760, %v6545_v42 }
 0x86b   :  { %v6536_v63 = vand.u32 4294901760, %v6535_v51  ;;  %v6554_v59 = vand.u32 4294901760, %v6553_v48 }
 0x86c   :  { %v6565_v12 = vsub.f32 %v6563_v46, %v6564_v61 }
 0x86d   :  { %14776 = vmatprep.mubr.f32.mxu0 %v6536_v63  ;;  %v6555_v58 = vsub.f32 %v6553_v48, %v6554_v59 }
 0x86e   :  { %14777 = vmatmul.mubr.f32.vlgmr.msra.gmra.mrb[28].mxu0 %v6546_v62  ;;  %v6566_v19 = vand.u32 4294901760, %v6565_v12 }
 0x86f   :  { %15943 = vmatpush3.bf16.msra.mxu0 %v15940_v47  ;;  %v6556_v60 = vand.u32 4294901760, %v6555_v58 }
 0x870   :  { %15945 = vmatprep.subr.bf16.mxu0 %v15944_v1 }
 0x871   :  { %14779 = vmatprep.mubr.f32.mxu0 %v6556_v60 }
 0x872   :  { %14780 = vmatmul.mubr.f32.gmra.mrb[30].mxu0 %v6566_v19 }
 0x873   :  { %15947 = vmatpush3.bf16.msra.mxu0 %v15944_v1  ;;  %14790 = vmatprep.mubr.f32.mxu0 %v17589_v27 }
 0x874   :  { %15949 = vmatprep.subr.bf16.mxu0 %v15948_v17 }
 0x876   :  { %14791 = vmatmul.mubr.f32.vlgmr.msra.gmra.mrb[28].mxu0 %v17586_v24 }
 0x877   :  { %14793 = vmatprep.mubr.f32.mxu0 %v6552_v30  ;;  %15951 = vmatpush3.bf16.msra.mxu0 %v15948_v17 }
 0x878   :  { %15953 = vmatprep.subr.bf16.mxu0 %v15952_v0 }
 0x87a   :  { %14794 = vmatmul.mubr.f32.gmra.mrb[30].mxu0 %v6562_v16 }
 0x87b   :  { %15955 = vmatpush3.bf16.msra.mxu0 %v15952_v0  ;;  %14804 = vmatprep.mubr.f32.mxu0 %v6533_v22 }
 0x87c   :  { %15957 = vmatprep.subr.bf16.mxu0 %v17567_v57 }
 0x87e   :  { %14805 = vmatmul.mubr.f32.vlgmr.msra.gmra.mrb[28].mxu0 %v6543_v4 }
 0x87f   :  { %14807 = vmatprep.mubr.f32.mxu0 %v6553_v48  ;;  %15959 = vmatpush3.bf16.msra.mxu0 %v17567_v57 }
 0x880   :  { %15961 = vmatprep.subr.bf16.mxu0 %v17577_v20 }
 0x882   :  { %14808 = vmatmul.mubr.f32.gmra.mrb[30].mxu0 %v6563_v46 }
 0x883   :  { %15963 = vmatpush3.bf16.msra.mxu0 %v17577_v20  ;;  %14818 = vmatprep.mubr.f32.mxu0 %v6534_v35 }
 0x884   :  { %15965 = vmatprep.subr.bf16.mxu0 %v17581_v54 }
 0x886   :  { %14819 = vmatmul.mubr.f32.vlgmr.msra.gmra.mrb[28].mxu0 %v6544_v56 }
 0x887   :  { %14821 = vmatprep.mubr.f32.mxu0 %v6554_v59  ;;  %15967 = vmatpush3.bf16.msra.mxu0 %v17581_v54 }
 0x888   :  { %15969 = vmatprep.subr.bf16.mxu0 %v17583_v5 }
 0x88a   :  { %14822 = vmatmul.mubr.f32.gmra.mrb[30].mxu0 %v6564_v61 }
 0x88b   :  { %15971 = vmatpush3.bf16.msra.mxu0 %v17583_v5  ;;  %14832 = vmatprep.mubr.f32.mxu0 %v17589_v27 }
 0x88c   :  { %15973 = vmatprep.subr.bf16.mxu0 %v17567_v57 }
 0x88e   :  { %14833 = vmatmul.mubr.f32.vlgmr.msra.gmra.mrb[28].mxu0 %v17586_v24 }
 0x88f   :  { %14835 = vmatprep.mubr.f32.mxu0 %v6552_v30  ;;  %15975 = vmatpush3.bf16.msra.mxu0 %v17567_v57 }
 0x890   :  { %15977 = vmatprep.subr.bf16.mxu0 %v17577_v20 }
 0x892   :  { %14836 = vmatmul.mubr.f32.gmra.mrb[30].mxu0 %v6562_v16 }
 0x893   :  { %15979 = vmatpush3.bf16.msra.mxu0 %v17577_v20  ;;  %14846 = vmatprep.mubr.f32.mxu0 %v17589_v27 }
 0x894   :  { %16052 = vmatprep.subr.bf16.mxu0 %v18326_v39 }
 0x896   :  { %14847 = vmatmul.mubr.f32.vlgmr.msra.gmra.mrb[28].mxu0 %v17586_v24 }
 0x897   :  { %14849 = vmatprep.mubr.f32.mxu0 %v6552_v30 }
 0x89a   :  { %14850 = vmatmul.mubr.f32.gmra.mrb[30].mxu0 %v6562_v16 }
 0x89b   :  { %14992 = vmatprep.mubr.msk.f32.mxu0 %vm16657_vm2, %v18327_v9 }
 0x969   :  { %v14848_v59 = vpop.f32.mrb[28].mxu0 }
 0x96a   :  { %v7078_v47 = vadd.f32 %v14848_v59, %v16743_v8  ;;  %v7055_v57 = vpop.f32.mrb[29].mxu0 }
 0x96b   :  { %v7077_v1 = vadd.f32 %v7055_v57, %v16745_v10 }
 0x96c   :  { %vm7082_vm6 = vcmp.gt.f32.partialorder %v7078_v47, 0.0  ;;  %v7086_v17 = vmul.f32 0.01, %v7078_v47 }
 0x96d   :  { %vm7081_vm7 = vcmp.gt.f32.partialorder %v7077_v1, 0.0  ;;  %v7085_v20 = vmul.f32 0.01, %v7077_v1  ;;  %v14851_v0 = vpop.f32.mrb[30].mxu0 }
 0x96e   :  { %v17618_v54 = vsel %vm7082_vm6, %v7078_v47, %v7086_v17  ;;  %v7080_v5 = vadd.f32 %v14851_v0, %v16753_v18  ;;  %v7067_v24 = vpop.f32.mrb[31].mxu0  ;;  %v7582_v17 = vld [vmem:[%s18303_s2 + $0x180] sm:$0xff] }
 0x96f   :  { %v7097_v27 = vand.u32 4294901760, %v17618_v54  ;;  %v17622_v25 = vsel %vm7081_vm7, %v7077_v1, %v7085_v20  ;;  %v7079_v4 = vadd.f32 %v7067_v24, %v16756_v21  ;;  %v7583_v20 = vld [vmem:[%s18303_s2 + $0x188] sm:$0xff]  ;;  %v7584_v24 = vld [vmem:[%s18303_s2 + $0x190] sm:$0xff] }
 0x970   :  { %v7094_v8 = vand.u32 4294901760, %v17622_v25  ;;  %vm7084_vm8 = vcmp.gt.f32.partialorder %v7080_v5, 0.0  ;;  %v7088_v15 = vmul.f32 0.01, %v7080_v5 }
 0x971   :  { %v7181_v10 = vsub.f32 %v17618_v54, %v7097_v27  ;;  %vm7083_vm12 = vcmp.gt.f32.partialorder %v7079_v4, 0.0  ;;  %v7087_v26 = vmul.f32 0.01, %v7079_v4 }
 0x972   :  { %v7174_v22 = vsub.f32 %v17622_v25, %v7094_v8  ;;  %v17628_v29 = vpack.c.bf16 %v7097_v27, %v7094_v8  ;;  %v17630_v18 = vsel %vm7084_vm8, %v7080_v5, %v7088_v15  ;;  %v7590_v5 = vand.u32 4294901760, %v7583_v20  ;;  %v7585_v27 = vld [vmem:[%s18303_s2 + $0x198] sm:$0xff] }
 0x973   :  { %v7182_v56 = vand.u32 4294901760, %v7181_v10  ;;  %v7103_v16 = vand.u32 4294901760, %v17630_v18  ;;  %v17633_v6 = vsel %vm7083_vm12, %v7079_v4, %v7087_v26  ;;  %v7596_v15 = vand.u32 4294901760, %v7585_v27 }
 0x974   :  { %15982 = vmatpush3.bf16.msra.mxu1 %v17628_v29  ;;  %v7175_v21 = vand.u32 4294901760, %v7174_v22  ;;  %v7100_v30 = vand.u32 4294901760, %v17633_v6  ;;  %v15993_v1 = vpack.c.bf16 %v7181_v10, %v7174_v22 }
 0x975   :  { %15983 = vmatprep.subr.bf16.mxu1 %v18326_v39  ;;  %v7183_v35 = vsub.f32 %v7181_v10, %v7182_v56  ;;  %v7195_v42 = vsub.f32 %v17630_v18, %v7103_v16  ;;  %v7593_v10 = vand.u32 4294901760, %v7584_v24  ;;  %v7688_v26 = vsub.f32 %v7585_v27, %v7596_v15 }
 0x976   :  { %v7176_v46 = vsub.f32 %v7174_v22, %v7175_v21  ;;  %v7188_v48 = vsub.f32 %v17633_v6, %v7100_v30  ;;  %v15984_v51 = vpack.c.bf16 %v7103_v16, %v7100_v30  ;;  %v16005_v0 = vpack.c.bf16 %v7182_v56, %v7175_v21 }
 0x977   :  { %v7184_v61 = vand.u32 4294901760, %v7183_v35  ;;  %v7196_v62 = vand.u32 4294901760, %v7195_v42  ;;  %v7681_v22 = vsub.f32 %v7584_v24, %v7593_v10 }
 0x978   :  { %v7177_v63 = vand.u32 4294901760, %v7176_v46  ;;  %15985 = vmatpush3.bf16.msra.mxu1 %v15984_v51  ;;  %v7189_v12 = vand.u32 4294901760, %v7188_v48  ;;  %v7689_v46 = vand.u32 4294901760, %v7688_v26 }
 0x979   :  { %15986 = vmatprep.subr.bf16.mxu1 %v18326_v39  ;;  %v7197_v60 = vsub.f32 %v7195_v42, %v7196_v62 }
 0x97a   :  { %v15987_v58 = vpack.c.bf16 %v7184_v61, %v7177_v63  ;;  %v7190_v19 = vsub.f32 %v7188_v48, %v7189_v12  ;;  %v16008_v4 = vpack.c.bf16 %v7196_v62, %v7189_v12  ;;  %v7690_v62 = vsub.f32 %v7688_v26, %v7689_v46 }
 0x97b   :  { %14861 = vmatmul.mubr.f32.vlgmr.msra.gmra.mrb[30].mxu1 %v16765_v32  ;;  %v7198_v59 = vand.u32 4294901760, %v7197_v60  ;;  %v15996_v32 = vpack.c.bf16 %v7195_v42, %v7188_v48  ;;  %v7682_v42 = vand.u32 4294901760, %v7681_v22 }
 0x97c   :  { %15988 = vmatpush3.bf16.msra.mxu1 %v15987_v58  ;;  %v7191_v47 = vand.u32 4294901760, %v7190_v19  ;;  %14871 = vmatprep.mubr.msk.f32.mxu1 %vm16657_vm2, %v18327_v9  ;;  %v7691_v58 = vand.u32 4294901760, %v7690_v62  ;;  %v16032_v19 = vpack.c.bf16 %v7688_v26, %v7681_v22 }
 0x97d   :  { %15989 = vmatprep.subr.bf16.mxu1 %v18326_v39  ;;  %v7683_v63 = vsub.f32 %v7681_v22, %v7682_v42 }
 0x97e   :  { %v15990_v57 = vpack.c.bf16 %v7198_v59, %v7191_v47  ;;  %v7579_v59 = vld [vmem:[%s18303_s2 + $0x168] sm:$0xff] }
 0x97f   :  { %v7684_v12 = vand.u32 4294901760, %v7683_v63 }
 0x980   :  { %15991 = vmatpush3.bf16.msra.mxu1 %v15990_v57  ;;  %v8078_v57 = vand.u32 4294901760, %v7579_v59 }
 0x981   :  { %15992 = vmatprep.subr.bf16.mxu1 %v18326_v39 }
 0x983   :  { %14872 = vmatmul.mubr.msk.f32.vlgmr.msra.gmra.mrb[30].mxu1 %vm670_vm15, %v16737_v55 }
 0x984   :  { %15994 = vmatpush3.bf16.msra.mxu1 %v15993_v1  ;;  %14882 = vmatprep.mubr.msk.f32.mxu1 %vm16657_vm2, %v18327_v9 }
 0x985   :  { %15995 = vmatprep.subr.bf16.mxu1 %v18326_v39 }
 0x988   :  { %15997 = vmatpush3.bf16.msra.mxu1 %v15996_v32 }
 0x989   :  { %15998 = vmatprep.subr.bf16.mxu1 %v18326_v39 }
 0x98b   :  { %14883 = vmatmul.mubr.f32.vlgmr.msra.gmra.mrb[30].mxu1 %v16741_v2  ;;  %v7587_v2 = vand.u32 4294901760, %v7582_v17 }
 0x98c   :  { %16000 = vmatpush3.bf16.msra.mxu1 %v17628_v29  ;;  %14893 = vmatprep.mubr.msk.f32.mxu1 %vm16657_vm2, %v18327_v9 }
 0x98d   :  { %16001 = vmatprep.subr.bf16.mxu1 %v18326_v39  ;;  %v7667_v8 = vsub.f32 %v7582_v17, %v7587_v2  ;;  %v16017_v21 = vpack.c.bf16 %v7590_v5, %v7587_v2  ;;  %v17710_v17 = vsub.f32 %v7579_v59, %v8078_v57 }
 0x98f   :  { %v7668_v56 = vand.u32 4294901760, %v7667_v8 }
 0x990   :  { %16003 = vmatpush3.bf16.msra.mxu1 %v15984_v51 }
 0x991   :  { %16004 = vmatprep.subr.bf16.mxu1 %v18326_v39  ;;  %v7669_v30 = vsub.f32 %v7667_v8, %v7668_v56 }
 0x993   :  { %14894 = vmatmul.mubr.f32.vlgmr.msra.gmra.mrb[30].mxu1 %v16749_v13  ;;  %v7674_v13 = vsub.f32 %v7583_v20, %v7590_v5  ;;  %v7670_v48 = vand.u32 4294901760, %v7669_v30 }
 0x994   :  { %16006 = vmatpush3.bf16.msra.mxu1 %v16005_v0  ;;  %14904 = vmatprep.mubr.msk.f32.mxu1 %vm16657_vm2, %v18327_v9  ;;  %v8163_v0 = vand.u32 4294901760, %v17710_v17 }
 0x995   :  { %16007 = vmatprep.subr.bf16.mxu1 %v18326_v39  ;;  %v7675_v16 = vand.u32 4294901760, %v7674_v13  ;;  %v16029_v60 = vpack.c.bf16 %v7674_v13, %v7667_v8  ;;  %v7581_v8 = vld [vmem:[%s18303_s2 + $0x178] sm:$0xff] }
 0x997   :  { %v7676_v35 = vsub.f32 %v7674_v13, %v7675_v16  ;;  %v16041_v1 = vpack.c.bf16 %v7675_v16, %v7668_v56 }
 0x998   :  { %16009 = vmatpush3.bf16.msra.mxu1 %v16008_v4  ;;  %v7580_v4 = vld [vmem:[%s18303_s2 + $0x170] sm:$0xff] }
 0x999   :  { %16010 = vmatprep.subr.bf16.mxu1 %v18326_v39  ;;  %v7677_v61 = vand.u32 4294901760, %v7676_v35  ;;  %v8081_v13 = vand.u32 4294901760, %v7580_v4 }
 0x99b   :  { %14905 = vmatmul.mubr.msk.f32.vlgmr.msra.gmra.mrb[30].mxu1 %vm670_vm15, %v16737_v55 }
 0x99c   :  { %16012 = vmatpush3.bf16.msra.mxu1 %v17628_v29  ;;  %14915 = vmatprep.mubr.msk.f32.mxu1 %vm16657_vm2, %v18327_v9  ;;  %v16020_v29 = vpack.c.bf16 %v7596_v15, %v7593_v10  ;;  %v8084_v10 = vand.u32 4294901760, %v7581_v8  ;;  %v8169_v15 = vsub.f32 %v7580_v4, %v8081_v13 }
 0x99d   :  { %16013 = vmatprep.subr.bf16.mxu1 %v18326_v39 }
 0x99e   :  { %v8176_v22 = vsub.f32 %v7581_v8, %v8084_v10  ;;  %v8170_v26 = vand.u32 4294901760, %v8169_v15 }
 0x9a0   :  { %16015 = vmatpush3.bf16.msra.mxu1 %v15984_v51  ;;  %v16023_v51 = vpack.c.bf16 %v7677_v61, %v7670_v48  ;;  %v8171_v56 = vsub.f32 %v8169_v15, %v8170_v26 }
 0x9a1   :  { %16016 = vmatprep.subr.bf16.mxu1 %v18326_v39 }
 0x9a3   :  { %14916 = vmatmul.mubr.msk.f32.vlgmr.msra.gmra.mrb[30].mxu1 %vm670_vm15, %v16737_v55  ;;  %v16026_v55 = vpack.c.bf16 %v7691_v58, %v7684_v12 }
 0x9a4   :  { %16018 = vmatpush3.bf16.msra.mxu1 %v16017_v21  ;;  %14926 = vmatprep.mubr.msk.f32.mxu1 %vm16657_vm2, %v18327_v9 }
 0x9a5   :  { %16019 = vmatprep.subr.bf16.mxu1 %v18326_v39 }
 0x9a8   :  { %16021 = vmatpush3.bf16.msra.mxu1 %v16020_v29 }
 0x9a9   :  { %16022 = vmatprep.subr.bf16.mxu1 %v18326_v39 }
 0x9ab   :  { %14927 = vmatmul.mubr.f32.vlgmr.msra.gmra.mrb[32].mxu1 %v17198_v43  ;;  %v7578_v43 = vld [vmem:[%s18303_s2 + $0x160] sm:$0xff] }
 0x9ac   :  { %16024 = vmatpush3.bf16.msra.mxu1 %v16023_v51  ;;  %14937 = vmatprep.mubr.msk.f32.mxu1 %vm16657_vm2, %v18327_v9  ;;  %v8075_v47 = vand.u32 4294901760, %v7578_v43 }
 0x9ad   :  { %16025 = vmatprep.subr.bf16.mxu1 %v18326_v39 }
 0x9ae   :  { %v17708_v32 = vsub.f32 %v7578_v43, %v8075_v47 }
 0x9b0   :  { %16027 = vmatpush3.bf16.msra.mxu1 %v16026_v55  ;;  %v8156_v20 = vand.u32 4294901760, %v17708_v32  ;;  %v16065_v43 = vpack.c.bf16 %v17710_v17, %v17708_v32 }
 0x9b1   :  { %16028 = vmatprep.subr.bf16.mxu1 %v18326_v39 }
 0x9b2   :  { %v8157_v2 = vsub.f32 %v17708_v32, %v8156_v20 }
 0x9b3   :  { %14938 = vmatmul.mubr.f32.vlgmr.msra.gmra.mrb[34].mxu1 %v17188_v31 }
 0x9b4   :  { %16030 = vmatpush3.bf16.msra.mxu1 %v16029_v60  ;;  %14948 = vmatprep.mubr.msk.f32.mxu1 %vm16657_vm2, %v18327_v9  ;;  %v8158_v5 = vand.u32 4294901760, %v8157_v2 }
 0x9b5   :  { %16031 = vmatprep.subr.bf16.mxu1 %v18326_v39 }
 0x9b8   :  { %16033 = vmatpush3.bf16.msra.mxu1 %v16032_v19 }
 0x9b9   :  { %16034 = vmatprep.subr.bf16.mxu1 %v18326_v39 }
 0x9bb   :  { %14949 = vmatmul.mubr.f32.vlgmr.msra.gmra.mrb[36].mxu1 %v17191_v33  ;;  %v16044_v33 = vpack.c.bf16 %v7689_v46, %v7682_v42  ;;  %v16053_v42 = vpack.c.bf16 %v8078_v57, %v8075_v47  ;;  %v16056_v46 = vpack.c.bf16 %v8084_v10, %v8081_v13  ;;  %v8567_v10 = vld [vmem:[%s18303_s2 + $0x1a0] sm:$0xff] }
 0x9bc   :  { %16036 = vmatpush3.bf16.msra.mxu1 %v16017_v21  ;;  %14959 = vmatprep.mubr.msk.f32.mxu1 %vm16657_vm2, %v18327_v9 }
 0x9bd   :  { %16037 = vmatprep.subr.bf16.mxu1 %v18326_v39  ;;  %16054 = vmatpush3.bf16.msra.mxu0 %v16053_v42 }
 0x9be   :  { %16055 = vmatprep.subr.bf16.mxu0 %v18326_v39 }
 0x9c0   :  { %16039 = vmatpush3.bf16.msra.mxu1 %v16020_v29 }
 0x9c1   :  { %16040 = vmatprep.subr.bf16.mxu1 %v18326_v39  ;;  %16057 = vmatpush3.bf16.msra.mxu0 %v16056_v46 }
 0x9c2   :  { %16064 = vmatprep.subr.bf16.mxu0 %v18326_v39 }
 0x9c3   :  { %14960 = vmatmul.mubr.f32.vlgmr.msra.gmra.mrb[38].mxu1 %v17194_v34  ;;  %v8164_v34 = vsub.f32 %v17710_v17, %v8163_v0 }
 0x9c4   :  { %16042 = vmatpush3.bf16.msra.mxu1 %v16041_v1  ;;  %14970 = vmatprep.mubr.msk.f32.mxu1 %vm16657_vm2, %v18327_v9 }
 0x9c5   :  { %16043 = vmatprep.subr.bf16.mxu1 %v18326_v39  ;;  %v8165_v24 = vand.u32 4294901760, %v8164_v34 }
 0x9c7   :  { %v16059_v27 = vpack.c.bf16 %v8165_v24, %v8158_v5 }
 0x9c8   :  { %16045 = vmatpush3.bf16.msra.mxu1 %v16044_v33  ;;  %v16077_v33 = vpack.c.bf16 %v8163_v0, %v8156_v20 }
 0x9c9   :  { %16046 = vmatprep.subr.bf16.mxu1 %v18326_v39 }
 0x9cb   :  { %14971 = vmatmul.mubr.f32.vlgmr.msra.gmra.mrb[40].mxu1 %v17188_v31 }
 0x9cc   :  { %16048 = vmatpush3.bf16.msra.mxu1 %v16017_v21  ;;  %14981 = vmatprep.mubr.msk.f32.mxu1 %vm16657_vm2, %v18327_v9  ;;  %v8172_v21 = vand.u32 4294901760, %v8171_v56 }
 0x9cd   :  { %16049 = vmatprep.subr.bf16.mxu1 %v18326_v39 }
 0x9d0   :  { %16051 = vmatpush3.bf16.msra.mxu1 %v16020_v29  ;;  %v16068_v29 = vpack.c.bf16 %v8176_v22, %v8169_v15  ;;  %v8568_v15 = vld [vmem:[%s18303_s2 + $0x1a8] sm:$0xff] }
 0x9d1   :  { %16058 = vmatprep.subr.bf16.mxu1 %v18326_v39 }
 0x9d3   :  { %14982 = vmatmul.mubr.f32.vlgmr.msra.gmra.mrb[42].mxu1 %v17188_v31  ;;  %v8177_v31 = vand.u32 4294901760, %v8176_v22 }
 0x9d4   :  { %16060 = vmatpush3.bf16.msra.mxu1 %v16059_v27  ;;  %15003 = vmatprep.mubr.msk.f32.mxu1 %vm16657_vm2, %v18327_v9 }
 0x9d5   :  { %16061 = vmatprep.subr.bf16.mxu1 %v18326_v39  ;;  %v8178_v16 = vsub.f32 %v8176_v22, %v8177_v31  ;;  %v16080_v48 = vpack.c.bf16 %v8177_v31, %v8170_v26  ;;  %v8579_v22 = vand.u32 4294901760, %v8567_v10  ;;  %v8582_v26 = vand.u32 4294901760, %v8568_v15 }
 0x9d7   :  { %v8179_v30 = vand.u32 4294901760, %v8178_v16  ;;  %v17777_v31 = vsub.f32 %v8567_v10, %v8579_v22  ;;  %v17779_v56 = vsub.f32 %v8568_v15, %v8582_v26  ;;  %v8569_v16 = vld [vmem:[%s18303_s2 + $0x1b0] sm:$0xff] }
 0x9d9   :  { %v16062_v35 = vpack.c.bf16 %v8179_v30, %v8172_v21  ;;  %v8570_v21 = vld [vmem:[%s18303_s2 + $0x1b8] sm:$0xff]  ;;  %v8660_v30 = vand.u32 4294901760, %v17777_v31 }
 0x9db   :  { %16063 = vmatpush3.bf16.msra.mxu1 %v16062_v35  ;;  %v8667_v35 = vand.u32 4294901760, %v17779_v56 }
 0x9dc   :  { %16070 = vmatprep.subr.bf16.mxu1 %v18326_v39 }
 0xa76   :  { %v7574_v61 = vpop.f32.mrb[30].mxu1 }
 0xa77   :  { %v8072_v63 = vsel %vm670_vm15, %v7574_v61, 0  ;;  %v14917_v62 = vpop.f32.mrb[31].mxu1 }
 0xa78   :  { %v8143_v51 = vand.u32 4294901760, %v8072_v63 }
 0xa7a   :  { %v8144_v12 = vsub.f32 %v8072_v63, %v8143_v51  ;;  %15004 = vmatmul.mubr.f32.vlgmr.msra.gmra.mrb[44].mxu1 %v8143_v51 }
 0xa7b   :  { %16072 = vmatpush3.bf16.msra.mxu1 %v16053_v42  ;;  %15025 = vmatprep.mubr.msk.f32.mxu1 %vm16657_vm2, %v18327_v9 }
 0xa7c   :  { %v8145_v58 = vand.u32 4294901760, %v8144_v12  ;;  %16073 = vmatprep.subr.bf16.mxu1 %v18326_v39 }
 0xa7e   :  { %v8146_v55 = vsub.f32 %v8144_v12, %v8145_v58  ;;  %v7661_v60 = vpop.f32.mrb[32].mxu1 }
 0xa7f   :  { %16075 = vmatpush3.bf16.msra.mxu1 %v16056_v46  ;;  %v14928_v19 = vpop.f32.mrb[33].mxu1 }
 0xa80   :  { %v8147_v59 = vand.u32 4294901760, %v8146_v55  ;;  %16082 = vmatprep.subr.bf16.mxu1 %v18326_v39 }
 0xa82   :  { %15026 = vmatmul.mubr.f32.vlgmr.msra.gmra.mrb[46].mxu1 %v8145_v58  ;;  %14993 = vmatmul.mubr.f32.vlgmr.msra.gmra.mrb[32].mxu0 %v8147_v59 }
 0xa83   :  { %16066 = vmatpush3.bf16.msra.mxu0 %v16065_v43  ;;  %16084 = vmatpush3.bf16.msra.mxu1 %v16053_v42  ;;  %v8585_v42 = vand.u32 4294901760, %v8569_v16 }
 0xa84   :  { %16067 = vmatprep.subr.bf16.mxu0 %v18326_v39  ;;  %16085 = vmatprep.subr.bf16.mxu1 %v18326_v39 }
 0xa85   :  { %15014 = vmatprep.mubr.msk.f32.mxu0 %vm16657_vm2, %v18327_v9  ;;  %15047 = vmatprep.mubr.msk.f32.mxu1 %vm16657_vm2, %v18327_v9  ;;  %v17791_v61 = vsub.f32 %v8569_v16, %v8585_v42 }
 0xa86   :  { %v7752_v47 = vpop.f32.mrb[34].mxu1 }
 0xa87   :  { %v7753_v57 = vadd.f32 %v7752_v47, %v7661_v60  ;;  %16069 = vmatpush3.bf16.msra.mxu0 %v16068_v29  ;;  %16087 = vmatpush3.bf16.msra.mxu1 %v16056_v46  ;;  %v14939_v1 = vpop.f32.mrb[35].mxu1  ;;  %v8588_v46 = vand.u32 4294901760, %v8570_v21  ;;  %v8661_v29 = vsub.f32 %v17777_v31, %v8660_v30 }
 0xa88   :  { %16076 = vmatprep.subr.bf16.mxu0 %v18326_v39  ;;  %16094 = vmatprep.subr.bf16.mxu1 %v18326_v39 }
 0xa89   :  { %v17793_v63 = vsub.f32 %v8570_v21, %v8588_v46  ;;  %v8662_v62 = vand.u32 4294901760, %v8661_v29  ;;  %v16092_v1 = vpack.c.bf16 %v8588_v46, %v8585_v42 }
 0xa8a   :  { %15015 = vmatmul.mubr.f32.vlgmr.msra.gmra.mrb[34].mxu0 %v8144_v12  ;;  %15048 = vmatmul.mubr.f32.vlgmr.msra.gmra.mrb[48].mxu1 %v8143_v51  ;;  %v8674_v12 = vand.u32 4294901760, %v17791_v61 }
 0xa8b   :  { %16078 = vmatpush3.bf16.msra.mxu0 %v16077_v33  ;;  %15036 = vmatprep.mubr.msk.f32.mxu0 %vm16657_vm2, %v18327_v9  ;;  %v8681_v58 = vand.u32 4294901760, %v17793_v63  ;;  %v16101_v33 = vpack.c.bf16 %v17779_v56, %v17777_v31  ;;  %v8561_v31 = vsub.s32 7, %v16700_v37 }
 0xa8c   :  { %16079 = vmatprep.subr.bf16.mxu0 %v18326_v39  ;;  %15069 = vmatprep.mubr.msk.f32.mxu1 %vm16657_vm2, %v18327_v9  ;;  %v8675_v60 = vsub.f32 %v17791_v61, %v8674_v12 }
 0xa8d   :  { %v8682_v19 = vsub.f32 %v17793_v63, %v8681_v58 }
 0xa8e   :  { %v7832_v2 = vpop.f32.mrb[36].mxu1  ;;  %v8676_v43 = vand.u32 4294901760, %v8675_v60  ;;  %v9067_v60 = vld [vmem:[%s18303_s2 + $0x1e0] sm:$0xff] }
 0xa8f   :  { %v7833_v32 = vadd.f32 %v7832_v2, %v7753_v57  ;;  %16081 = vmatpush3.bf16.msra.mxu0 %v16080_v48  ;;  %v14950_v17 = vpop.f32.mrb[37].mxu1  ;;  %v8668_v48 = vsub.f32 %v17779_v56, %v8667_v35  ;;  %v8683_v59 = vand.u32 4294901760, %v8682_v19  ;;  %v16089_v57 = vpack.c.bf16 %v8582_v26, %v8579_v22  ;;  %v9068_v19 = vld [vmem:[%s18303_s2 + $0x1e8] sm:$0xff] }
 0xa90   :  { %16088 = vmatprep.subr.bf16.mxu0 %v18326_v39  ;;  %v16104_v2 = vpack.c.bf16 %v17793_v63, %v17791_v61  ;;  %v16116_v17 = vpack.c.bf16 %v8681_v58, %v8674_v12 }
 0xa91   :  { %v16098_v47 = vpack.c.bf16 %v8683_v59, %v8676_v43  ;;  %v9079_v43 = vand.u32 4294901760, %v9067_v60  ;;  %v9082_v59 = vand.u32 4294901760, %v9068_v19 }
 0xa92   :  { %15037 = vmatmul.mubr.f32.vlgmr.msra.gmra.mrb[36].mxu0 %v8143_v51  ;;  %v8669_v51 = vand.u32 4294901760, %v8668_v48 }
 0xa93   :  { %15058 = vmatprep.mubr.msk.f32.mxu0 %vm16657_vm2, %v18327_v9  ;;  %16090 = vmatpush3.bf16.msra.mxu0 %v16089_v57 }
 0xa94   :  { %v16095_v55 = vpack.c.bf16 %v8669_v51, %v8662_v62  ;;  %16091 = vmatprep.subr.bf16.mxu0 %v18326_v39 }
 0xa96   :  { %v7909_v20 = vpop.f32.mrb[38].mxu1  ;;  %16096 = vmatpush3.bf16.msra.mxu1 %v16095_v55 }
 0xa97   :  { %v7910_v0 = vadd.f32 %v7909_v20, %v7833_v32  ;;  %v14961_v34 = vpop.f32.mrb[39].mxu1  ;;  %16097 = vmatprep.subr.bf16.mxu1 %v18326_v39  ;;  %16093 = vmatpush3.bf16.msra.mxu0 %v16092_v1  ;;  %v16113_v32 = vpack.c.bf16 %v8667_v35, %v8660_v30  ;;  %v16654_v30 = vld [vmem:[%s18303_s2 + $0x240] sm:$0xff] }
 0xa98   :  { %16100 = vmatprep.subr.bf16.mxu0 %v18326_v39  ;;  %v8562_v35 = vrot.slane %v16654_v30, %v8561_v31 }
 0xa9a   :  { %16099 = vmatpush3.bf16.msra.mxu1 %v16098_v47  ;;  %v17836_v47 = vpack.c.bf16 %v9082_v59, %v9079_v43 }
 0xa9b   :  { %16106 = vmatprep.subr.bf16.mxu1 %v18326_v39 }
 0xa9e   :  { %v7992_v5 = vpop.f32.mrb[40].mxu1 }
 0xa9f   :  { %v7993_v24 = vadd.f32 %v7992_v5, %v7910_v0  ;;  %v14972_v27 = vpop.f32.mrb[41].mxu1 }
 0xaa6   :  { %v8067_v4 = vpop.f32.mrb[42].mxu1 }
 0xaa7   :  { %v8068_v8 = vadd.f32 %v8067_v4, %v7993_v24  ;;  %v14983_v13 = vpop.f32.mrb[43].mxu1 }
 0xb4d   :  { %v8240_v20 = vpop.f32.mrb[44].mxu1 }
 0xb4e   :  { %v15005_v0 = vpop.f32.mrb[45].mxu1 }
 0xb55   :  { %v8397_v34 = vpop.f32.mrb[46].mxu1  ;;  %v8149_v5 = vpop.f32.mrb[32].mxu0 }
 0xb56   :  { %v8150_v24 = vadd.f32 %v8149_v5, %v8068_v8  ;;  %v15027_v27 = vpop.f32.mrb[47].mxu1  ;;  %v14994_v4 = vpop.f32.mrb[33].mxu0 }
 0xb58   :  { %v8241_v13 = vadd.f32 %v8240_v20, %v8150_v24 }
 0xb5d   :  { %v8320_v10 = vpop.f32.mrb[34].mxu0  ;;  %v8555_v15 = vpop.f32.mrb[48].mxu1 }
 0xb5e   :  { %v8321_v22 = vadd.f32 %v8320_v10, %v8241_v13  ;;  %v15016_v26 = vpop.f32.mrb[35].mxu0  ;;  %v15049_v16 = vpop.f32.mrb[49].mxu1 }
 0xb60   :  { %v8398_v21 = vadd.f32 %v8397_v34, %v8321_v22 }
 0xb65   :  { %v8480_v56 = vpop.f32.mrb[36].mxu0 }
 0xb66   :  { %v8481_v42 = vadd.f32 %v8480_v56, %v8398_v21  ;;  %v15038_v46 = vpop.f32.mrb[37].mxu0 }
 0xb68   :  { %v8556_v8 = vadd.f32 %v8555_v15, %v8481_v42 }
 0xb6a   :  { %v8563_v29 = vadd.f32 %v8562_v35, %v8556_v8 }
 0xb6c   :  { %vm8564_vm13 = vcmp.gt.f32.partialorder %v8563_v29, 0.0  ;;  %v8565_v48 = vmul.f32 0.01, %v8563_v29 }
 0xb6e   :  { %v8566_v61 = vsel %vm8564_vm13, %v8563_v29, %v8565_v48 }
 0xb6f   :  { %v8576_v63 = vsel %vm670_vm15, %v8566_v61, 0  ;;  %v17863_v61 = vld [vmem:[%s18303_s2 + $0x248] sm:$0xff] }
 0xb70   :  { %v8647_v62 = vand.u32 4294901760, %v8576_v63 }
 0xb72   :  { %v8648_v51 = vsub.f32 %v8576_v63, %v8647_v62  ;;  %15070 = vmatmul.mubr.f32.vlgmr.msra.gmra.mrb[50].mxu1 %v8647_v62  ;;  %v18328_v63 = vsub.s32 0, %v16700_v37 }
 0xb73   :  { %16108 = vmatpush3.bf16.msra.mxu1 %v16089_v57  ;;  %15091 = vmatprep.mubr.msk.f32.mxu1 %vm16657_vm2, %v18327_v9 }
 0xb74   :  { %16109 = vmatprep.subr.bf16.mxu1 %v18326_v39  ;;  %v8649_v12 = vand.u32 4294901760, %v8648_v51 }
 0xb76   :  { %v8650_v58 = vsub.f32 %v8648_v51, %v8649_v12 }
 0xb77   :  { %16111 = vmatpush3.bf16.msra.mxu1 %v16092_v1 }
 0xb78   :  { %16118 = vmatprep.subr.bf16.mxu1 %v18326_v39  ;;  %v8651_v55 = vand.u32 4294901760, %v8650_v58 }
 0xb7a   :  { %15092 = vmatmul.mubr.f32.vlgmr.msra.gmra.mrb[52].mxu1 %v8649_v12  ;;  %15059 = vmatmul.mubr.f32.vlgmr.msra.gmra.mrb[38].mxu0 %v8651_v55 }
 0xb7b   :  { %16102 = vmatpush3.bf16.msra.mxu0 %v16101_v33  ;;  %16120 = vmatpush3.bf16.msra.mxu1 %v16089_v57  ;;  %v17838_v57 = vsub.f32 %v9067_v60, %v9079_v43  ;;  %v9069_v33 = vld [vmem:[%s18303_s2 + $0x1f0] sm:$0xff] }
 0xb7c   :  { %16103 = vmatprep.subr.bf16.mxu0 %v18326_v39  ;;  %16121 = vmatprep.subr.bf16.mxu1 %v18326_v39 }
 0xb7d   :  { %15080 = vmatprep.mubr.msk.f32.mxu0 %vm16657_vm2, %v18327_v9  ;;  %15113 = vmatprep.mubr.msk.f32.mxu1 %vm16657_vm2, %v18327_v9  ;;  %v9160_v20 = vand.u32 4294901760, %v17838_v57 }
 0xb7f   :  { %16105 = vmatpush3.bf16.msra.mxu0 %v16104_v2  ;;  %16123 = vmatpush3.bf16.msra.mxu1 %v16092_v1  ;;  %v17840_v1 = vsub.f32 %v9068_v19, %v9082_v59  ;;  %v9070_v2 = vld [vmem:[%s18303_s2 + $0x1f8] sm:$0xff]  ;;  %v9161_v27 = vsub.f32 %v17838_v57, %v9160_v20 }
 0xb80   :  { %16112 = vmatprep.subr.bf16.mxu0 %v18326_v39 }
 0xb81   :  { %v9167_v0 = vand.u32 4294901760, %v17840_v1  ;;  %v9162_v13 = vand.u32 4294901760, %v9161_v27  ;;  %v16137_v30 = vpack.c.bf16 %v17840_v1, %v17838_v57 }
 0xb82   :  { %15081 = vmatmul.mubr.f32.vlgmr.msra.gmra.mrb[40].mxu0 %v8648_v51  ;;  %15114 = vmatmul.mubr.f32.vlgmr.msra.gmra.mrb[54].mxu1 %v8647_v62 }
 0xb83   :  { %16114 = vmatpush3.bf16.msra.mxu0 %v16113_v32  ;;  %15102 = vmatprep.mubr.msk.f32.mxu0 %vm16657_vm2, %v18327_v9  ;;  %v9085_v32 = vand.u32 4294901760, %v9069_v33  ;;  %v9168_v4 = vsub.f32 %v17840_v1, %v9167_v0  ;;  %v16149_v46 = vpack.c.bf16 %v9167_v0, %v9160_v20 }
 0xb84   :  { %16115 = vmatprep.subr.bf16.mxu0 %v18326_v39  ;;  %15184 = vmatprep.mubr.f32.mxu1 %v17287_v41 }
 0xb85   :  { %v9173_v5 = vsub.f32 %v9069_v33, %v9085_v32  ;;  %v9169_v10 = vand.u32 4294901760, %v9168_v4 }
 0xb87   :  { %16117 = vmatpush3.bf16.msra.mxu0 %v16116_v17  ;;  %v9088_v17 = vand.u32 4294901760, %v9070_v2  ;;  %v9174_v15 = vand.u32 4294901760, %v9173_v5  ;;  %v16131_v26 = vpack.c.bf16 %v9169_v10, %v9162_v13 }
 0xb88   :  { %16124 = vmatprep.subr.bf16.mxu0 %v18326_v39 }
 0xb89   :  { %v17852_v34 = vpack.c.bf16 %v9088_v17, %v9085_v32  ;;  %v9180_v24 = vsub.f32 %v9070_v2, %v9088_v17  ;;  %v9175_v16 = vsub.f32 %v9173_v5, %v9174_v15 }
 0xb8a   :  { %15103 = vmatmul.mubr.f32.vlgmr.msra.gmra.mrb[42].mxu0 %v8647_v62  ;;  %v8574_v62 = vrot.slane %v17863_v61, %v18328_v63 }
 0xb8b   :  { %15124 = vmatprep.mubr.msk.f32.mxu0 %vm16657_vm2, %v18327_v9  ;;  %16126 = vmatpush3.bf16.msra.mxu0 %v17836_v47  ;;  %v9181_v22 = vand.u32 4294901760, %v9180_v24  ;;  %v9176_v31 = vand.u32 4294901760, %v9175_v16  ;;  %v16140_v35 = vpack.c.bf16 %v9180_v24, %v9173_v5 }
 0xb8c   :  { %16127 = vmatprep.subr.bf16.mxu0 %v18326_v39 }
 0xb8d   :  { %v9182_v21 = vsub.f32 %v9180_v24, %v9181_v22  ;;  %v16152_v8 = vpack.c.bf16 %v9181_v22, %v9174_v15 }
 0xb8f   :  { %16129 = vmatpush3.bf16.msra.mxu0 %v17852_v34  ;;  %v9183_v56 = vand.u32 4294901760, %v9182_v21 }
 0xb90   :  { %16130 = vmatprep.subr.bf16.mxu0 %v18326_v39 }
 0xb91   :  { %v16134_v42 = vpack.c.bf16 %v9183_v56, %v9176_v31  ;;  %v10785_v56 = vld [vmem:[%s18303_s2 + $0x230] sm:$0xff] }
 0xc45   :  { %v8744_v29 = vpop.f32.mrb[50].mxu1 }
 0xc46   :  { %v15071_v48 = vpop.f32.mrb[51].mxu1 }
 0xc4d   :  { %v8901_v51 = vpop.f32.mrb[52].mxu1  ;;  %v8653_v12 = vpop.f32.mrb[38].mxu0 }
 0xc4e   :  { %v8654_v58 = vadd.f32 %v8653_v12, %v8574_v62  ;;  %v15093_v55 = vpop.f32.mrb[53].mxu1  ;;  %v15060_v60 = vpop.f32.mrb[39].mxu0 }
 0xc50   :  { %v8745_v19 = vadd.f32 %v8744_v29, %v8654_v58  ;;  %v10798_v29 = vand.u32 4294901760, %v10785_v56 }
 0xc52   :  { %v10886_v48 = vsub.f32 %v10785_v56, %v10798_v29  ;;  %v9566_v56 = vld [vmem:[%s18303_s2 + $0x1d8] sm:$0xff] }
 0xc54   :  { %v10887_v55 = vand.u32 4294901760, %v10886_v48 }
 0xc55   :  { %v8824_v43 = vpop.f32.mrb[40].mxu0  ;;  %v9059_v59 = vpop.f32.mrb[54].mxu1 }
 0xc56   :  { %v8825_v57 = vadd.f32 %v8824_v43, %v8745_v19  ;;  %v15082_v1 = vpop.f32.mrb[41].mxu0  ;;  %v15115_v33 = vpop.f32.mrb[55].mxu1 }
 0xc58   :  { %v8902_v2 = vadd.f32 %v8901_v51, %v8825_v57 }
 0xc5d   :  { %v8984_v32 = vpop.f32.mrb[42].mxu0 }
 0xc5e   :  { %v8985_v17 = vadd.f32 %v8984_v32, %v8902_v2  ;;  %v15104_v20 = vpop.f32.mrb[43].mxu0 }
 0xc60   :  { %v9060_v0 = vadd.f32 %v9059_v59, %v8985_v17  ;;  %v10888_v59 = vsub.f32 %v10886_v48, %v10887_v55 }
 0xc62   :  { %v9063_v5 = vadd.f32 %v9060_v0, %v17184_v28  ;;  %v10783_v28 = vld [vmem:[%s18303_s2 + $0x220] sm:$0xff]  ;;  %v10889_v1 = vand.u32 4294901760, %v10888_v59 }
 0xc63   :  { %v10792_v21 = vand.u32 4294901760, %v10783_v28 }
 0xc64   :  { %vm9064_vm14 = vcmp.gt.f32.partialorder %v9063_v5, 0.0  ;;  %v9065_v24 = vmul.f32 0.01, %v9063_v5 }
 0xc66   :  { %v9066_v27 = vsel %vm9064_vm14, %v9063_v5, %v9065_v24  ;;  %v18329_v5 = vsub.s32 1, %v16700_v37 }
 0xc67   :  { %v9076_v4 = vsel %vm670_vm15, %v9066_v27, 0 }
 0xc68   :  { %v17870_v13 = vand.u32 4294901760, %v9076_v4  ;;  %v9074_v24 = vrot.slane %v17863_v61, %v18329_v5 }
 0xc6a   :  { %v17873_v10 = vsub.f32 %v9076_v4, %v17870_v13 }
 0xc6c   :  { %v17876_v15 = vand.u32 4294901760, %v17873_v10 }
 0xc6e   :  { %v9150_v22 = vsub.f32 %v17873_v10, %v17876_v15 }
 0xc70   :  { %v17880_v16 = vand.u32 4294901760, %v9150_v22 }
 0xc72   :  { %15125 = vmatmul.mubr.f32.vlgmr.msra.gmra.mrb[44].mxu0 %v17880_v16 }
 0xc73   :  { %16132 = vmatpush3.bf16.msra.mxu0 %v16131_v26  ;;  %15135 = vmatprep.mubr.msk.f32.mxu0 %vm16657_vm2, %v18327_v9  ;;  %v10784_v26 = vld [vmem:[%s18303_s2 + $0x228] sm:$0xff] }
 0xc74   :  { %16133 = vmatprep.subr.bf16.mxu0 %v18326_v39  ;;  %v10795_v31 = vand.u32 4294901760, %v10784_v26 }
 0xc77   :  { %16135 = vmatpush3.bf16.msra.mxu0 %v16134_v42  ;;  %v10786_v42 = vld [vmem:[%s18303_s2 + $0x238] sm:$0xff] }
 0xc78   :  { %16136 = vmatprep.subr.bf16.mxu0 %v18326_v39 }
 0xc7a   :  { %15136 = vmatmul.mubr.f32.vlgmr.msra.gmra.mrb[44].mxu0 %v17870_v13 }
 0xc7b   :  { %16138 = vmatpush3.bf16.msra.mxu0 %v16137_v30  ;;  %15146 = vmatprep.mubr.msk.f32.mxu0 %vm16657_vm2, %v18327_v9  ;;  %v10872_v30 = vsub.f32 %v10783_v28, %v10792_v21  ;;  %v9564_v28 = vld [vmem:[%s18303_s2 + $0x1c8] sm:$0xff] }
 0xc7c   :  { %16139 = vmatprep.subr.bf16.mxu0 %v18326_v39 }
 0xc7d   :  { %v10873_v62 = vand.u32 4294901760, %v10872_v30 }
 0xc7f   :  { %16141 = vmatpush3.bf16.msra.mxu0 %v16140_v35  ;;  %v10879_v35 = vsub.f32 %v10784_v26, %v10795_v31  ;;  %v10874_v12 = vsub.f32 %v10872_v30, %v10873_v62 }
 0xc80   :  { %16142 = vmatprep.subr.bf16.mxu0 %v18326_v39 }
 0xc81   :  { %v10880_v51 = vand.u32 4294901760, %v10879_v35  ;;  %v10875_v19 = vand.u32 4294901760, %v10874_v12  ;;  %v16221_v32 = vpack.c.bf16 %v10879_v35, %v10872_v30  ;;  %v10149_v30 = vsel %vm670_vm15, %v17618_v54, 0 }
 0xc82   :  { %15147 = vmatmul.mubr.f32.vlgmr.msra.gmra.mrb[44].mxu0 %v17873_v10  ;;  %v10155_v12 = vsel %vm670_vm15, %v17630_v18, 0 }
 0xc83   :  { %16144 = vmatpush3.bf16.msra.mxu0 %v17836_v47  ;;  %15157 = vmatprep.mubr.msk.f32.mxu0 %vm16657_vm2, %v18327_v9  ;;  %v10881_v58 = vsub.f32 %v10879_v35, %v10880_v51  ;;  %v16233_v20 = vpack.c.bf16 %v10880_v51, %v10873_v62  ;;  %v10152_v62 = vsel %vm670_vm15, %v17633_v6, 0  ;;  %v18330_v51 = vld [vmem:[#allocation2_spill] sm:$0xff] }
 0xc84   :  { %16145 = vmatprep.subr.bf16.mxu0 %v18326_v39 }
 0xc85   :  { %v10882_v43 = vand.u32 4294901760, %v10881_v58 }
 0xc87   :  { %16147 = vmatpush3.bf16.msra.mxu0 %v17852_v34 }
 0xc88   :  { %16148 = vmatprep.subr.bf16.mxu0 %v18326_v39 }
 0xc8a   :  { %15158 = vmatmul.mubr.f32.vlgmr.msra.gmra.mrb[44].mxu0 %v17876_v15 }
 0xc8b   :  { %16150 = vmatpush3.bf16.msra.mxu0 %v16149_v46  ;;  %15168 = vmatprep.mubr.msk.f32.mxu0 %vm16657_vm2, %v18327_v9  ;;  %v10801_v46 = vand.u32 4294901760, %v10786_v42 }
 0xc8c   :  { %16151 = vmatprep.subr.bf16.mxu0 %v18326_v39 }
 0xc8d   :  { %v10893_v63 = vsub.f32 %v10786_v42, %v10801_v46  ;;  %v10146_v42 = vsel %vm670_vm15, %v17622_v25, 0 }
 0xc8f   :  { %16153 = vmatpush3.bf16.msra.mxu0 %v16152_v8  ;;  %v16209_v8 = vpack.c.bf16 %v10795_v31, %v10792_v21  ;;  %v10894_v60 = vand.u32 4294901760, %v10893_v63  ;;  %v16224_v17 = vpack.c.bf16 %v10893_v63, %v10886_v48  ;;  %v10161_v21 = vand.u32 4294901760, %v9564_v28  ;;  %v9565_v31 = vld [vmem:[%s18303_s2 + $0x1d0] sm:$0xff] }
 0xc90   :  { %16154 = vmatprep.subr.bf16.mxu0 %v18326_v39  ;;  %v10164_v35 = vand.u32 4294901760, %v9565_v31 }
 0xc91   :  { %v10895_v57 = vsub.f32 %v10893_v63, %v10894_v60  ;;  %v16236_v0 = vpack.c.bf16 %v10894_v60, %v10887_v55  ;;  %v17994_v48 = vsub.f32 %v9564_v28, %v10161_v21  ;;  %v17996_v63 = vand.u32 4294901760, %v10146_v42 }
 0xc92   :  { %15169 = vmatmul.mubr.f32.vlgmr.msra.gmra.mrb[44].mxu0 %v17870_v13 }
 0xc93   :  { %16156 = vmatpush3.bf16.msra.mxu0 %v17836_v47  ;;  %15179 = vmatprep.mubr.msk.f32.mxu0 %vm16657_vm2, %v18327_v9  ;;  %v16212_v47 = vpack.c.bf16 %v10801_v46, %v10798_v29  ;;  %v10896_v33 = vand.u32 4294901760, %v10895_v57  ;;  %v10167_v29 = vand.u32 4294901760, %v9566_v56  ;;  %v10276_v60 = vand.u32 4294901760, %v17994_v48 }
 0xc94   :  { %16157 = vmatprep.subr.bf16.mxu0 %v18326_v39  ;;  %v18018_v59 = vsub.f32 %v10146_v42, %v17996_v63 }
 0xc95   :  { %v16218_v2 = vpack.c.bf16 %v10896_v33, %v10889_v1  ;;  %v10789_v1 = vsub.s32 2, %v16700_v37 }
 0xc97   :  { %16159 = vmatpush3.bf16.msra.mxu0 %v17852_v34  ;;  %v16215_v34 = vpack.c.bf16 %v10882_v43, %v10875_v19  ;;  %v18013_v19 = vsub.f32 %v9566_v56, %v10167_v29  ;;  %v18015_v43 = vand.u32 4294901760, %v10152_v62  ;;  %v10790_v5 = vrot.slane %v17863_v61, %v10789_v1 }
 0xc98   :  { %16208 = vmatprep.subr.bf16.mxu0 %v18326_v39 }
 0xc9a   :  { %15180 = vmatmul.mubr.f32.vlgmr.msra.gmra.mrb[44].mxu0 %v17870_v13 }
 0xc9b   :  { %16210 = vmatpush3.bf16.msra.mxu0 %v16209_v8  ;;  %15322 = vmatprep.mubr.msk.f32.mxu0 %vm16657_vm2, %v18327_v9 }
 0xc9c   :  { %16211 = vmatprep.subr.bf16.mxu0 %v18326_v39 }
 0xc9f   :  { %16213 = vmatpush3.bf16.msra.mxu0 %v16212_v47 }
 0xca0   :  { %16214 = vmatprep.subr.bf16.mxu0 %v18326_v39 }
 0xca2   :  { %15323 = vmatmul.mubr.f32.vlgmr.msra.gmra.mrb[46].mxu0 %v17880_v16 }
 0xca3   :  { %16216 = vmatpush3.bf16.msra.mxu0 %v16215_v34  ;;  %15333 = vmatprep.mubr.msk.f32.mxu0 %vm16657_vm2, %v18327_v9  ;;  %v18025_v34 = vand.u32 4294901760, %v10155_v12 }
 0xca4   :  { %16217 = vmatprep.subr.bf16.mxu0 %v18326_v39 }
 0xca7   :  { %16219 = vmatpush3.bf16.msra.mxu0 %v16218_v2  ;;  %v10277_v2 = vsub.f32 %v17994_v48, %v10276_v60 }
 0xca8   :  { %16220 = vmatprep.subr.bf16.mxu0 %v18326_v39 }
 0xcaa   :  { %15334 = vmatmul.mubr.f32.vlgmr.msra.gmra.mrb[46].mxu0 %v17870_v13 }
 0xcab   :  { %16222 = vmatpush3.bf16.msra.mxu0 %v16221_v32  ;;  %15344 = vmatprep.mubr.msk.f32.mxu0 %vm16657_vm2, %v18327_v9 }
 0xcac   :  { %16223 = vmatprep.subr.bf16.mxu0 %v18326_v39 }
 0xcaf   :  { %16225 = vmatpush3.bf16.msra.mxu0 %v16224_v17  ;;  %v10290_v17 = vand.u32 4294901760, %v18013_v19 }
 0xcb0   :  { %16226 = vmatprep.subr.bf16.mxu0 %v18326_v39 }
 0xcb2   :  { %15345 = vmatmul.mubr.f32.vlgmr.msra.gmra.mrb[46].mxu0 %v17873_v10 }
 0xcb3   :  { %16228 = vmatpush3.bf16.msra.mxu0 %v16209_v8  ;;  %15355 = vmatprep.mubr.msk.f32.mxu0 %vm16657_vm2, %v18327_v9 }
 0xcb4   :  { %16229 = vmatprep.subr.bf16.mxu0 %v18326_v39 }
 0xcb7   :  { %16231 = vmatpush3.bf16.msra.mxu0 %v16212_v47 }
 0xcb8   :  { %16232 = vmatprep.subr.bf16.mxu0 %v18326_v39 }
 0xcba   :  { %15356 = vmatmul.mubr.f32.vlgmr.msra.gmra.mrb[46].mxu0 %v17876_v15 }
 0xcbb   :  { %16234 = vmatpush3.bf16.msra.mxu0 %v16233_v20  ;;  %15366 = vmatprep.mubr.msk.f32.mxu0 %vm16657_vm2, %v18327_v9  ;;  %v10228_v20 = vand.u32 4294901760, %v18018_v59 }
 0xcbc   :  { %16235 = vmatprep.subr.bf16.mxu0 %v18326_v39 }
 0xcbd   :  { %v10229_v61 = vsub.f32 %v18018_v59, %v10228_v20 }
 0xcbf   :  { %16237 = vmatpush3.bf16.msra.mxu0 %v16236_v0  ;;  %v18041_v0 = vsub.f32 %v10152_v62, %v18015_v43 }
 0xcc0   :  { %16238 = vmatprep.subr.bf16.mxu0 %v18326_v39 }
 0xcc2   :  { %15367 = vmatmul.mubr.f32.vlgmr.msra.gmra.mrb[46].mxu0 %v17870_v13 }
 0xcc3   :  { %16240 = vmatpush3.bf16.msra.mxu0 %v16209_v8  ;;  %15377 = vmatprep.mubr.msk.f32.mxu0 %vm16657_vm2, %v18327_v9  ;;  %v18001_v8 = vand.u32 4294901760, %v10149_v30 }
 0xcc4   :  { %16241 = vmatprep.subr.bf16.mxu0 %v18326_v39 }
 0xcc5   :  { %v18023_v57 = vsub.f32 %v10149_v30, %v18001_v8  ;;  %v10230_v30 = vand.u32 4294901760, %v10229_v61 }
 0xcc7   :  { %16243 = vmatpush3.bf16.msra.mxu0 %v16212_v47  ;;  %v18011_v47 = vsub.f32 %v9565_v31, %v10164_v35 }
 0xcc9   :  { %v10283_v32 = vand.u32 4294901760, %v18011_v47 }
 0xcca   :  { %15378 = vmatmul.mubr.f32.vlgmr.msra.gmra.mrb[46].mxu0 %v17870_v13  ;;  %v9563_v13 = vld [vmem:[%s18303_s2 + $0x1c0] sm:$0xff] }
 0xccb   :  { %15382 = vmatprep.mubr.f32.mxu0 %v17287_v41  ;;  %v10158_v26 = vand.u32 4294901760, %v9563_v13 }
 0xccd   :  { %v17992_v46 = vsub.f32 %v9563_v13, %v10158_v26  ;;  %v18007_v58 = vpack.c.bf16 %v10161_v21, %v10158_v26 }
 0xccf   :  { %v10269_v55 = vand.u32 4294901760, %v17992_v46 }
 0xcd1   :  { %v10270_v33 = vsub.f32 %v17992_v46, %v10269_v55 }
 0xd6d   :  { %v9559_v27 = vpop.f32.mrb[44].mxu0 }
 0xd6e   :  { %v16352_v4 = vadd.f32 %v9559_v27, %v9074_v24  ;;  %v15181_v10 = vpop.f32.mrb[45].mxu0  ;;  %v18050_v24 = vpack.c.bf16 %v10167_v29, %v10164_v35  ;;  %v10238_v27 = vand.u32 4294901760, %v18023_v57 }
 0xd6f   :  { %v10271_v10 = vand.u32 4294901760, %v10270_v33 }
 0xd70   :  { %v9568_v15 = vsel %vm4159_vm9, %v16352_v4, 0  ;;  %v18054_v4 = vsub.f32 %v10155_v12, %v18025_v34  ;;  %v10239_v28 = vsub.f32 %v18023_v57, %v10238_v27 }
 0xd71   :  { %v9571_v22 = vand.u32 4294901760, %v9568_v15 }
 0xd72   :  { %v10258_v21 = vand.u32 4294901760, %v18054_v4  ;;  %v10240_v12 = vand.u32 4294901760, %v10239_v28 }
 0xd73   :  { %v9678_v16 = vsub.f32 %v9568_v15, %v9571_v22  ;;  %15182 = vmatprep.subr.mxu1 %v9571_v22  ;;  %v10278_v15 = vand.u32 4294901760, %v10277_v2 }
 0xd74   :  { %15183 = vmatpush3.msra.mxu1 %v9571_v22  ;;  %v10259_v33 = vsub.f32 %v18054_v4, %v10258_v21 }
 0xd75   :  { %15185 = vmatmul.mubr.f32.vlgmr.msra.gmra.mrb[56].mxu1 %v17334_v23  ;;  %v9679_v39 = vand.u32 4294901760, %v9678_v16  ;;  %v16168_v26 = vpack.c.bf16 %v10278_v15, %v10271_v10 }
 0xd76   :  { %15187 = vmatprep.mubr.f32.mxu1 %v17338_v3  ;;  %v10260_v15 = vand.u32 4294901760, %v10259_v33 }
 0xd77   :  { %v9680_v9 = vsub.f32 %v9678_v16, %v9679_v39 }
 0xd79   :  { %15188 = vmatmul.mubr.f32.gmra.mrb[58].mxu1 %v17341_v14  ;;  %v9681_v41 = vand.u32 4294901760, %v9680_v9 }
 0xd7a   :  { %15192 = vmatprep.mubr.msk.f32.mxu1 %vm4146_vm3, %v17276_v7 }
 0xd7b   :  { %15190 = vmatprep.subr.mxu1 %v9681_v41 }
 0xd7c   :  { %15191 = vmatpush3.msra.mxu1 %v9681_v41 }
 0xd7d   :  { %15193 = vmatmul.mubr.msk.f32.vlgmr.msra.gmra.mrb[56].mxu1 %vm4146_vm3, %v17294_v45  ;;  %15198 = vmatprep.subr.mxu1 %v9678_v16 }
 0xd7e   :  { %15199 = vmatpush3.msra.mxu1 %v9678_v16  ;;  %15195 = vmatprep.mubr.msk.f32.mxu1 %vm4146_vm3, %v17299_v36  ;;  %v10291_v16 = vsub.f32 %v18013_v19, %v10290_v17 }
 0xd7f   :  { %15206 = vmatprep.subr.mxu1 %v9571_v22 }
 0xd80   :  { %v10292_v56 = vand.u32 4294901760, %v10291_v16  ;;  %v16176_v16 = vpack.c.bf16 %v17994_v48, %v17992_v46 }
 0xd81   :  { %15196 = vmatmul.mubr.msk.f32.gmra.mrb[58].mxu1 %vm4146_vm3, %v17306_v40 }
 0xd82   :  { %15200 = vmatprep.mubr.f32.mxu1 %v17280_v11 }
 0xd85   :  { %15201 = vmatmul.mubr.f32.vlgmr.msra.gmra.mrb[56].mxu1 %v17310_v44 }
 0xd86   :  { %15207 = vmatpush3.msra.mxu1 %v9571_v22  ;;  %15203 = vmatprep.mubr.f32.mxu1 %v17313_v49 }
 0xd87   :  { %15214 = vmatprep.subr.mxu1 %v9679_v39 }
 0xd89   :  { %15204 = vmatmul.mubr.f32.gmra.mrb[58].mxu1 %v17320_v52 }
 0xd8a   :  { %15208 = vmatprep.mubr.f32.mxu1 %v17283_v38 }
 0xd8d   :  { %15209 = vmatmul.mubr.f32.vlgmr.msra.gmra.mrb[56].mxu1 %v17318_v50 }
 0xd8e   :  { %15215 = vmatpush3.msra.mxu1 %v9679_v39  ;;  %15211 = vmatprep.mubr.f32.mxu1 %v17324_v53  ;;  %v10248_v39 = vand.u32 4294901760, %v18041_v0 }
 0xd8f   :  { %15222 = vmatprep.subr.mxu1 %v9571_v22 }
 0xd90   :  { %v10249_v35 = vsub.f32 %v18041_v0, %v10248_v39 }
 0xd91   :  { %15212 = vmatmul.mubr.f32.gmra.mrb[58].mxu1 %v18330_v51 }
 0xd92   :  { %15216 = vmatprep.mubr.msk.f32.mxu1 %vm4146_vm3, %v17276_v7 }
 0xd95   :  { %15217 = vmatmul.mubr.msk.f32.vlgmr.msra.gmra.mrb[56].mxu1 %vm4146_vm3, %v17294_v45 }
 0xd96   :  { %15223 = vmatpush3.msra.mxu1 %v9571_v22  ;;  %15219 = vmatprep.mubr.msk.f32.mxu1 %vm4146_vm3, %v17299_v36  ;;  %v10284_v22 = vsub.f32 %v18011_v47, %v10283_v32 }
 0xd97   :  { %16161 = vmatprep.subr.bf16.mxu1 %v18007_v58 }
 0xd98   :  { %v10285_v31 = vand.u32 4294901760, %v10284_v22 }
 0xd99   :  { %15220 = vmatmul.mubr.msk.f32.gmra.mrb[58].mxu1 %vm4146_vm3, %v17306_v40 }
 0xd9a   :  { %15224 = vmatprep.mubr.msk.f32.mxu1 %vm4146_vm3, %v17276_v7  ;;  %v16172_v2 = vpack.c.bf16 %v10292_v56, %v10285_v31 }
 0xd9d   :  { %v11272_v9 = vpop.f32.mrb[46].mxu0  ;;  %15225 = vmatmul.mubr.msk.f32.vlgmr.msra.gmra.mrb[56].mxu1 %vm4146_vm3, %v17294_v45 }
 0xd9e   :  { %v16353_v41 = vadd.f32 %v11272_v9, %v10790_v5  ;;  %v15379_v13 = vpop.f32.mrb[47].mxu0  ;;  %16163 = vmatpush3.bf16.msra.mxu1 %v18007_v58  ;;  %15227 = vmatprep.mubr.msk.f32.mxu1 %vm4146_vm3, %v17299_v36  ;;  %v10250_v5 = vand.u32 4294901760, %v10249_v35 }
 0xd9f   :  { %16165 = vmatprep.subr.bf16.mxu1 %v18050_v24 }
 0xda0   :  { %v11281_v42 = vsel %vm4159_vm9, %v16353_v41, 0 }
 0xda1   :  { %v18080_v29 = vand.u32 4294901760, %v11281_v42  ;;  %15228 = vmatmul.mubr.msk.f32.gmra.mrb[58].mxu1 %vm4146_vm3, %v17306_v40 }
 0xda2   :  { %16167 = vmatpush3.bf16.msra.mxu1 %v18050_v24  ;;  %15238 = vmatprep.mubr.f32.mxu1 %v10230_v30 }
 0xda3   :  { %v11391_v62 = vsub.f32 %v11281_v42, %v18080_v29  ;;  %15380 = vmatprep.subr.mxu0 %v18080_v29  ;;  %16169 = vmatprep.subr.bf16.mxu1 %v16168_v26 }
 0xda4   :  { %15381 = vmatpush3.msra.mxu0 %v18080_v29 }
 0xda5   :  { %15383 = vmatmul.mubr.f32.vlgmr.msra.gmra.mrb[48].mxu0 %v17334_v23  ;;  %15239 = vmatmul.mubr.f32.vlgmr.msra.gmra.mrb[56].mxu1 %v10240_v12  ;;  %v11392_v10 = vand.u32 4294901760, %v11391_v62  ;;  %v16180_v23 = vpack.c.bf16 %v18013_v19, %v18011_v47 }
 0xda6   :  { %15241 = vmatprep.mubr.f32.mxu1 %v10250_v5  ;;  %16171 = vmatpush3.bf16.msra.mxu1 %v16168_v26 }
 0xda7   :  { %15385 = vmatprep.mubr.f32.mxu0 %v17338_v3  ;;  %16173 = vmatprep.subr.bf16.mxu1 %v16172_v2  ;;  %v11393_v22 = vsub.f32 %v11391_v62, %v11392_v10 }
 0xda9   :  { %15386 = vmatmul.mubr.f32.gmra.mrb[50].mxu0 %v17341_v14  ;;  %15242 = vmatmul.mubr.f32.gmra.mrb[58].mxu1 %v10260_v15  ;;  %v11394_v61 = vand.u32 4294901760, %v11393_v22 }
 0xdaa   :  { %16175 = vmatpush3.bf16.msra.mxu1 %v16172_v2  ;;  %15252 = vmatprep.mubr.f32.mxu1 %v17996_v63 }
 0xdab   :  { %15388 = vmatprep.subr.mxu0 %v11394_v61  ;;  %15390 = vmatprep.mubr.msk.f32.mxu0 %vm4146_vm3, %v17276_v7 }
 0xdac   :  { %15389 = vmatpush3.msra.mxu0 %v11394_v61  ;;  %16177 = vmatprep.subr.bf16.mxu1 %v16176_v16 }
 0xdad   :  { %15391 = vmatmul.mubr.msk.f32.vlgmr.msra.gmra.mrb[48].mxu0 %vm4146_vm3, %v17294_v45  ;;  %15396 = vmatprep.subr.mxu0 %v11391_v62 }
 0xdae   :  { %15253 = vmatmul.mubr.f32.vlgmr.msra.gmra.mrb[56].mxu1 %v18001_v8  ;;  %15397 = vmatpush3.msra.mxu0 %v11391_v62 }
 0xdaf   :  { %15255 = vmatprep.mubr.f32.mxu1 %v18015_v43  ;;  %16179 = vmatpush3.bf16.msra.mxu1 %v16176_v16 }
 0xdb0   :  { %15404 = vmatprep.subr.mxu0 %v18080_v29  ;;  %15393 = vmatprep.mubr.msk.f32.mxu0 %vm4146_vm3, %v17299_v36 }
 0xdb1   :  { %15394 = vmatmul.mubr.msk.f32.gmra.mrb[50].mxu0 %vm4146_vm3, %v17306_v40  ;;  %16181 = vmatprep.subr.bf16.mxu1 %v16180_v23 }
 0xdb2   :  { %15256 = vmatmul.mubr.f32.gmra.mrb[58].mxu1 %v18025_v34  ;;  %15398 = vmatprep.mubr.f32.mxu0 %v17280_v11  ;;  %v16192_v11 = vpack.c.bf16 %v10276_v60, %v10269_v55 }
 0xdb3   :  { %16183 = vmatpush3.bf16.msra.mxu1 %v16180_v23  ;;  %15266 = vmatprep.mubr.f32.mxu1 %v18018_v59 }
 0xdb4   :  { %16185 = vmatprep.subr.bf16.mxu1 %v18007_v58 }
 0xdb5   :  { %15399 = vmatmul.mubr.f32.vlgmr.msra.gmra.mrb[48].mxu0 %v17310_v44  ;;  %v16196_v44 = vpack.c.bf16 %v10290_v17, %v10283_v32 }
 0xdb6   :  { %15405 = vmatpush3.msra.mxu0 %v18080_v29  ;;  %15267 = vmatmul.mubr.f32.vlgmr.msra.gmra.mrb[56].mxu1 %v18023_v57 }
 0xdb7   :  { %15412 = vmatprep.subr.mxu0 %v11392_v10  ;;  %15269 = vmatprep.mubr.f32.mxu1 %v18041_v0 }
 0xdb8   :  { %16187 = vmatpush3.bf16.msra.mxu1 %v18007_v58  ;;  %15401 = vmatprep.mubr.f32.mxu0 %v17313_v49 }
 0xdb9   :  { %15402 = vmatmul.mubr.f32.gmra.mrb[50].mxu0 %v17320_v52  ;;  %16189 = vmatprep.subr.bf16.mxu1 %v18050_v24 }
 0xdba   :  { %15270 = vmatmul.mubr.f32.gmra.mrb[58].mxu1 %v18054_v4  ;;  %15406 = vmatprep.mubr.f32.mxu0 %v17283_v38  ;;  %v11277_v38 = vld [vmem:[%s18303_s2 + $0x208] sm:$0xff] }
 0xdbb   :  { %15280 = vmatprep.mubr.f32.mxu1 %v10228_v20  ;;  %v11874_v49 = vand.u32 4294901760, %v11277_v38 }
 0xdbc   :  { %16191 = vmatpush3.bf16.msra.mxu1 %v18050_v24 }
 0xdbd   :  { %15407 = vmatmul.mubr.f32.vlgmr.msra.gmra.mrb[48].mxu0 %v17318_v50  ;;  %16193 = vmatprep.subr.bf16.mxu1 %v16192_v11  ;;  %v11988_v52 = vsub.f32 %v11277_v38, %v11874_v49 }
 0xdbe   :  { %15413 = vmatpush3.msra.mxu0 %v11392_v10  ;;  %15409 = vmatprep.mubr.f32.mxu0 %v17324_v53  ;;  %v11279_v53 = vld [vmem:[%s18303_s2 + $0x218] sm:$0xff] }
 0xdbf   :  { %15281 = vmatmul.mubr.f32.vlgmr.msra.gmra.mrb[56].mxu1 %v10238_v27  ;;  %15420 = vmatprep.subr.mxu0 %v18080_v29  ;;  %v11880_v14 = vand.u32 4294901760, %v11279_v53  ;;  %v11989_v48 = vand.u32 4294901760, %v11988_v52 }
 0xdc0   :  { %15283 = vmatprep.mubr.f32.mxu1 %v10248_v39  ;;  %16195 = vmatpush3.bf16.msra.mxu1 %v16192_v11 }
 0xdc1   :  { %15410 = vmatmul.mubr.f32.gmra.mrb[50].mxu0 %v18330_v51  ;;  %16197 = vmatprep.subr.bf16.mxu1 %v16196_v44  ;;  %v12002_v55 = vsub.f32 %v11279_v53, %v11880_v14 }
 0xdc2   :  { %15414 = vmatprep.mubr.msk.f32.mxu0 %vm4146_vm3, %v17276_v7 }
 0xdc3   :  { %15284 = vmatmul.mubr.f32.gmra.mrb[58].mxu1 %v10258_v21 }
 0xdc4   :  { %16199 = vmatpush3.bf16.msra.mxu1 %v16196_v44  ;;  %15294 = vmatprep.mubr.f32.mxu1 %v17996_v63 }
 0xdc5   :  { %15415 = vmatmul.mubr.msk.f32.vlgmr.msra.gmra.mrb[48].mxu0 %vm4146_vm3, %v17294_v45  ;;  %16201 = vmatprep.subr.bf16.mxu1 %v18007_v58 }
 0xdc6   :  { %15421 = vmatpush3.msra.mxu0 %v18080_v29  ;;  %15417 = vmatprep.mubr.msk.f32.mxu0 %vm4146_vm3, %v17299_v36 }
 0xdc7   :  { %15295 = vmatmul.mubr.f32.vlgmr.msra.gmra.mrb[56].mxu1 %v18001_v8 }
 0xdc8   :  { %15297 = vmatprep.mubr.f32.mxu1 %v18015_v43  ;;  %16203 = vmatpush3.bf16.msra.mxu1 %v18007_v58 }
 0xdc9   :  { %16205 = vmatprep.subr.bf16.mxu1 %v18050_v24  ;;  %15418 = vmatmul.mubr.msk.f32.gmra.mrb[50].mxu0 %vm4146_vm3, %v17306_v40 }
 0xdca   :  { %15422 = vmatprep.mubr.msk.f32.mxu0 %vm4146_vm3, %v17276_v7  ;;  %v11276_v7 = vld [vmem:[%s18303_s2 + $0x200] sm:$0xff] }
 0xdcb   :  { %15298 = vmatmul.mubr.f32.gmra.mrb[58].mxu1 %v18025_v34 }
 0xdcc   :  { %16207 = vmatpush3.bf16.msra.mxu1 %v18050_v24  ;;  %15308 = vmatprep.mubr.f32.mxu1 %v17996_v63 }
 0xdcd   :  { %15423 = vmatmul.mubr.msk.f32.vlgmr.msra.gmra.mrb[48].mxu0 %vm4146_vm3, %v17294_v45  ;;  %v11871_v45 = vand.u32 4294901760, %v11276_v7 }
 0xdce   :  { %15425 = vmatprep.mubr.msk.f32.mxu0 %vm4146_vm3, %v17299_v36 }
 0xdcf   :  { %15309 = vmatmul.mubr.f32.vlgmr.msra.gmra.mrb[56].mxu1 %v18001_v8  ;;  %v18180_v36 = vpack.c.bf16 %v11874_v49, %v11871_v45  ;;  %v11981_v50 = vsub.f32 %v11276_v7, %v11871_v45  ;;  %v11990_v8 = vsub.f32 %v11988_v52, %v11989_v48 }
 0xdd0   :  { %15311 = vmatprep.mubr.f32.mxu1 %v18015_v43  ;;  %v12003_v43 = vand.u32 4294901760, %v12002_v55 }
 0xdd1   :  { %15426 = vmatmul.mubr.msk.f32.gmra.mrb[50].mxu0 %vm4146_vm3, %v17306_v40  ;;  %v11278_v40 = vld [vmem:[%s18303_s2 + $0x210] sm:$0xff]  ;;  %16245 = vmatprep.subr.bf16.mxu0 %v18180_v36  ;;  %v11982_v46 = vand.u32 4294901760, %v11981_v50  ;;  %v11991_v47 = vand.u32 4294901760, %v11990_v8  ;;  %v16260_v0 = vpack.c.bf16 %v11988_v52, %v11981_v50 }
 0xdd2   :  { %v11877_v3 = vand.u32 4294901760, %v11278_v40  ;;  %16247 = vmatpush3.bf16.msra.mxu0 %v18180_v36 }
 0xdd3   :  { %15312 = vmatmul.mubr.f32.gmra.mrb[58].mxu1 %v18025_v34  ;;  %v11983_v51 = vsub.f32 %v11981_v50, %v11982_v46  ;;  %v12004_v34 = vsub.f32 %v12002_v55, %v12003_v43  ;;  %v18194_v27 = vpack.c.bf16 %v11989_v48, %v11982_v46  ;;  %v12500_v46 = vld [vmem:[%s18303_s2 + $0x60] sm:$0xff]  ;;  %v12501_v48 = vld [vmem:[%s18303_s2 + $0x68] sm:$0xff] }
 0xdd4   :  { %v18190_v63 = vpack.c.bf16 %v11880_v14, %v11877_v3  ;;  %v11995_v58 = vsub.f32 %v11278_v40, %v11877_v3 }
 0xdd5   :  { %v11984_v60 = vand.u32 4294901760, %v11983_v51  ;;  %v12005_v17 = vand.u32 4294901760, %v12004_v34  ;;  %v12524_v51 = vand.u32 4294901760, %v12501_v48 }
 0xdd6   :  { %16249 = vmatprep.subr.bf16.mxu0 %v18190_v63  ;;  %v11996_v19 = vand.u32 4294901760, %v11995_v58  ;;  %v16264_v24 = vpack.c.bf16 %v12002_v55, %v11995_v58  ;;  %v12502_v55 = vld [vmem:[%s18303_s2 + $0x70] sm:$0xff] }
 0xdd7   :  { %16251 = vmatpush3.bf16.msra.mxu0 %v18190_v63  ;;  %v16252_v59 = vpack.c.bf16 %v11991_v47, %v11984_v60  ;;  %v12503_v60 = vld [vmem:[%s18303_s2 + $0x78] sm:$0xff]  ;;  %v12527_v47 = vand.u32 4294901760, %v12502_v55 }
 0xdd8   :  { %v11997_v57 = vsub.f32 %v11995_v58, %v11996_v19  ;;  %v18196_v4 = vpack.c.bf16 %v12003_v43, %v11996_v19  ;;  %v12530_v19 = vand.u32 4294901760, %v12503_v60 }
 0xdd9   :  { %16253 = vmatprep.subr.bf16.mxu0 %v16252_v59 }
 0xdda   :  { %v11998_v32 = vand.u32 4294901760, %v11997_v57  ;;  %v18242_v57 = vpack.c.bf16 %v12530_v19, %v12527_v47 }
 0xddc   :  { %v16256_v20 = vpack.c.bf16 %v12005_v17, %v11998_v32  ;;  %v12645_v17 = vsub.f32 %v12502_v55, %v12527_v47 }
 0xea2   :  { %v15310_v39 = vpop.f32.mrb[56].mxu1 }
 0xea3   :  { %vm10772_vm2 = vcmp.gt.f32.partialorder %v15310_v39, 0.0  ;;  %v10776_v9 = vmul.f32 0.01, %v15310_v39  ;;  %v10749_v41 = vpop.f32.mrb[57].mxu1 }
 0xea4   :  { %vm10771_vm0 = vcmp.gt.f32.partialorder %v10749_v41, 0.0  ;;  %v10775_v13 = vmul.f32 0.01, %v10749_v41 }
 0xea5   :  { %v10780_v28 = vsel %vm10772_vm2, %v15310_v39, %v10776_v9 }
 0xea6   :  { %v11862_v26 = vsel %vm670_vm15, %v10780_v28, 0  ;;  %v10779_v21 = vsel %vm10771_vm0, %v10749_v41, %v10775_v13  ;;  %v15313_v31 = vpop.f32.mrb[58].mxu1 }
 0xea7   :  { %v18199_v56 = vand.u32 4294901760, %v11862_v26  ;;  %v11859_v42 = vsel %vm670_vm15, %v10779_v21, 0  ;;  %vm10774_vm3 = vcmp.gt.f32.partialorder %v15313_v31, 0.0  ;;  %v10778_v30 = vmul.f32 0.01, %v15313_v31  ;;  %v10761_v35 = vpop.f32.mrb[59].mxu1 }
 0xea8   :  { %v18202_v29 = vand.u32 4294901760, %v11859_v42  ;;  %vm10773_vm9 = vcmp.gt.f32.partialorder %v10761_v35, 0.0  ;;  %v10777_v62 = vmul.f32 0.01, %v10761_v35 }
 0xea9   :  { %v11950_v12 = vsub.f32 %v11862_v26, %v18199_v56  ;;  %v10782_v33 = vsel %vm10774_vm3, %v15313_v31, %v10778_v30 }
 0xeaa   :  { %v11940_v2 = vsub.f32 %v11859_v42, %v18202_v29  ;;  %v11868_v5 = vsel %vm670_vm15, %v10782_v33, 0  ;;  %v10781_v10 = vsel %vm10773_vm9, %v10761_v35, %v10777_v62 }
 0xeab   :  { %v11951_v15 = vand.u32 4294901760, %v11950_v12  ;;  %v11969_v22 = vand.u32 4294901760, %v11868_v5  ;;  %v11865_v16 = vsel %vm670_vm15, %v10781_v10, 0 }
 0xeac   :  { %v11959_v61 = vand.u32 4294901760, %v11865_v16  ;;  %v11941_v23 = vand.u32 4294901760, %v11940_v2 }
 0xead   :  { %v11952_v11 = vsub.f32 %v11950_v12, %v11951_v15  ;;  %v11970_v44 = vsub.f32 %v11868_v5, %v11969_v22 }
 0xeae   :  { %v11960_v7 = vsub.f32 %v11865_v16, %v11959_v61  ;;  %v11942_v38 = vsub.f32 %v11940_v2, %v11941_v23 }
 0xeaf   :  { %v11971_v45 = vand.u32 4294901760, %v11970_v44  ;;  %v11953_v52 = vand.u32 4294901760, %v11952_v11 }
 0xeb0   :  { %v11943_v49 = vand.u32 4294901760, %v11942_v38  ;;  %v11961_v50 = vand.u32 4294901760, %v11960_v7 }
 0xeb1   :  { %v11972_v40 = vsub.f32 %v11970_v44, %v11971_v45 }
 0xeb2   :  { %15436 = vmatprep.mubr.f32.mxu0 %v11943_v49  ;;  %v11962_v53 = vsub.f32 %v11960_v7, %v11961_v50 }
 0xeb3   :  { %15437 = vmatmul.mubr.f32.vlgmr.msra.gmra.mrb[48].mxu0 %v11953_v52  ;;  %v11973_v14 = vand.u32 4294901760, %v11972_v40 }
 0xeb4   :  { %16255 = vmatpush3.bf16.msra.mxu0 %v16252_v59  ;;  %v11963_v3 = vand.u32 4294901760, %v11962_v53 }
 0xeb5   :  { %16257 = vmatprep.subr.bf16.mxu0 %v16256_v20 }
 0xeb6   :  { %15439 = vmatprep.mubr.f32.mxu0 %v11963_v3 }
 0xeb7   :  { %15440 = vmatmul.mubr.f32.gmra.mrb[50].mxu0 %v11973_v14 }
 0xeb8   :  { %16259 = vmatpush3.bf16.msra.mxu0 %v16256_v20  ;;  %15450 = vmatprep.mubr.f32.mxu0 %v18202_v29  ;;  %v12652_v20 = vsub.f32 %v12503_v60, %v12530_v19 }
 0xeb9   :  { %16261 = vmatprep.subr.bf16.mxu0 %v16260_v0 }
 0xeba   :  { %v16312_v31 = vpack.c.bf16 %v12652_v20, %v12645_v17 }
 0xebb   :  { %15451 = vmatmul.mubr.f32.vlgmr.msra.gmra.mrb[48].mxu0 %v18199_v56 }
 0xebc   :  { %15453 = vmatprep.mubr.f32.mxu0 %v11959_v61  ;;  %16263 = vmatpush3.bf16.msra.mxu0 %v16260_v0 }
 0xebd   :  { %16265 = vmatprep.subr.bf16.mxu0 %v16264_v24 }
 0xebf   :  { %15454 = vmatmul.mubr.f32.gmra.mrb[50].mxu0 %v11969_v22 }
 0xec0   :  { %16267 = vmatpush3.bf16.msra.mxu0 %v16264_v24  ;;  %15464 = vmatprep.mubr.f32.mxu0 %v11940_v2 }
 0xec1   :  { %16269 = vmatprep.subr.bf16.mxu0 %v18180_v36 }
 0xec3   :  { %15465 = vmatmul.mubr.f32.vlgmr.msra.gmra.mrb[48].mxu0 %v11950_v12 }
 0xec4   :  { %15467 = vmatprep.mubr.f32.mxu0 %v11960_v7  ;;  %16271 = vmatpush3.bf16.msra.mxu0 %v18180_v36 }
 0xec5   :  { %16273 = vmatprep.subr.bf16.mxu0 %v18190_v63 }
 0xec7   :  { %15468 = vmatmul.mubr.f32.gmra.mrb[50].mxu0 %v11970_v44 }
 0xec8   :  { %16275 = vmatpush3.bf16.msra.mxu0 %v18190_v63  ;;  %15478 = vmatprep.mubr.f32.mxu0 %v11941_v23 }
 0xec9   :  { %16277 = vmatprep.subr.bf16.mxu0 %v18194_v27 }
 0xecb   :  { %15479 = vmatmul.mubr.f32.vlgmr.msra.gmra.mrb[48].mxu0 %v11951_v15 }
 0xecc   :  { %15481 = vmatprep.mubr.f32.mxu0 %v11961_v50  ;;  %16279 = vmatpush3.bf16.msra.mxu0 %v18194_v27  ;;  %v12646_v27 = vand.u32 4294901760, %v12645_v17 }
 0xecd   :  { %16281 = vmatprep.subr.bf16.mxu0 %v18196_v4 }
 0xece   :  { %v12647_v9 = vsub.f32 %v12645_v17, %v12646_v27 }
 0xecf   :  { %15482 = vmatmul.mubr.f32.gmra.mrb[50].mxu0 %v11971_v45 }
 0xed0   :  { %16283 = vmatpush3.bf16.msra.mxu0 %v18196_v4  ;;  %15492 = vmatprep.mubr.f32.mxu0 %v18202_v29  ;;  %v12653_v4 = vand.u32 4294901760, %v12652_v20  ;;  %v12648_v13 = vand.u32 4294901760, %v12647_v9 }
 0xed1   :  { %16285 = vmatprep.subr.bf16.mxu0 %v18180_v36 }
 0xed2   :  { %v12654_v41 = vsub.f32 %v12652_v20, %v12653_v4  ;;  %v18248_v42 = vpack.c.bf16 %v12653_v4, %v12646_v27 }
 0xed3   :  { %15493 = vmatmul.mubr.f32.vlgmr.msra.gmra.mrb[48].mxu0 %v18199_v56 }
 0xed4   :  { %15495 = vmatprep.mubr.f32.mxu0 %v11959_v61  ;;  %16287 = vmatpush3.bf16.msra.mxu0 %v18180_v36  ;;  %v12521_v36 = vand.u32 4294901760, %v12500_v46  ;;  %v12655_v28 = vand.u32 4294901760, %v12654_v41 }
 0xed5   :  { %16289 = vmatprep.subr.bf16.mxu0 %v18190_v63 }
 0xed6   :  { %v18232_v8 = vpack.c.bf16 %v12524_v51, %v12521_v36  ;;  %v12631_v58 = vsub.f32 %v12500_v46, %v12521_v36  ;;  %v16304_v26 = vpack.c.bf16 %v12655_v28, %v12648_v13 }
 0xed7   :  { %15496 = vmatmul.mubr.f32.gmra.mrb[50].mxu0 %v11969_v22 }
 0xed8   :  { %16291 = vmatpush3.bf16.msra.mxu0 %v18190_v63  ;;  %15506 = vmatprep.mubr.f32.mxu0 %v18202_v29  ;;  %v12638_v63 = vsub.f32 %v12501_v48, %v12524_v51  ;;  %v12632_v43 = vand.u32 4294901760, %v12631_v58 }
 0xed9   :  { %16293 = vmatprep.subr.bf16.mxu1 %v18232_v8 }
 0xeda   :  { %v12639_v59 = vand.u32 4294901760, %v12638_v63  ;;  %16295 = vmatpush3.bf16.msra.mxu1 %v18232_v8  ;;  %v12633_v34 = vsub.f32 %v12631_v58, %v12632_v43  ;;  %v16308_v21 = vpack.c.bf16 %v12638_v63, %v12631_v58 }
 0xedb   :  { %15507 = vmatmul.mubr.f32.vlgmr.msra.gmra.mrb[48].mxu0 %v18199_v56  ;;  %16297 = vmatprep.subr.bf16.mxu1 %v18242_v57 }
 0xedc   :  { %15509 = vmatprep.mubr.f32.mxu0 %v11959_v61  ;;  %v12640_v32 = vsub.f32 %v12638_v63, %v12639_v59  ;;  %v12634_v0 = vand.u32 4294901760, %v12633_v34  ;;  %v18246_v56 = vpack.c.bf16 %v12639_v59, %v12632_v43  ;;  %v16655_v43 = vld [vmem:[%s18303_s2 + $0x240] sm:$0xff] }
 0xedd   :  { %v12507_v59 = vrot.slane %v16655_v43, %v10789_v1 }
 0xede   :  { %v12641_v24 = vand.u32 4294901760, %v12640_v32  ;;  %16299 = vmatpush3.bf16.msra.mxu1 %v18242_v57 }
 0xedf   :  { %15510 = vmatmul.mubr.f32.gmra.mrb[50].mxu0 %v11969_v22 }
 0xee0   :  { %v16300_v39 = vpack.c.bf16 %v12641_v24, %v12634_v0 }
 0xee2   :  { %16301 = vmatprep.subr.bf16.mxu1 %v16300_v39 }
 0xfae   :  { %v15508_v30 = vpop.f32.mrb[48].mxu0 }
 0xfaf   :  { %v12485_v35 = vadd.f32 %v15508_v30, %v17618_v54  ;;  %v12462_v29 = vpop.f32.mrb[49].mxu0 }
 0xfb0   :  { %v12484_v62 = vadd.f32 %v12462_v29, %v17622_v25 }
 0xfb1   :  { %vm12489_vm10 = vcmp.gt.f32.partialorder %v12485_v35, 0.0  ;;  %v12493_v12 = vmul.f32 0.01, %v12485_v35 }
 0xfb2   :  { %vm12488_vm11 = vcmp.gt.f32.partialorder %v12484_v62, 0.0  ;;  %v12492_v33 = vmul.f32 0.01, %v12484_v62  ;;  %v15511_v2 = vpop.f32.mrb[50].mxu0 }
 0xfb3   :  { %v12497_v5 = vsel %vm12489_vm10, %v12485_v35, %v12493_v12  ;;  %v12487_v10 = vadd.f32 %v15511_v2, %v17630_v18  ;;  %v12474_v15 = vpop.f32.mrb[51].mxu0 }
 0xfb4   :  { %v12512_v22 = vsel %vm670_vm15, %v12497_v5, 0  ;;  %v12496_v16 = vsel %vm12488_vm11, %v12484_v62, %v12492_v33  ;;  %v12486_v61 = vadd.f32 %v12474_v15, %v17633_v6 }
 0xfb5   :  { %v18255_v23 = vand.u32 4294901760, %v12512_v22  ;;  %v12509_v54 = vsel %vm670_vm15, %v12496_v16, 0  ;;  %vm12491_vm4 = vcmp.gt.f32.partialorder %v12487_v10, 0.0  ;;  %v12495_v25 = vmul.f32 0.01, %v12487_v10 }
 0xfb6   :  { %v18258_v11 = vand.u32 4294901760, %v12509_v54  ;;  %vm12490_vm5 = vcmp.gt.f32.partialorder %v12486_v61, 0.0  ;;  %v12494_v44 = vmul.f32 0.01, %v12486_v61 }
 0xfb7   :  { %v12600_v7 = vsub.f32 %v12512_v22, %v18255_v23  ;;  %v12499_v38 = vsel %vm12491_vm4, %v12487_v10, %v12495_v25 }
 0xfb8   :  { %v12590_v18 = vsub.f32 %v12509_v54, %v18258_v11  ;;  %v12518_v45 = vsel %vm670_vm15, %v12499_v38, 0  ;;  %v12498_v49 = vsel %vm12490_vm5, %v12486_v61, %v12494_v44 }
 0xfb9   :  { %v12601_v50 = vand.u32 4294901760, %v12600_v7  ;;  %v12619_v6 = vand.u32 4294901760, %v12518_v45  ;;  %v12515_v52 = vsel %vm670_vm15, %v12498_v49, 0 }
 0xfba   :  { %v12609_v40 = vand.u32 4294901760, %v12515_v52  ;;  %v12591_v53 = vand.u32 4294901760, %v12590_v18 }
 0xfbb   :  { %v12602_v3 = vsub.f32 %v12600_v7, %v12601_v50  ;;  %v12620_v14 = vsub.f32 %v12518_v45, %v12619_v6 }
 0xfbc   :  { %v12610_v46 = vsub.f32 %v12515_v52, %v12609_v40  ;;  %v12592_v48 = vsub.f32 %v12590_v18, %v12591_v53 }
 0xfbd   :  { %v12621_v36 = vand.u32 4294901760, %v12620_v14  ;;  %v12603_v63 = vand.u32 4294901760, %v12602_v3 }
 0xfbe   :  { %v12593_v51 = vand.u32 4294901760, %v12592_v48  ;;  %v12611_v58 = vand.u32 4294901760, %v12610_v46 }
 0xfbf   :  { %v12622_v55 = vsub.f32 %v12620_v14, %v12621_v36 }
 0xfc0   :  { %15520 = vmatprep.mubr.f32.mxu1 %v12593_v51  ;;  %v12612_v60 = vsub.f32 %v12610_v46, %v12611_v58 }
 0xfc1   :  { %15521 = vmatmul.mubr.f32.vlgmr.msra.gmra.mrb[60].mxu1 %v12603_v63  ;;  %v12623_v19 = vand.u32 4294901760, %v12622_v55 }
 0xfc2   :  { %16303 = vmatpush3.bf16.msra.mxu1 %v16300_v39  ;;  %v12613_v47 = vand.u32 4294901760, %v12612_v60 }
 0xfc3   :  { %16305 = vmatprep.subr.bf16.mxu1 %v16304_v26 }
 0xfc4   :  { %15523 = vmatprep.mubr.f32.mxu1 %v12613_v47 }
 0xfc5   :  { %15524 = vmatmul.mubr.f32.gmra.mrb[62].mxu1 %v12623_v19 }
 0xfc6   :  { %16307 = vmatpush3.bf16.msra.mxu1 %v16304_v26  ;;  %15534 = vmatprep.mubr.f32.mxu1 %v18258_v11 }
 0xfc7   :  { %16309 = vmatprep.subr.bf16.mxu1 %v16308_v21 }
 0xfc9   :  { %15535 = vmatmul.mubr.f32.vlgmr.msra.gmra.mrb[60].mxu1 %v18255_v23 }
 0xfca   :  { %15537 = vmatprep.mubr.f32.mxu1 %v12609_v40  ;;  %16311 = vmatpush3.bf16.msra.mxu1 %v16308_v21 }
 0xfcb   :  { %16313 = vmatprep.subr.bf16.mxu1 %v16312_v31 }
 0xfcd   :  { %15538 = vmatmul.mubr.f32.gmra.mrb[62].mxu1 %v12619_v6 }
 0xfce   :  { %16315 = vmatpush3.bf16.msra.mxu1 %v16312_v31  ;;  %15548 = vmatprep.mubr.f32.mxu1 %v12590_v18 }
 0xfcf   :  { %16317 = vmatprep.subr.bf16.mxu1 %v18232_v8 }
 0xfd1   :  { %15549 = vmatmul.mubr.f32.vlgmr.msra.gmra.mrb[60].mxu1 %v12600_v7 }
 0xfd2   :  { %15551 = vmatprep.mubr.f32.mxu1 %v12610_v46  ;;  %16319 = vmatpush3.bf16.msra.mxu1 %v18232_v8 }
 0xfd3   :  { %16321 = vmatprep.subr.bf16.mxu1 %v18242_v57 }
 0xfd5   :  { %15552 = vmatmul.mubr.f32.gmra.mrb[62].mxu1 %v12620_v14 }
 0xfd6   :  { %16323 = vmatpush3.bf16.msra.mxu1 %v18242_v57  ;;  %15562 = vmatprep.mubr.f32.mxu1 %v12591_v53 }
 0xfd7   :  { %16325 = vmatprep.subr.bf16.mxu1 %v18246_v56 }
 0xfd9   :  { %15563 = vmatmul.mubr.f32.vlgmr.msra.gmra.mrb[60].mxu1 %v12601_v50 }
 0xfda   :  { %15565 = vmatprep.mubr.f32.mxu1 %v12611_v58  ;;  %16327 = vmatpush3.bf16.msra.mxu1 %v18246_v56 }
 0xfdb   :  { %16329 = vmatprep.subr.bf16.mxu1 %v18248_v42 }
 0xfdd   :  { %15566 = vmatmul.mubr.f32.gmra.mrb[62].mxu1 %v12621_v36 }
 0xfde   :  { %16331 = vmatpush3.bf16.msra.mxu1 %v18248_v42  ;;  %15576 = vmatprep.mubr.f32.mxu1 %v18258_v11 }
 0xfdf   :  { %16333 = vmatprep.subr.bf16.mxu1 %v18232_v8 }
 0xfe1   :  { %15577 = vmatmul.mubr.f32.vlgmr.msra.gmra.mrb[60].mxu1 %v18255_v23 }
 0xfe2   :  { %15579 = vmatprep.mubr.f32.mxu1 %v12609_v40  ;;  %16335 = vmatpush3.bf16.msra.mxu1 %v18232_v8 }
 0xfe3   :  { %16337 = vmatprep.subr.bf16.mxu1 %v18242_v57 }
 0xfe5   :  { %15580 = vmatmul.mubr.f32.gmra.mrb[62].mxu1 %v12619_v6 }
 0xfe6   :  { %16339 = vmatpush3.bf16.msra.mxu1 %v18242_v57  ;;  %15590 = vmatprep.mubr.f32.mxu1 %v18258_v11 }
 0xfe9   :  { %15591 = vmatmul.mubr.f32.vlgmr.msra.gmra.mrb[60].mxu1 %v18255_v23 }
 0xfea   :  { %15593 = vmatprep.mubr.f32.mxu1 %v12609_v40 }
 0xfed   :  { %15594 = vmatmul.mubr.f32.gmra.mrb[62].mxu1 %v12619_v6 }
0x10bc   :  { %v15592_v34 = vpop.f32.mrb[60].mxu1 }
0x10bd   :  { %v16354_v8 = vadd.f32 %v15592_v34, %v12507_v59  ;;  %v13112_v32 = vpop.f32.mrb[61].mxu1 }
0x10be   :  { %v16355_v17 = vadd.f32 %v13112_v32, %v12507_v59 }
0x10bf   :  { %13135 = vst.msk [vmem:[%s18306_s3 + $0x8] sm:$0xff] %vm66_vm1, %v16354_v8 }
0x10c0   :  { %13134 = vst.msk [vmem:[%s18306_s3] sm:$0xff] %vm66_vm1, %v16355_v17  ;;  %v15595_v57 = vpop.f32.mrb[62].mxu1 }
0x10c1   :  { %v16356_v20 = vadd.f32 %v15595_v57, %v12507_v59  ;;  %v13124_v0 = vpop.f32.mrb[63].mxu1 }
0x10c2   :  { %v16357_v24 = vadd.f32 %v13124_v0, %v12507_v59 }
0x10c3   :  { %13137 = vst.msk [vmem:[%s18306_s3 + $0x18] sm:$0xff] %vm66_vm1, %v16356_v20 }
0x10c4   :  { %13136 = vst.msk [vmem:[%s18306_s3 + $0x10] sm:$0xff] %vm66_vm1, %v16357_v24 }

</bundles_post_ra>
